<compile_context>
chip_gen: v5e
topology: v5e:2x2
jax: 0.10.0
libtpu: 0.0.40
codegen_flags: <defaults>
</compile_context>

<pallas_src>
import jax
import jax.numpy as jnp
from jax.experimental import pallas as pl
from jax.experimental.pallas import tpu as pltpu

_LAYER_DIMS = [(1 * 28 * 28, 1024), (1024, 512), (512, 256), (256, 1)]
_PAD_OUT = 128  # last-layer output padded 1 -> 128 lanes for a lane-dense store


def _leaky_relu(y):
    return jnp.maximum(y, jnp.float32(0.2) * y)


def _fused_discriminator_kernel(x_ref,
                                w0_ref, b0_ref,
                                w1_ref, b1_ref,
                                w2_ref, b2_ref,
                                w3_ref, b3_ref,
                                o_ref):
    """One batch tile: 784->1024->512->256->128(padded) fully fused."""
    h = x_ref[...].astype(jnp.bfloat16)

    h = jnp.dot(h, w0_ref[...], preferred_element_type=jnp.float32) + b0_ref[...]
    h = _leaky_relu(h).astype(jnp.bfloat16)

    h = jnp.dot(h, w1_ref[...], preferred_element_type=jnp.float32) + b1_ref[...]
    h = _leaky_relu(h).astype(jnp.bfloat16)

    h = jnp.dot(h, w2_ref[...], preferred_element_type=jnp.float32) + b2_ref[...]
    h = _leaky_relu(h).astype(jnp.bfloat16)

    y = jnp.dot(h, w3_ref[...], preferred_element_type=jnp.float32) + b3_ref[...]
    o_ref[...] = (1.0 / (1.0 + jnp.exp(-y))).astype(o_ref.dtype)


def _choose_batch_tile(batch: int) -> int:
    # MXU-friendly tile for real batches; round tiny batches up to the
    # sublane quantum (8).
    if batch >= 128:
        return 128
    return ((batch + 7) // 8) * 8


def _fused_forward_2d(x2d, params, *, tb):
    """x2d: (B, 784) f32 -> (B, 1) f32 sigmoid outputs."""
    B, K = x2d.shape
    (w0, b0), (w1, b1), (w2, b2), (w3, b3) = params

    # Pad the final (256, 1) layer to (256, 128) so the output store is
    # lane-dense; extra columns are zero and discarded by the wrapper.
    w3p = jnp.zeros((w3.shape[0], _PAD_OUT), w3.dtype).at[:, :1].set(w3)
    b3p = jnp.zeros((_PAD_OUT,), b3.dtype).at[:1].set(b3)

    # Pad batch to a multiple of the batch tile.
    Bp = ((B + tb - 1) // tb) * tb
    if Bp != B:
        x2d = jnp.pad(x2d, ((0, Bp - B), (0, 0)))

    def resident(shape):  # weight/bias block identical for every grid step
        return pl.BlockSpec(shape, lambda i: (0, 0))

    out = pl.pallas_call(
        _fused_discriminator_kernel,
        out_shape=jax.ShapeDtypeStruct((Bp, _PAD_OUT), jnp.float32),
        grid=(Bp // tb,),
        in_specs=[
            pl.BlockSpec((tb, K), lambda i: (i, 0)),          # x batch tile
            resident(w0.shape), resident((1, b0.shape[0])),
            resident(w1.shape), resident((1, b1.shape[0])),
            resident(w2.shape), resident((1, b2.shape[0])),
            resident(w3p.shape), resident((1, _PAD_OUT)),
        ],
        out_specs=pl.BlockSpec((tb, _PAD_OUT), lambda i: (i, 0)),
        compiler_params=pltpu.CompilerParams(
            dimension_semantics=("parallel",),   # v7x: split batch tiles over 2 TCs
            vmem_limit_bytes=64 << 20,           # headroom for resident weights
        ),
    )(x2d,
      w0, b0.reshape(1, -1),
      w1, b1.reshape(1, -1),
      w2, b2.reshape(1, -1),
      w3p, b3p.reshape(1, -1))

    return out[:B, :1]


# -------------------- parameter construction (deterministic) --------------------

def init_discriminator_params(key):
    """Mimics torch.nn.Linear default init: U(-1/sqrt(fan_in), 1/sqrt(fan_in)).
    Weights are stored in bf16 (MXU inputs); biases stay f32."""
    params = []
    for (fan_in, fan_out) in _LAYER_DIMS:
        key, kw, kb = jax.random.split(key, 3)
        bound = 1.0 / jnp.sqrt(jnp.float32(fan_in))
        w = jax.random.uniform(kw, (fan_in, fan_out), jnp.float32, -bound, bound)
        b = jax.random.uniform(kb, (fan_out,), jnp.float32, -bound, bound)
        params.append((w.astype(jnp.bfloat16), b))
    return params


# ------------------------------- forward pass -----------------------------------

@jax.jit
def discriminator_forward(x, params):
    """x: (B, 1, 28, 28) NCHW float32 -> (B, 1) sigmoid outputs."""
    B = x.shape[0]
    h = x.reshape(B, -1)                  # flatten, matches torch .view(B, -1)
    tb = _choose_batch_tile(B)            # static under jit (shape-derived)
    return _fused_forward_2d(h, params, tb=tb)


def _reference_forward(x, params):
    """Pure-JAX reference using the same bf16-weight / f32-accumulate math."""
    B = x.shape[0]
    h = x.reshape(B, -1)
    n = len(params)
    for i, (w, b) in enumerate(params):
        h = jnp.dot(h.astype(jnp.bfloat16), w.astype(jnp.bfloat16),
                    preferred_element_type=jnp.float32) + b
        if i < n - 1:
            h = jnp.maximum(h, 0.2 * h)
        else:
            h = 1.0 / (1.0 + jnp.exp(-h))
    return h


if __name__ == "__main__":
    key = jax.random.PRNGKey(0)
    key, kx = jax.random.split(key)

    # Small batch, MNIST-shaped input implied by the 1*28*28 flatten.
    x = jax.random.normal(kx, (2, 1, 28, 28), dtype=jnp.float32)

    params = init_discriminator_params(jax.random.PRNGKey(0))

    out = discriminator_forward(x, params)
    out = jax.block_until_ready(out)

    ref = _reference_forward(x, params)
    assert out.shape == (2, 1), out.shape
    assert bool(jnp.all(jnp.isfinite(out))), out
    assert jnp.allclose(out, ref, atol=2e-3, rtol=2e-3), (out, ref)

    print("KERNEL_OK")
</pallas_src>

<mosaic_0001>
module attributes {stable_mosaic.version = 11 : i64} {
  func.func @_fused_discriminator_kernel(%arg0: i32, %arg1: memref<8x784xf32, #tpu.memory_space<vmem>>, %arg2: memref<784x1024xbf16, #tpu.memory_space<vmem>>, %arg3: memref<1x1024xf32, #tpu.memory_space<vmem>>, %arg4: memref<1024x512xbf16, #tpu.memory_space<vmem>>, %arg5: memref<1x512xf32, #tpu.memory_space<vmem>>, %arg6: memref<512x256xbf16, #tpu.memory_space<vmem>>, %arg7: memref<1x256xf32, #tpu.memory_space<vmem>>, %arg8: memref<256x128xbf16, #tpu.memory_space<vmem>>, %arg9: memref<1x128xf32, #tpu.memory_space<vmem>>, %arg10: memref<8x128xf32, #tpu.memory_space<vmem>>) attributes {dimension_semantics = [#tpu.dimension_semantics<parallel>], iteration_bounds = array<i64: 1>, scalar_prefetch = 0 : i64, scratch_operands = 0 : i64, tpu.core_type = #tpu.core_type<tc>, window_params = [{transform_indices = @transform_0, window_bounds = array<i64: 8, 784>}, {pipeline_mode = #tpu.pipeline_mode<synchronous>, transform_indices = @transform_1, window_bounds = array<i64: 784, 1024>}, {pipeline_mode = #tpu.pipeline_mode<synchronous>, transform_indices = @transform_2, window_bounds = array<i64: 1, 1024>}, {pipeline_mode = #tpu.pipeline_mode<synchronous>, transform_indices = @transform_3, window_bounds = array<i64: 1024, 512>}, {pipeline_mode = #tpu.pipeline_mode<synchronous>, transform_indices = @transform_4, window_bounds = array<i64: 1, 512>}, {pipeline_mode = #tpu.pipeline_mode<synchronous>, transform_indices = @transform_5, window_bounds = array<i64: 512, 256>}, {pipeline_mode = #tpu.pipeline_mode<synchronous>, transform_indices = @transform_6, window_bounds = array<i64: 1, 256>}, {pipeline_mode = #tpu.pipeline_mode<synchronous>, transform_indices = @transform_7, window_bounds = array<i64: 256, 128>}, {pipeline_mode = #tpu.pipeline_mode<synchronous>, transform_indices = @transform_8, window_bounds = array<i64: 1, 128>}, {transform_indices = @transform_9, window_bounds = array<i64: 8, 128>}]} {
    %c0 = arith.constant 0 : index
    %c0_0 = arith.constant 0 : index
    %0 = vector.load %arg1[%c0, %c0_0] : memref<8x784xf32, #tpu.memory_space<vmem>>, vector<8x784xf32>
    %1 = arith.truncf %0 : vector<8x784xf32> to vector<8x784xbf16>
    %c0_1 = arith.constant 0 : index
    %c0_2 = arith.constant 0 : index
    %2 = vector.load %arg2[%c0_1, %c0_2] : memref<784x1024xbf16, #tpu.memory_space<vmem>>, vector<784x1024xbf16>
    %cst = arith.constant dense<0.000000e+00> : vector<8x1024xf32>
    %3 = tpu.matmul %1, %2, %cst {dimension_numbers = #tpu.dot_dimension_numbers<[1], [0], [0], [1], [0, 0, 1, 1], [], []>} : vector<8x784xbf16>, vector<784x1024xbf16>, vector<8x1024xf32> -> vector<8x1024xf32>
    %c0_3 = arith.constant 0 : index
    %c0_4 = arith.constant 0 : index
    %4 = vector.load %arg3[%c0_3, %c0_4] : memref<1x1024xf32, #tpu.memory_space<vmem>>, vector<1x1024xf32>
    %5 = vector.broadcast %4 : vector<1x1024xf32> to vector<8x1024xf32>
    %6 = arith.addf %3, %5 : vector<8x1024xf32>
    %cst_5 = arith.constant 2.000000e-01 : f32
    %7 = vector.broadcast %cst_5 : f32 to vector<8x1024xf32>
    %8 = arith.mulf %7, %6 : vector<8x1024xf32>
    %9 = arith.maximumf %6, %8 : vector<8x1024xf32>
    %10 = arith.truncf %9 : vector<8x1024xf32> to vector<8x1024xbf16>
    %c0_6 = arith.constant 0 : index
    %c0_7 = arith.constant 0 : index
    %11 = vector.load %arg4[%c0_6, %c0_7] : memref<1024x512xbf16, #tpu.memory_space<vmem>>, vector<1024x512xbf16>
    %cst_8 = arith.constant dense<0.000000e+00> : vector<8x512xf32>
    %12 = tpu.matmul %10, %11, %cst_8 {dimension_numbers = #tpu.dot_dimension_numbers<[1], [0], [0], [1], [0, 0, 1, 1], [], []>} : vector<8x1024xbf16>, vector<1024x512xbf16>, vector<8x512xf32> -> vector<8x512xf32>
    %c0_9 = arith.constant 0 : index
    %c0_10 = arith.constant 0 : index
    %13 = vector.load %arg5[%c0_9, %c0_10] : memref<1x512xf32, #tpu.memory_space<vmem>>, vector<1x512xf32>
    %14 = vector.broadcast %13 : vector<1x512xf32> to vector<8x512xf32>
    %15 = arith.addf %12, %14 : vector<8x512xf32>
    %cst_11 = arith.constant 2.000000e-01 : f32
    %16 = vector.broadcast %cst_11 : f32 to vector<8x512xf32>
    %17 = arith.mulf %16, %15 : vector<8x512xf32>
    %18 = arith.maximumf %15, %17 : vector<8x512xf32>
    %19 = arith.truncf %18 : vector<8x512xf32> to vector<8x512xbf16>
    %c0_12 = arith.constant 0 : index
    %c0_13 = arith.constant 0 : index
    %20 = vector.load %arg6[%c0_12, %c0_13] : memref<512x256xbf16, #tpu.memory_space<vmem>>, vector<512x256xbf16>
    %cst_14 = arith.constant dense<0.000000e+00> : vector<8x256xf32>
    %21 = tpu.matmul %19, %20, %cst_14 {dimension_numbers = #tpu.dot_dimension_numbers<[1], [0], [0], [1], [0, 0, 1, 1], [], []>} : vector<8x512xbf16>, vector<512x256xbf16>, vector<8x256xf32> -> vector<8x256xf32>
    %c0_15 = arith.constant 0 : index
    %c0_16 = arith.constant 0 : index
    %22 = vector.load %arg7[%c0_15, %c0_16] : memref<1x256xf32, #tpu.memory_space<vmem>>, vector<1x256xf32>
    %23 = vector.broadcast %22 : vector<1x256xf32> to vector<8x256xf32>
    %24 = arith.addf %21, %23 : vector<8x256xf32>
    %cst_17 = arith.constant 2.000000e-01 : f32
    %25 = vector.broadcast %cst_17 : f32 to vector<8x256xf32>
    %26 = arith.mulf %25, %24 : vector<8x256xf32>
    %27 = arith.maximumf %24, %26 : vector<8x256xf32>
    %28 = arith.truncf %27 : vector<8x256xf32> to vector<8x256xbf16>
    %c0_18 = arith.constant 0 : index
    %c0_19 = arith.constant 0 : index
    %29 = vector.load %arg8[%c0_18, %c0_19] : memref<256x128xbf16, #tpu.memory_space<vmem>>, vector<256x128xbf16>
    %cst_20 = arith.constant dense<0.000000e+00> : vector<8x128xf32>
    %30 = tpu.matmul %28, %29, %cst_20 {dimension_numbers = #tpu.dot_dimension_numbers<[1], [0], [0], [1], [0, 0, 1, 1], [], []>} : vector<8x256xbf16>, vector<256x128xbf16>, vector<8x128xf32> -> vector<8x128xf32>
    %c0_21 = arith.constant 0 : index
    %c0_22 = arith.constant 0 : index
    %31 = vector.load %arg9[%c0_21, %c0_22] : memref<1x128xf32, #tpu.memory_space<vmem>>, vector<1x128xf32>
    %32 = vector.broadcast %31 : vector<1x128xf32> to vector<8x128xf32>
    %33 = arith.addf %30, %32 : vector<8x128xf32>
    %cst_23 = arith.constant 0.000000e+00 : f32
    %34 = vector.broadcast %cst_23 : f32 to vector<8x128xf32>
    %35 = arith.subf %34, %33 : vector<8x128xf32>
    %36 = math.exp %35 : vector<8x128xf32>
    %cst_24 = arith.constant 1.000000e+00 : f32
    %37 = vector.broadcast %cst_24 : f32 to vector<8x128xf32>
    %38 = arith.addf %37, %36 : vector<8x128xf32>
    %cst_25 = arith.constant 1.000000e+00 : f32
    %39 = vector.broadcast %cst_25 : f32 to vector<8x128xf32>
    %40 = arith.divf %39, %38 : vector<8x128xf32>
    %c0_26 = arith.constant 0 : index
    %c0_27 = arith.constant 0 : index
    %41 = vector.load %arg10[%c0_26, %c0_27] : memref<8x128xf32, #tpu.memory_space<vmem>>, vector<8x128xf32>
    tpu.vector_store %arg10[%c0_26, %c0_27], %40 {strides = array<i32>} : memref<8x128xf32, #tpu.memory_space<vmem>>, vector<8x128xf32>,
    return
  }
  func.func @transform_0(%arg0: i32) -> (i32, i32) {
    %c0_i32 = arith.constant 0 : i32
    %c0_i32_0 = arith.constant 0 : i32
    return %arg0, %c0_i32 : i32, i32
  }
  func.func @transform_1(%arg0: i32) -> (i32, i32) {
    %c0_i32 = arith.constant 0 : i32
    %c0_i32_0 = arith.constant 0 : i32
    %c0_i32_1 = arith.constant 0 : i32
    return %c0_i32, %c0_i32_0 : i32, i32
  }
  func.func @transform_2(%arg0: i32) -> (i32, i32) {
    %c0_i32 = arith.constant 0 : i32
    %c0_i32_0 = arith.constant 0 : i32
    %c0_i32_1 = arith.constant 0 : i32
    return %c0_i32, %c0_i32_0 : i32, i32
  }
  func.func @transform_3(%arg0: i32) -> (i32, i32) {
    %c0_i32 = arith.constant 0 : i32
    %c0_i32_0 = arith.constant 0 : i32
    %c0_i32_1 = arith.constant 0 : i32
    return %c0_i32, %c0_i32_0 : i32, i32
  }
  func.func @transform_4(%arg0: i32) -> (i32, i32) {
    %c0_i32 = arith.constant 0 : i32
    %c0_i32_0 = arith.constant 0 : i32
    %c0_i32_1 = arith.constant 0 : i32
    return %c0_i32, %c0_i32_0 : i32, i32
  }
  func.func @transform_5(%arg0: i32) -> (i32, i32) {
    %c0_i32 = arith.constant 0 : i32
    %c0_i32_0 = arith.constant 0 : i32
    %c0_i32_1 = arith.constant 0 : i32
    return %c0_i32, %c0_i32_0 : i32, i32
  }
  func.func @transform_6(%arg0: i32) -> (i32, i32) {
    %c0_i32 = arith.constant 0 : i32
    %c0_i32_0 = arith.constant 0 : i32
    %c0_i32_1 = arith.constant 0 : i32
    return %c0_i32, %c0_i32_0 : i32, i32
  }
  func.func @transform_7(%arg0: i32) -> (i32, i32) {
    %c0_i32 = arith.constant 0 : i32
    %c0_i32_0 = arith.constant 0 : i32
    %c0_i32_1 = arith.constant 0 : i32
    return %c0_i32, %c0_i32_0 : i32, i32
  }
  func.func @transform_8(%arg0: i32) -> (i32, i32) {
    %c0_i32 = arith.constant 0 : i32
    %c0_i32_0 = arith.constant 0 : i32
    %c0_i32_1 = arith.constant 0 : i32
    return %c0_i32, %c0_i32_0 : i32, i32
  }
  func.func @transform_9(%arg0: i32) -> (i32, i32) {
    %c0_i32 = arith.constant 0 : i32
    %c0_i32_0 = arith.constant 0 : i32
    return %arg0, %c0_i32 : i32, i32
  }
}

</mosaic_0001>

<bundles_post_ra>
// kernel: discriminator_forward.1
= control target key start
LH: loop header
LB: loop body
LE: loop exit
PB: predicated region body
PF: predicated region fallthrough
CT: control target
= control target key end

     0   :  { %14 = vsyncpa [#allocation3], 0  ;;  %s10177_s0 = inlined_call_operand.vmem [shape: f32[8,784], index: 0, kind: input, shape index: {}]   ;;  %s10178_s1 = inlined_call_operand.hbm [shape: bf16[784,1024], index: 1, kind: input, shape index: {}]   ;;  %s10179_s2 = inlined_call_operand.hbm [shape: f32[1,1024], index: 2, kind: input, shape index: {}]   ;;  %s10180_s3 = inlined_call_operand.hbm [shape: bf16[1024,512], index: 3, kind: input, shape index: {}]   ;;  %s10181_s4 = inlined_call_operand.hbm [shape: f32[1,512], index: 4, kind: input, shape index: {}]   ;;  %s10182_s5 = inlined_call_operand.hbm [shape: bf16[512,256], index: 5, kind: input, shape index: {}]   ;;  %s10183_s6 = inlined_call_operand.hbm [shape: f32[1,256], index: 6, kind: input, shape index: {}]   ;;  %s10184_s7 = inlined_call_operand.vmem [shape: bf16[256,128], index: 7, kind: input, shape index: {}]   ;;  %s10185_s8 = inlined_call_operand.vmem [shape: f32[1,128], index: 8, kind: input, shape index: {}]   ;;  %s10186_s9 = inlined_call_operand.vmem [shape: f32[8,128], index: 9, kind: output, shape index: {}]  }
   0x1   :  { %15 = vsyncpa [#allocation5], 0 }
   0x2   :  { %16 = vsyncpa [#allocation8], 0  ;;  %s38_s11 = sshll.u32 %s10179_s2, 4  ;;  %s39_s11 = int_to_ptr.hbm [resolvable:$true] %s38_s11 }
   0x3   :  { %17 = vsyncpa [#allocation11], 0  ;;  %s9741_s12 = smov [#allocation4]   ;;  %s62_s16 = sshll.u32 %s10181_s4, 4  ;;  %s63_s16 = int_to_ptr.hbm [resolvable:$true] %s62_s16 }
   0x4   :  { %s40_s13 = sshll.u32 %s9741_s12, 4  ;;  %s9742_s17 = smov [#allocation7]   ;;  %s41_s13 = int_to_ptr.vmem [resolvable:$true] %s40_s13 }
   0x5   :  { %43 = dma.hbm_to_vmem [thread:$0]  %s39_s11, 128, %s41_s13, [#allocation5]  }
   0x6   :  { %s64_s18 = sshll.u32 %s9742_s17, 4  ;;  %s24_s21 = sshll.u32 %s10178_s1, 4  ;;  %s65_s18 = int_to_ptr.vmem [resolvable:$true] %s64_s18  ;;  %s25_s21 = int_to_ptr.hbm [resolvable:$true] %s24_s21 }
   0x7   :  { %67 = dma.hbm_to_vmem [thread:$0]  %s63_s16, 64, %s65_s18, [#allocation8]  }
   0x8   :  { %s9743_s2 = smov [#allocation2]   ;;  %s48_s25 = sshll.u32 %s10180_s3, 4  ;;  %s49_s25 = int_to_ptr.hbm [resolvable:$true] %s48_s25 }
   0x9   :  { %s26_s22 = sshll.u32 %s9743_s2, 4  ;;  %s9744_s26 = smov 512   ;;  %s27_s22 = int_to_ptr.vmem [resolvable:$true] %s26_s22 }
   0xa   :  { %s9745_s4 = smov 32   ;;  %s9746_s27 = smov [#allocation6]  }
   0xb   :  { %32 = dma.hbm_to_vmem [thread:$0]  %s25_s21, 50176, %s27_s22, [#allocation3], %s9744_s26, %s9744_s26, %s9745_s4  }
   0xc   :  { %s50_s28 = sshll.u32 %s9746_s27, 4  ;;  %s9747_s29 = smov 256   ;;  %s51_s28 = int_to_ptr.vmem [resolvable:$true] %s50_s28 }
   0xd   :  { %s9748_s30 = smov 16   ;;  %s72_s11 = sshll.u32 %s10182_s5, 4  ;;  %s73_s11 = int_to_ptr.hbm [resolvable:$true] %s72_s11 }
   0xe   :  { %56 = dma.hbm_to_vmem [thread:$0]  %s49_s25, 32768, %s51_s28, [#allocation5], %s9747_s29, %s9747_s29, %s9748_s30  }
   0xf   :  { %s9749_s12 = smov [#allocation9]   ;;  %s86_s15 = sshll.u32 %s10183_s6, 4  ;;  %s87_s15 = int_to_ptr.hbm [resolvable:$true] %s86_s15 }
  0x10   :  { %s74_s13 = sshll.u32 %s9749_s12, 4  ;;  %s9750_s16 = smov 128   ;;  %s75_s13 = int_to_ptr.vmem [resolvable:$true] %s74_s13 }
  0x11   :  { %s9751_s17 = smov 8   ;;  %s9752_s18 = smov [#allocation10]  }
  0x12   :  { %80 = dma.hbm_to_vmem [thread:$0]  %s73_s11, 8192, %s75_s13, [#allocation8], %s9750_s16, %s9750_s16, %s9751_s17  }
  0x13   :  { %s88_s19 = sshll.u32 %s9752_s18, 4  ;;  %s89_s19 = int_to_ptr.vmem [resolvable:$true] %s88_s19 }
  0x14   :  { %91 = dma.hbm_to_vmem [thread:$0]  %s87_s15, 32, %s89_s19, [#allocation11]  }
  0x15   :  { %9733 = dma.done.wait [#allocation3], 50176  }
  0x16   :  { %9734 = vsyncadd [#allocation3], 4294917120 }
  0x17   :  { %9735 = dma.done.wait [#allocation5], 32896  }
  0x18   :  { %9736 = vsyncadd [#allocation5], 4294934400 }
  0x19   :  { %9737 = dma.done.wait [#allocation8], 8256  }
  0x1a   :  { %9738 = vsyncadd [#allocation8], 4294959040 }
  0x1b   :  { %9739 = dma.done.wait [#allocation11], 32  }
  0x1c   :  { %9740 = vsyncadd [#allocation11], 4294967264  ;;  %v6147_v0 = vld [vmem:[#allocation2 + $0x1c0] sm:$0xf]  ;;  %vm2505_vm0 = vcmask 130048  }
  0x1d   :  { %v8901_v1 = vld [vmem:[#allocation2 + $0x1dc] sm:$0xf0] }
  0x1e   :  { %v6403_v2 = vld [vmem:[#allocation2 + $0x3c0] sm:$0xf]  ;;  %v6148_v3 = vor.u32 %v8901_v1, %v6147_v0 }
  0x1f   :  { %v8965_v4 = vld [vmem:[#allocation2 + $0x3dc] sm:$0xf0] }
  0x20   :  { %v6659_v5 = vld [vmem:[#allocation2 + $0x5c0] sm:$0xf]  ;;  %v6404_v7 = vor.u32 %v8965_v4, %v6403_v2  ;;  %2509 = vmatpush.bf16.msra.mxu0 %v6148_v3 }
  0x21   :  { %v9029_v6 = vld [vmem:[#allocation2 + $0x5dc] sm:$0xf0] }
  0x22   :  { %v6660_v8 = vor.u32 %v9029_v6, %v6659_v5  ;;  %v6915_v9 = vld [vmem:[#allocation2 + $0x7c0] sm:$0xf]  ;;  %2522 = vmatpush.bf16.msra.mxu1 %v6404_v7 }
  0x23   :  { %v9093_v10 = vld [vmem:[#allocation2 + $0x7dc] sm:$0xf0] }
  0x24   :  { %v6115_v11 = vld [vmem:[#allocation2 + $0x180] sm:$0xf]  ;;  %v6916_v12 = vor.u32 %v9093_v10, %v6915_v9  ;;  %2535 = vmatpush.bf16.msra.mxu2 %v6660_v8 }
  0x25   :  { %v8893_v13 = vld [vmem:[#allocation2 + $0x19c] sm:$0xf0] }
  0x26   :  { %v6371_v14 = vld [vmem:[#allocation2 + $0x380] sm:$0xf]  ;;  %v6116_v16 = vor.u32 %v8893_v13, %v6115_v11  ;;  %2548 = vmatpush.bf16.msra.mxu3 %v6916_v12 }
  0x27   :  { %v8957_v15 = vld [vmem:[#allocation2 + $0x39c] sm:$0xf0] }
  0x28   :  { %v6372_v17 = vor.u32 %v8957_v15, %v6371_v14  ;;  %v6627_v18 = vld [vmem:[#allocation2 + $0x580] sm:$0xf]  ;;  %2510 = vmatpush.bf16.msra.mxu0 %v6116_v16 }
  0x29   :  { %v9021_v19 = vld [vmem:[#allocation2 + $0x59c] sm:$0xf0] }
  0x2a   :  { %v6883_v20 = vld [vmem:[#allocation2 + $0x780] sm:$0xf]  ;;  %v6628_v21 = vor.u32 %v9021_v19, %v6627_v18  ;;  %2523 = vmatpush.bf16.msra.mxu1 %v6372_v17 }
  0x2b   :  { %v9085_v22 = vld [vmem:[#allocation2 + $0x79c] sm:$0xf0] }
  0x2c   :  { %v6083_v23 = vld [vmem:[#allocation2 + $0x140] sm:$0xf]  ;;  %v6884_v25 = vor.u32 %v9085_v22, %v6883_v20  ;;  %2536 = vmatpush.bf16.msra.mxu2 %v6628_v21 }
  0x2d   :  { %v8885_v24 = vld [vmem:[#allocation2 + $0x15c] sm:$0xf0] }
  0x2e   :  { %v6339_v26 = vld [vmem:[#allocation2 + $0x340] sm:$0xf]  ;;  %v6084_v29 = vor.u32 %v8885_v24, %v6083_v23  ;;  %2549 = vmatpush.bf16.msra.mxu3 %v6884_v25 }
  0x2f   :  { %v8949_v27 = vld [vmem:[#allocation2 + $0x35c] sm:$0xf0] }
  0x30   :  { %v6595_v28 = vld [vmem:[#allocation2 + $0x540] sm:$0xf]  ;;  %v6340_v33 = vor.u32 %v8949_v27, %v6339_v26  ;;  %2511 = vmatpush.bf16.msra.mxu0 %v6084_v29 }
  0x31   :  { %v9013_v30 = vld [vmem:[#allocation2 + $0x55c] sm:$0xf0] }
  0x32   :  { %v6851_v31 = vld [vmem:[#allocation2 + $0x740] sm:$0xf]  ;;  %v6596_v34 = vor.u32 %v9013_v30, %v6595_v28  ;;  %2524 = vmatpush.bf16.msra.mxu1 %v6340_v33  ;;  %v8897_v33 = vld [vmem:[#allocation2 + $0x1c4] sm:$0xf] }
  0x33   :  { %v9077_v32 = vld [vmem:[#allocation2 + $0x75c] sm:$0xf0] }
  0x34   :  { %v6051_v35 = vld [vmem:[#allocation2 + $0x100] sm:$0xf]  ;;  %v6852_v38 = vor.u32 %v9077_v32, %v6851_v31  ;;  %2537 = vmatpush.bf16.msra.mxu2 %v6596_v34  ;;  %v6149_v34 = vld [vmem:[#allocation2 + $0x1e0] sm:$0xf0] }
  0x35   :  { %v8877_v36 = vld [vmem:[#allocation2 + $0x11c] sm:$0xf0] }
  0x36   :  { %v6307_v37 = vld [vmem:[#allocation2 + $0x300] sm:$0xf]  ;;  %v6052_v44 = vor.u32 %v8877_v36, %v6051_v35  ;;  %2550 = vmatpush.bf16.msra.mxu3 %v6852_v38  ;;  %v123_v35 = vld [vmem:[%s10177_s0 + $0x10] sm:$0xff] }
  0x37   :  { %v8941_v39 = vld [vmem:[#allocation2 + $0x31c] sm:$0xf0] }
  0x38   :  { %v6563_v40 = vld [vmem:[#allocation2 + $0x500] sm:$0xf]  ;;  %v6308_v45 = vor.u32 %v8941_v39, %v6307_v37  ;;  %2512 = vmatpush.bf16.msra.mxu0 %v6052_v44  ;;  %v6405_v44 = vld [vmem:[#allocation2 + $0x3e0] sm:$0xf0] }
  0x39   :  { %v9005_v41 = vld [vmem:[#allocation2 + $0x51c] sm:$0xf0] }
  0x3a   :  { %v6819_v42 = vld [vmem:[#allocation2 + $0x700] sm:$0xf]  ;;  %v6564_v46 = vor.u32 %v9005_v41, %v6563_v40  ;;  %2525 = vmatpush.bf16.msra.mxu1 %v6308_v45  ;;  %v124_v45 = vld [vmem:[%s10177_s0 + $0x18] sm:$0xff] }
  0x3b   :  { %v9069_v43 = vld [vmem:[#allocation2 + $0x71c] sm:$0xf0] }
  0x3c   :  { %v6019_v47 = vld [vmem:[#allocation2 + $0xc0] sm:$0xf]  ;;  %v6820_v50 = vor.u32 %v9069_v43, %v6819_v42  ;;  %2538 = vmatpush.bf16.msra.mxu2 %v6564_v46  ;;  %v8961_v43 = vld [vmem:[#allocation2 + $0x3c4] sm:$0xf] }
  0x3d   :  { %v8869_v48 = vld [vmem:[#allocation2 + $0xdc] sm:$0xf0] }
  0x3e   :  { %v6275_v49 = vld [vmem:[#allocation2 + $0x2c0] sm:$0xf]  ;;  %v6020_v56 = vor.u32 %v8869_v48, %v6019_v47  ;;  %2551 = vmatpush.bf16.msra.mxu3 %v6820_v50  ;;  %v6152_v47 = vor.u32 %v8897_v33, %v6149_v34 }
  0x3f   :  { %v8933_v51 = vld [vmem:[#allocation2 + $0x2dc] sm:$0xf0] }
  0x40   :  { %v6531_v52 = vld [vmem:[#allocation2 + $0x4c0] sm:$0xf]  ;;  %v6276_v57 = vor.u32 %v8933_v51, %v6275_v49  ;;  %2513 = vmatpush.bf16.msra.mxu0 %v6020_v56  ;;  %v9830_v51 = vpack.c.bf16 %v123_v35, %v123_v35  ;;  %v8929_v35 = vld [vmem:[#allocation2 + $0x2c4] sm:$0xf] }
  0x41   :  { %v8997_v53 = vld [vmem:[#allocation2 + $0x4dc] sm:$0xf0] }
  0x42   :  { %v6787_v54 = vld [vmem:[#allocation2 + $0x6c0] sm:$0xf]  ;;  %v6532_v58 = vor.u32 %v8997_v53, %v6531_v52  ;;  %2526 = vmatpush.bf16.msra.mxu1 %v6276_v57  ;;  %v8889_v53 = vld [vmem:[#allocation2 + $0x184] sm:$0xf]  ;;  %v9834_v57 = vpack.c.bf16 %v124_v45, %v124_v45 }
  0x43   :  { %v9061_v55 = vld [vmem:[#allocation2 + $0x6dc] sm:$0xf0] }
  0x44   :  { %v5987_v59 = vld [vmem:[#allocation2 + $0x80] sm:$0xf]  ;;  %v6788_v62 = vor.u32 %v9061_v55, %v6787_v54  ;;  %2539 = vmatpush.bf16.msra.mxu2 %v6532_v58  ;;  %v6117_v54 = vld [vmem:[#allocation2 + $0x1a0] sm:$0xf0]  ;;  %v122_v58 = vld [vmem:[%s10177_s0 + $0x8] sm:$0xff] }
  0x45   :  { %v8861_v60 = vld [vmem:[#allocation2 + $0x9c] sm:$0xf0] }
  0x46   :  { %v6243_v61 = vld [vmem:[#allocation2 + $0x280] sm:$0xf]  ;;  %v5988_v4 = vor.u32 %v8861_v60, %v5987_v59  ;;  %2552 = vmatpush.bf16.msra.mxu3 %v6788_v62  ;;  %v6408_v59 = vor.u32 %v8961_v43, %v6405_v44  ;;  %v6373_v62 = vld [vmem:[#allocation2 + $0x3a0] sm:$0xf0] }
  0x47   :  { %v8925_v63 = vld [vmem:[#allocation2 + $0x29c] sm:$0xf0]  ;;  %v8857_v43 = vld [vmem:[#allocation2 + $0x84] sm:$0xf] }
  0x48   :  { %v6499_v0 = vld [vmem:[#allocation2 + $0x480] sm:$0xf]  ;;  %v6244_v5 = vor.u32 %v8925_v63, %v6243_v61  ;;  %2514 = vmatpush.bf16.msra.mxu0 %v5988_v4  ;;  %v8953_v61 = vld [vmem:[#allocation2 + $0x384] sm:$0xf]  ;;  %v9841_v4 = vpack.c.bf16 %v122_v58, %v122_v58 }
  0x49   :  { %v8989_v1 = vld [vmem:[#allocation2 + $0x49c] sm:$0xf0]  ;;  %v5989_v44 = vld [vmem:[#allocation2 + $0xa0] sm:$0xf0] }
  0x4a   :  { %v6755_v2 = vld [vmem:[#allocation2 + $0x680] sm:$0xf]  ;;  %v6500_v6 = vor.u32 %v8989_v1, %v6499_v0  ;;  %2527 = vmatpush.bf16.msra.mxu1 %v6244_v5  ;;  %v6120_v0 = vor.u32 %v8889_v53, %v6117_v54 }
  0x4b   :  { %v9053_v3 = vld [vmem:[#allocation2 + $0x69c] sm:$0xf0] }
  0x4c   :  { %v5955_v7 = vld [vmem:[#allocation2 + $0x40] sm:$0xf]  ;;  %v6756_v10 = vor.u32 %v9053_v3, %v6755_v2  ;;  %2540 = vmatpush.bf16.msra.mxu2 %v6500_v6  ;;  %v8881_v6 = vld [vmem:[#allocation2 + $0x144] sm:$0xf] }
  0x4d   :  { %v8853_v8 = vld [vmem:[#allocation2 + $0x5c] sm:$0xf0] }
  0x4e   :  { %v6211_v9 = vld [vmem:[#allocation2 + $0x240] sm:$0xf]  ;;  %v5956_v16 = vor.u32 %v8853_v8, %v5955_v7  ;;  %2553 = vmatpush.bf16.msra.mxu3 %v6756_v10  ;;  %v6085_v7 = vld [vmem:[#allocation2 + $0x160] sm:$0xf0]  ;;  %v6376_v8 = vor.u32 %v8953_v61, %v6373_v62 }
  0x4f   :  { %v8917_v11 = vld [vmem:[#allocation2 + $0x25c] sm:$0xf0]  ;;  %v8945_v10 = vld [vmem:[#allocation2 + $0x344] sm:$0xf] }
  0x50   :  { %v6467_v12 = vld [vmem:[#allocation2 + $0x440] sm:$0xf]  ;;  %v6212_v20 = vor.u32 %v8917_v11, %v6211_v9  ;;  %2515 = vmatpush.bf16.msra.mxu0 %v5956_v16  ;;  %v6341_v11 = vld [vmem:[#allocation2 + $0x360] sm:$0xf0] }
  0x51   :  { %v8981_v13 = vld [vmem:[#allocation2 + $0x45c] sm:$0xf0] }
  0x52   :  { %v6723_v14 = vld [vmem:[#allocation2 + $0x640] sm:$0xf]  ;;  %v6468_v21 = vor.u32 %v8981_v13, %v6467_v12  ;;  %2528 = vmatpush.bf16.msra.mxu1 %v6212_v20  ;;  %v6088_v13 = vor.u32 %v8881_v6, %v6085_v7  ;;  %v6344_v20 = vor.u32 %v8945_v10, %v6341_v11  ;;  %v9025_v10 = vld [vmem:[#allocation2 + $0x5c4] sm:$0xf] }
  0x53   :  { %v9045_v15 = vld [vmem:[#allocation2 + $0x65c] sm:$0xf0]  ;;  %v6661_v11 = vld [vmem:[#allocation2 + $0x5e0] sm:$0xf0] }
  0x54   :  { %v5923_v17 = vld [vmem:[#allocation2] sm:$0xf]  ;;  %v6724_v25 = vor.u32 %v9045_v15, %v6723_v14  ;;  %2541 = vmatpush.bf16.msra.mxu2 %v6468_v21 }
  0x55   :  { %v8845_v18 = vld [vmem:[#allocation2 + $0x1c] sm:$0xf0] }
  0x56   :  { %v6179_v19 = vld [vmem:[#allocation2 + $0x200] sm:$0xf]  ;;  %v5924_v32 = vor.u32 %v8845_v18, %v5923_v17  ;;  %2554 = vmatpush.bf16.msra.mxu3 %v6724_v25  ;;  %v8873_v18 = vld [vmem:[#allocation2 + $0x104] sm:$0xf] }
  0x57   :  { %v8909_v22 = vld [vmem:[#allocation2 + $0x21c] sm:$0xf0] }
  0x58   :  { %v6435_v23 = vld [vmem:[#allocation2 + $0x400] sm:$0xf]  ;;  %v6180_v36 = vor.u32 %v8909_v22, %v6179_v19  ;;  %2516 = vmatpush.bf16.msra.mxu0 %v5924_v32  ;;  %v6053_v19 = vld [vmem:[#allocation2 + $0x120] sm:$0xf0]  ;;  %v127_v32 = vld [vmem:[%s10177_s0 + $0x30] sm:$0xff] }
  0x59   :  { %v8973_v24 = vld [vmem:[#allocation2 + $0x41c] sm:$0xf0]  ;;  %v8937_v22 = vld [vmem:[#allocation2 + $0x304] sm:$0xf]  ;;  %v6056_v25 = vor.u32 %v8873_v18, %v6053_v19  ;;  %v9848_v45 = vpack.c.bf16 %v127_v32, %v127_v32 }
  0x5a   :  { %v6691_v26 = vld [vmem:[#allocation2 + $0x600] sm:$0xf]  ;;  %v6436_v37 = vor.u32 %v8973_v24, %v6435_v23  ;;  %2529 = vmatpush.bf16.msra.mxu1 %v6180_v36  ;;  %v6309_v23 = vld [vmem:[#allocation2 + $0x320] sm:$0xf0] }
  0x5b   :  { %v9037_v27 = vld [vmem:[#allocation2 + $0x61c] sm:$0xf0]  ;;  %v6312_v33 = vor.u32 %v8937_v22, %v6309_v23  ;;  %v6277_v36 = vld [vmem:[#allocation2 + $0x2e0] sm:$0xf0]  ;;  %v126_v23 = vld [vmem:[%s10177_s0 + $0x28] sm:$0xff] }
  0x5c   :  { %v7171_v28 = vld [vmem:[#allocation2 + $0x9c0] sm:$0xf]  ;;  %v6692_v41 = vor.u32 %v9037_v27, %v6691_v26  ;;  %2542 = vmatpush.bf16.msra.mxu2 %v6436_v37  ;;  %v6181_v22 = vld [vmem:[#allocation2 + $0x220] sm:$0xf0] }
  0x5d   :  { %v9157_v29 = vld [vmem:[#allocation2 + $0x9dc] sm:$0xf0]  ;;  %2530 = vmatmul.bf16.vlgmr.msra.gmra.mxu1 %v9841_v4  ;;  %v9081_v32 = vld [vmem:[#allocation2 + $0x784] sm:$0xf] }
  0x5e   :  { %v7427_v30 = vld [vmem:[#allocation2 + $0xbc0] sm:$0xf]  ;;  %v7172_v42 = vor.u32 %v9157_v29, %v7171_v28  ;;  %2555 = vmatpush.bf16.msra.mxu3 %v6692_v41 }
  0x5f   :  { %v9221_v31 = vld [vmem:[#allocation2 + $0xbdc] sm:$0xf0]  ;;  %2543 = vmatmul.bf16.vlgmr.msra.gmra.mxu2 %v9830_v51 }
  0x60   :  { %v7459_v38 = vld [vmem:[#allocation2 + $0xc00] sm:$0xf]  ;;  %v7428_v46 = vor.u32 %v9221_v31, %v7427_v30  ;;  %2561 = vmatpush.bf16.msrb.mxu0 %v7172_v42  ;;  %v8865_v30 = vld [vmem:[#allocation2 + $0xc4] sm:$0xf] }
  0x61   :  { %v9229_v39 = vld [vmem:[#allocation2 + $0xc1c] sm:$0xf0]  ;;  %2556 = vmatmul.bf16.vlgmr.msra.gmra.mxu3 %v9834_v57  ;;  %v6021_v31 = vld [vmem:[#allocation2 + $0xe0] sm:$0xf0] }
  0x62   :  { %v121_v40 = vld [vmem:[%s10177_s0] sm:$0xff]  ;;  %v7460_v56 = vor.u32 %v9229_v39, %v7459_v38  ;;  %2574 = vmatpush.bf16.msrb.mxu1 %v7428_v46  ;;  %2600 = vmatpush.bf16.msrb.mxu3 %v6152_v47  ;;  %v6024_v38 = vor.u32 %v8865_v30, %v6021_v31  ;;  %v6280_v46 = vor.u32 %v8929_v35, %v6277_v36 }
  0x63   :  { %v7139_v48 = vld [vmem:[#allocation2 + $0x980] sm:$0xf]  ;;  %v9832_v55 = vpack.c.bf16 %v121_v40, %v121_v40  ;;  %v6629_v31 = vld [vmem:[#allocation2 + $0x5a0] sm:$0xf0]  ;;  %v9860_v35 = vpack.c.bf16 %v126_v23, %v126_v23 }
  0x64   :  { %v9149_v49 = vld [vmem:[#allocation2 + $0x99c] sm:$0xf0]  ;;  %2594 = vmatpush.bf16.msrb.mxu2 %v7460_v56  ;;  %v9145_v36 = vld [vmem:[#allocation2 + $0x984] sm:$0xf] }
  0x65   :  { %v7395_v50 = vld [vmem:[#allocation2 + $0xb80] sm:$0xf]  ;;  %v7140_v60 = vor.u32 %v9149_v49, %v7139_v48  ;;  %2517 = vmatmul.bf16.vlgmr.msra.gmra.mxu0 %v9832_v55  ;;  %v8921_v48 = vld [vmem:[#allocation2 + $0x284] sm:$0xf] }
  0x66   :  { %v9213_v52 = vld [vmem:[#allocation2 + $0xb9c] sm:$0xf0]  ;;  %2601 = vmatpush.bf16.msrb.mxu3 %v6120_v0  ;;  %v6245_v49 = vld [vmem:[#allocation2 + $0x2a0] sm:$0xf0] }
  0x67   :  { %v7396_v63 = vor.u32 %v9213_v52, %v7395_v50  ;;  %v7107_v1 = vld [vmem:[#allocation2 + $0x940] sm:$0xf]  ;;  %2562 = vmatpush.bf16.msrb.mxu0 %v7140_v60  ;;  %v5992_v52 = vor.u32 %v8857_v43, %v5989_v44  ;;  %v5957_v60 = vld [vmem:[#allocation2 + $0x60] sm:$0xf0]  ;;  %v6248_v61 = vor.u32 %v8921_v48, %v6245_v49 }
  0x68   :  { %v9141_v2 = vld [vmem:[#allocation2 + $0x95c] sm:$0xf0]  ;;  %2613 = vmatpush.bf16.msra.mxu2 %v6408_v59  ;;  %v8849_v59 = vld [vmem:[#allocation2 + $0x44] sm:$0xf] }
  0x69   :  { %v7363_v3 = vld [vmem:[#allocation2 + $0xb40] sm:$0xf]  ;;  %v7108_v9 = vor.u32 %v9141_v2, %v7107_v1  ;;  %2575 = vmatpush.bf16.msrb.mxu1 %v7396_v63  ;;  %v8913_v63 = vld [vmem:[#allocation2 + $0x244] sm:$0xf] }
  0x6a   :  { %v9205_v5 = vld [vmem:[#allocation2 + $0xb5c] sm:$0xf0]  ;;  %2602 = vmatpush.bf16.msrb.mxu3 %v6088_v13  ;;  %v6213_v0 = vld [vmem:[#allocation2 + $0x260] sm:$0xf0] }
  0x6b   :  { %v7364_v12 = vor.u32 %v9205_v5, %v7363_v3  ;;  %v7075_v14 = vld [vmem:[#allocation2 + $0x900] sm:$0xf]  ;;  %2563 = vmatpush.bf16.msrb.mxu0 %v7108_v9  ;;  %v5960_v3 = vor.u32 %v8849_v59, %v5957_v60  ;;  %v5925_v9 = vld [vmem:[#allocation2 + $0x20] sm:$0xf0] }
  0x6c   :  { %v9133_v15 = vld [vmem:[#allocation2 + $0x91c] sm:$0xf0]  ;;  %2614 = vmatpush.bf16.msra.mxu2 %v6376_v8  ;;  %v8841_v8 = vld [vmem:[#allocation2 + $0x4] sm:$0xf] }
  0x6d   :  { %v7331_v16 = vld [vmem:[#allocation2 + $0xb00] sm:$0xf]  ;;  %v7076_v21 = vor.u32 %v9133_v15, %v7075_v14  ;;  %2576 = vmatpush.bf16.msrb.mxu1 %v7364_v12  ;;  %v9089_v12 = vld [vmem:[#allocation2 + $0x7c4] sm:$0xf]  ;;  %v6216_v14 = vor.u32 %v8913_v63, %v6213_v0 }
  0x6e   :  { %v9197_v17 = vld [vmem:[#allocation2 + $0xb1c] sm:$0xf0]  ;;  %2603 = vmatpush.bf16.msrb.mxu3 %v6056_v25  ;;  %v6917_v13 = vld [vmem:[#allocation2 + $0x7e0] sm:$0xf0] }
  0x6f   :  { %v7332_v24 = vor.u32 %v9197_v17, %v7331_v16  ;;  %v7043_v26 = vld [vmem:[#allocation2 + $0x8c0] sm:$0xf]  ;;  %2564 = vmatpush.bf16.msrb.mxu0 %v7076_v21  ;;  %7489 = vmatmul.msk.bf16.vlgmr.msrb.gmra.mxu2 %vm2505_vm0, %v9848_v45  ;;  %v9153_v16 = vld [vmem:[#allocation2 + $0x9c4] sm:$0xf]  ;;  %v6920_v25 = vor.u32 %v9089_v12, %v6917_v13 }
  0x70   :  { %v9125_v27 = vld [vmem:[#allocation2 + $0x8dc] sm:$0xf0]  ;;  %2615 = vmatpush.bf16.msra.mxu2 %v6344_v20  ;;  %v7173_v17 = vld [vmem:[#allocation2 + $0x9e0] sm:$0xf0]  ;;  %v5928_v20 = vor.u32 %v8841_v8, %v5925_v9 }
  0x71   :  { %v7299_v28 = vld [vmem:[#allocation2 + $0xac0] sm:$0xf]  ;;  %v7044_v34 = vor.u32 %v9125_v27, %v7043_v26  ;;  %2577 = vmatpush.bf16.msrb.mxu1 %v7332_v24  ;;  %v8905_v21 = vld [vmem:[#allocation2 + $0x204] sm:$0xf]  ;;  %v6664_v24 = vor.u32 %v9025_v10, %v6661_v11 }
  0x72   :  { %v9189_v29 = vld [vmem:[#allocation2 + $0xadc] sm:$0xf0]  ;;  %2604 = vmatpush.bf16.msrb.mxu3 %v6024_v38  ;;  %v9217_v26 = vld [vmem:[#allocation2 + $0xbc4] sm:$0xf] }
  0x73   :  { %v7300_v37 = vor.u32 %v9189_v29, %v7299_v28  ;;  %v7011_v39 = vld [vmem:[#allocation2 + $0x880] sm:$0xf]  ;;  %2565 = vmatpush.bf16.msrb.mxu0 %v7044_v34  ;;  %v7429_v27 = vld [vmem:[#allocation2 + $0xbe0] sm:$0xf0]  ;;  %v7176_v29 = vor.u32 %v9153_v16, %v7173_v17  ;;  %v6184_v34 = vor.u32 %v8905_v21, %v6181_v22 }
  0x74   :  { %v9117_v40 = vld [vmem:[#allocation2 + $0x89c] sm:$0xf0]  ;;  %2616 = vmatpush.bf16.msra.mxu2 %v6312_v33  ;;  %v9017_v28 = vld [vmem:[#allocation2 + $0x584] sm:$0xf]  ;;  %v7432_v38 = vor.u32 %v9217_v26, %v7429_v27 }
  0x75   :  { %v7267_v41 = vld [vmem:[#allocation2 + $0xa80] sm:$0xf]  ;;  %v7012_v47 = vor.u32 %v9117_v40, %v7011_v39  ;;  %2578 = vmatpush.bf16.msrb.mxu1 %v7300_v37  ;;  %v6885_v33 = vld [vmem:[#allocation2 + $0x7a0] sm:$0xf0]  ;;  %v6632_v39 = vor.u32 %v9017_v28, %v6629_v31 }
  0x76   :  { %v9181_v42 = vld [vmem:[#allocation2 + $0xa9c] sm:$0xf0]  ;;  %2605 = vmatpush.bf16.msrb.mxu3 %v5992_v52  ;;  %v7141_v37 = vld [vmem:[#allocation2 + $0x9a0] sm:$0xf0]  ;;  %v6888_v40 = vor.u32 %v9081_v32, %v6885_v33 }
  0x77   :  { %v7268_v50 = vor.u32 %v9181_v42, %v7267_v41  ;;  %v6979_v53 = vld [vmem:[#allocation2 + $0x840] sm:$0xf]  ;;  %2566 = vmatpush.bf16.msrb.mxu0 %v7012_v47  ;;  %v9209_v41 = vld [vmem:[#allocation2 + $0xb84] sm:$0xf]  ;;  %v7144_v44 = vor.u32 %v9145_v36, %v7141_v37 }
  0x78   :  { %v9109_v54 = vld [vmem:[#allocation2 + $0x85c] sm:$0xf0]  ;;  %2617 = vmatpush.bf16.msra.mxu2 %v6280_v46  ;;  %v7397_v42 = vld [vmem:[#allocation2 + $0xba0] sm:$0xf0] }
  0x79   :  { %v7235_v56 = vld [vmem:[#allocation2 + $0xa40] sm:$0xf]  ;;  %v6980_v62 = vor.u32 %v9109_v54, %v6979_v53  ;;  %2579 = vmatpush.bf16.msrb.mxu1 %v7268_v50  ;;  %v9009_v43 = vld [vmem:[#allocation2 + $0x544] sm:$0xf]  ;;  %v7400_v52 = vor.u32 %v9209_v41, %v7397_v42 }
  0x7a   :  { %v9173_v58 = vld [vmem:[#allocation2 + $0xa5c] sm:$0xf0]  ;;  %2606 = vmatpush.bf16.msrb.mxu3 %v5960_v3  ;;  %v6597_v46 = vld [vmem:[#allocation2 + $0x560] sm:$0xf0] }
  0x7b   :  { %v6947_v1 = vld [vmem:[#allocation2 + $0x800] sm:$0xf]  ;;  %v7236_v2 = vor.u32 %v9173_v58, %v7235_v56  ;;  %2567 = vmatpush.bf16.msrb.mxu0 %v6980_v62  ;;  %v9073_v47 = vld [vmem:[#allocation2 + $0x744] sm:$0xf]  ;;  %v6600_v53 = vor.u32 %v9009_v43, %v6597_v46 }
  0x7c   :  { %v9101_v5 = vld [vmem:[#allocation2 + $0x81c] sm:$0xf0]  ;;  %2618 = vmatpush.bf16.msra.mxu2 %v6248_v61  ;;  %v6853_v48 = vld [vmem:[#allocation2 + $0x760] sm:$0xf0] }
  0x7d   :  { %v7203_v6 = vld [vmem:[#allocation2 + $0xa00] sm:$0xf]  ;;  %v6948_v15 = vor.u32 %v9101_v5, %v6947_v1  ;;  %2580 = vmatpush.bf16.msrb.mxu1 %v7236_v2  ;;  %v9137_v49 = vld [vmem:[#allocation2 + $0x944] sm:$0xf]  ;;  %v6856_v54 = vor.u32 %v9073_v47, %v6853_v48 }
  0x7e   :  { %v9165_v7 = vld [vmem:[#allocation2 + $0xa1c] sm:$0xf0]  ;;  %2607 = vmatpush.bf16.msrb.mxu3 %v5928_v20  ;;  %v7109_v50 = vld [vmem:[#allocation2 + $0x960] sm:$0xf0] }
  0x7f   :  { %v125_v18 = vld [vmem:[%s10177_s0 + $0x20] sm:$0xff]  ;;  %v7204_v19 = vor.u32 %v9165_v7, %v7203_v6  ;;  %2568 = vmatpush.bf16.msrb.mxu0 %v6948_v15  ;;  %v7112_v60 = vor.u32 %v9137_v49, %v7109_v50 }
  0x80   :  { %v9858_v30 = vpack.c.bf16 %v125_v18, %v125_v18  ;;  %2619 = vmatpush.bf16.msra.mxu2 %v6216_v14  ;;  %v9201_v56 = vld [vmem:[#allocation2 + $0xb44] sm:$0xf] }
  0x81   :  { %2581 = vmatpush.bf16.msrb.mxu1 %v7204_v19  ;;  %2608 = vmatmul.bf16.vlgmr.msrb.gmra.mxu3 %v9832_v55  ;;  %v7365_v58 = vld [vmem:[#allocation2 + $0xb60] sm:$0xf0] }
  0x82   :  { %2652 = vmatpush.bf16.msra.mxu3 %v7176_v29  ;;  %2569 = vmatmul.bf16.vlgmr.msrb.gmra.mxu0 %v9858_v30  ;;  %v9001_v59 = vld [vmem:[#allocation2 + $0x504] sm:$0xf]  ;;  %v7368_v2 = vor.u32 %v9201_v56, %v7365_v58  ;;  %v6155_v56 = vld [vmem:[#allocation2 + $0x1c8] sm:$0xf] }
  0x83   :  { %2626 = vmatpush.bf16.msra.mxu0 %v6664_v24  ;;  %v6565_v61 = vld [vmem:[#allocation2 + $0x520] sm:$0xf0]  ;;  %v8902_v58 = vld [vmem:[#allocation2 + $0x1e4] sm:$0xf0] }
  0x84   :  { %2620 = vmatpush.bf16.msra.mxu2 %v6184_v34  ;;  %2582 = vmatmul.bf16.vlgmr.msrb.gmra.mxu1 %v9860_v35  ;;  %v9065_v62 = vld [vmem:[#allocation2 + $0x704] sm:$0xf]  ;;  %v6568_v3 = vor.u32 %v9001_v59, %v6565_v61  ;;  %v6411_v59 = vld [vmem:[#allocation2 + $0x3c8] sm:$0xf] }
  0x85   :  { %2639 = vmatpush.bf16.msra.mxu1 %v6920_v25  ;;  %v6821_v63 = vld [vmem:[#allocation2 + $0x720] sm:$0xf0]  ;;  %v8966_v61 = vld [vmem:[#allocation2 + $0x3e4] sm:$0xf0] }
  0x86   :  { %2653 = vmatpush.bf16.msra.mxu3 %v7144_v44  ;;  %v9129_v0 = vld [vmem:[#allocation2 + $0x904] sm:$0xf]  ;;  %v6824_v5 = vor.u32 %v9065_v62, %v6821_v63 }
  0x87   :  { %2627 = vmatpush.bf16.msra.mxu0 %v6632_v39  ;;  %2621 = vmatmul.bf16.vlgmr.msra.gmra.mxu2 %v9841_v4  ;;  %v7077_v1 = vld [vmem:[#allocation2 + $0x920] sm:$0xf0] }
  0x88   :  { %2665 = vmatpush.bf16.msrb.mxu2 %v7432_v38  ;;  %v9193_v6 = vld [vmem:[#allocation2 + $0xb04] sm:$0xf]  ;;  %v7080_v9 = vor.u32 %v9129_v0, %v7077_v1 }
  0x89   :  { %2640 = vmatpush.bf16.msra.mxu1 %v6888_v40  ;;  %v7333_v7 = vld [vmem:[#allocation2 + $0xb20] sm:$0xf0] }
  0x8a   :  { %v8993_v8 = vld [vmem:[#allocation2 + $0x4c4] sm:$0xf]  ;;  %2654 = vmatpush.bf16.msra.mxu3 %v7112_v60  ;;  %v7336_v15 = vor.u32 %v9193_v6, %v7333_v7  ;;  %v6156_v7 = vor.u32 %v8902_v58, %v6155_v56  ;;  %v8870_v56 = vld [vmem:[#allocation2 + $0xe4] sm:$0xf0] }
  0x8b   :  { %2628 = vmatpush.bf16.msra.mxu0 %v6600_v53  ;;  %v6533_v10 = vld [vmem:[#allocation2 + $0x4e0] sm:$0xf0]  ;;  %v6283_v58 = vld [vmem:[#allocation2 + $0x2c8] sm:$0xf] }
  0x8c   :  { %2666 = vmatpush.bf16.msrb.mxu2 %v7400_v52  ;;  %v9057_v11 = vld [vmem:[#allocation2 + $0x6c4] sm:$0xf]  ;;  %v6536_v16 = vor.u32 %v8993_v8, %v6533_v10  ;;  %v9030_v8 = vld [vmem:[#allocation2 + $0x5e4] sm:$0xf0] }
  0x8d   :  { %2641 = vmatpush.bf16.msra.mxu1 %v6856_v54  ;;  %v6789_v12 = vld [vmem:[#allocation2 + $0x6e0] sm:$0xf0]  ;;  %v9094_v10 = vld [vmem:[#allocation2 + $0x7e4] sm:$0xf0] }
  0x8e   :  { %v9121_v13 = vld [vmem:[#allocation2 + $0x8c4] sm:$0xf]  ;;  %v6792_v17 = vor.u32 %v9057_v11, %v6789_v12  ;;  %2655 = vmatpush.bf16.msra.mxu3 %v7080_v9  ;;  %v6923_v9 = vld [vmem:[#allocation2 + $0x7c8] sm:$0xf]  ;;  %v6412_v11 = vor.u32 %v8966_v61, %v6411_v59 }
  0x8f   :  { %v7045_v14 = vld [vmem:[#allocation2 + $0x8e0] sm:$0xf0]  ;;  %2629 = vmatpush.bf16.msra.mxu0 %v6568_v3  ;;  %v8934_v59 = vld [vmem:[#allocation2 + $0x2e4] sm:$0xf0] }
  0x90   :  { %2667 = vmatpush.bf16.msrb.mxu2 %v7368_v2  ;;  %v9185_v18 = vld [vmem:[#allocation2 + $0xac4] sm:$0xf]  ;;  %v7048_v21 = vor.u32 %v9121_v13, %v7045_v14  ;;  %v6123_v13 = vld [vmem:[#allocation2 + $0x188] sm:$0xf] }
  0x91   :  { %2642 = vmatpush.bf16.msra.mxu1 %v6824_v5  ;;  %v7301_v19 = vld [vmem:[#allocation2 + $0xae0] sm:$0xf0]  ;;  %v6667_v5 = vld [vmem:[#allocation2 + $0x5c8] sm:$0xf] }
  0x92   :  { %v8985_v20 = vld [vmem:[#allocation2 + $0x484] sm:$0xf]  ;;  %v7304_v27 = vor.u32 %v9185_v18, %v7301_v19  ;;  %2656 = vmatpush.bf16.msra.mxu3 %v7048_v21  ;;  %v8894_v14 = vld [vmem:[#allocation2 + $0x1a4] sm:$0xf0]  ;;  %v6668_v18 = vor.u32 %v9030_v8, %v6667_v5  ;;  %v6924_v19 = vor.u32 %v9094_v10, %v6923_v9 }
  0x93   :  { %v6501_v22 = vld [vmem:[#allocation2 + $0x4a0] sm:$0xf0]  ;;  %2630 = vmatpush.bf16.msra.mxu0 %v6536_v16  ;;  %v6379_v16 = vld [vmem:[#allocation2 + $0x388] sm:$0xf]  ;;  %v6124_v21 = vor.u32 %v8894_v14, %v6123_v13 }
  0x94   :  { %v9049_v23 = vld [vmem:[#allocation2 + $0x684] sm:$0xf]  ;;  %2668 = vmatpush.bf16.msrb.mxu2 %v7336_v15  ;;  %v6504_v28 = vor.u32 %v8985_v20, %v6501_v22  ;;  %v6635_v20 = vld [vmem:[#allocation2 + $0x588] sm:$0xf] }
  0x95   :  { %v6757_v24 = vld [vmem:[#allocation2 + $0x6a0] sm:$0xf0]  ;;  %2643 = vmatpush.bf16.msra.mxu1 %v6792_v17  ;;  %v8958_v17 = vld [vmem:[#allocation2 + $0x3a4] sm:$0xf0] }
  0x96   :  { %v9113_v25 = vld [vmem:[#allocation2 + $0x884] sm:$0xf]  ;;  %v6760_v29 = vor.u32 %v9049_v23, %v6757_v24  ;;  %v9022_v22 = vld [vmem:[#allocation2 + $0x5a4] sm:$0xf0] }
  0x97   :  { %v7013_v26 = vld [vmem:[#allocation2 + $0x8a0] sm:$0xf0]  ;;  %2631 = vmatpush.bf16.msra.mxu0 %v6504_v28  ;;  %v6891_v23 = vld [vmem:[#allocation2 + $0x788] sm:$0xf] }
  0x98   :  { %v9177_v31 = vld [vmem:[#allocation2 + $0xa84] sm:$0xf]  ;;  %v7016_v34 = vor.u32 %v9113_v25, %v7013_v26  ;;  %2669 = vmatpush.bf16.msrb.mxu2 %v7304_v27  ;;  %v9086_v24 = vld [vmem:[#allocation2 + $0x7a4] sm:$0xf0]  ;;  %v6380_v25 = vor.u32 %v8958_v17, %v6379_v16 }
  0x99   :  { %v7269_v32 = vld [vmem:[#allocation2 + $0xaa0] sm:$0xf0]  ;;  %2644 = vmatpush.bf16.msra.mxu1 %v6760_v29  ;;  %v6091_v26 = vld [vmem:[#allocation2 + $0x148] sm:$0xf] }
  0x9a   :  { %v8977_v33 = vld [vmem:[#allocation2 + $0x444] sm:$0xf]  ;;  %v7272_v41 = vor.u32 %v9177_v31, %v7269_v32  ;;  %2657 = vmatpush.bf16.msra.mxu3 %v7016_v34  ;;  %v8886_v27 = vld [vmem:[#allocation2 + $0x164] sm:$0xf0]  ;;  %v6636_v31 = vor.u32 %v9022_v22, %v6635_v20  ;;  %v6892_v32 = vor.u32 %v9086_v24, %v6891_v23 }
  0x9b   :  { %v6469_v36 = vld [vmem:[#allocation2 + $0x460] sm:$0xf0]  ;;  %v6347_v28 = vld [vmem:[#allocation2 + $0x348] sm:$0xf]  ;;  %v6092_v34 = vor.u32 %v8886_v27, %v6091_v26 }
  0x9c   :  { %v9041_v37 = vld [vmem:[#allocation2 + $0x644] sm:$0xf]  ;;  %v6472_v44 = vor.u32 %v8977_v33, %v6469_v36  ;;  %2670 = vmatpush.bf16.msrb.mxu2 %v7272_v41  ;;  %v8950_v29 = vld [vmem:[#allocation2 + $0x364] sm:$0xf0] }
  0x9d   :  { %v6725_v38 = vld [vmem:[#allocation2 + $0x660] sm:$0xf0]  ;;  %v6603_v33 = vld [vmem:[#allocation2 + $0x548] sm:$0xf] }
  0x9e   :  { %v9105_v39 = vld [vmem:[#allocation2 + $0x844] sm:$0xf]  ;;  %v6728_v46 = vor.u32 %v9041_v37, %v6725_v38  ;;  %2632 = vmatpush.bf16.msra.mxu0 %v6472_v44  ;;  %v9014_v36 = vld [vmem:[#allocation2 + $0x564] sm:$0xf0] }
  0x9f   :  { %v6981_v40 = vld [vmem:[#allocation2 + $0x860] sm:$0xf0]  ;;  %v6859_v37 = vld [vmem:[#allocation2 + $0x748] sm:$0xf]  ;;  %v6604_v44 = vor.u32 %v9014_v36, %v6603_v33 }
  0xa0   :  { %v9169_v42 = vld [vmem:[#allocation2 + $0xa44] sm:$0xf]  ;;  %v6984_v50 = vor.u32 %v9105_v39, %v6981_v40  ;;  %2645 = vmatpush.bf16.msra.mxu1 %v6728_v46  ;;  %v9078_v38 = vld [vmem:[#allocation2 + $0x764] sm:$0xf0]  ;;  %v6348_v39 = vor.u32 %v8950_v29, %v6347_v28 }
  0xa1   :  { %v7237_v43 = vld [vmem:[#allocation2 + $0xa60] sm:$0xf0]  ;;  %v6059_v40 = vld [vmem:[#allocation2 + $0x108] sm:$0xf]  ;;  %v6860_v46 = vor.u32 %v9078_v38, %v6859_v37 }
  0xa2   :  { %v8969_v47 = vld [vmem:[#allocation2 + $0x404] sm:$0xf]  ;;  %v7240_v60 = vor.u32 %v9169_v42, %v7237_v43  ;;  %2658 = vmatpush.bf16.msra.mxu3 %v6984_v50  ;;  %v8878_v41 = vld [vmem:[#allocation2 + $0x124] sm:$0xf0] }
  0xa3   :  { %v6437_v48 = vld [vmem:[#allocation2 + $0x420] sm:$0xf0]  ;;  %v6315_v42 = vld [vmem:[#allocation2 + $0x308] sm:$0xf] }
  0xa4   :  { %v9033_v49 = vld [vmem:[#allocation2 + $0x604] sm:$0xf]  ;;  %v6440_v0 = vor.u32 %v8969_v47, %v6437_v48  ;;  %2671 = vmatpush.bf16.msrb.mxu2 %v7240_v60  ;;  %v8942_v43 = vld [vmem:[#allocation2 + $0x324] sm:$0xf0]  ;;  %v6060_v48 = vor.u32 %v8878_v41, %v6059_v40 }
  0xa5   :  { %v6693_v52 = vld [vmem:[#allocation2 + $0x620] sm:$0xf0]  ;;  %v6571_v47 = vld [vmem:[#allocation2 + $0x508] sm:$0xf] }
  0xa6   :  { %v9097_v53 = vld [vmem:[#allocation2 + $0x804] sm:$0xf]  ;;  %v6696_v1 = vor.u32 %v9033_v49, %v6693_v52  ;;  %2633 = vmatpush.bf16.msra.mxu0 %v6440_v0  ;;  %v9006_v49 = vld [vmem:[#allocation2 + $0x524] sm:$0xf0] }
  0xa7   :  { %v6949_v54 = vld [vmem:[#allocation2 + $0x820] sm:$0xf0]  ;;  %v6827_v50 = vld [vmem:[#allocation2 + $0x708] sm:$0xf]  ;;  %v6572_v60 = vor.u32 %v9006_v49, %v6571_v47  ;;  %v8898_v47 = vld [vmem:[#allocation2 + $0x1cc] sm:$0xf] }
  0xa8   :  { %v9225_v62 = vld [vmem:[#allocation2 + $0xc04] sm:$0xf]  ;;  %v6952_v6 = vor.u32 %v9097_v53, %v6949_v54  ;;  %2646 = vmatpush.bf16.msra.mxu1 %v6696_v1  ;;  %v9070_v52 = vld [vmem:[#allocation2 + $0x724] sm:$0xf0]  ;;  %v6316_v53 = vor.u32 %v8942_v43, %v6315_v42 }
  0xa9   :  { %v7461_v63 = vld [vmem:[#allocation2 + $0xc20] sm:$0xf0]  ;;  %2634 = vmatmul.bf16.vlgmr.msra.gmra.mxu0 %v9830_v51  ;;  %v6027_v54 = vld [vmem:[#allocation2 + $0xc8] sm:$0xf]  ;;  %v6828_v61 = vor.u32 %v9070_v52, %v6827_v50  ;;  %v6157_v50 = vld [vmem:[#allocation2 + $0x1e8] sm:$0xf0] }
  0xaa   :  { %v9161_v2 = vld [vmem:[#allocation2 + $0xa04] sm:$0xf]  ;;  %v7464_v12 = vor.u32 %v9225_v62, %v7461_v63  ;;  %2659 = vmatpush.bf16.msra.mxu3 %v6952_v6  ;;  %v6539_v62 = vld [vmem:[#allocation2 + $0x4c8] sm:$0xf]  ;;  %v6028_v63 = vor.u32 %v8870_v56, %v6027_v54 }
  0xab   :  { %v7205_v3 = vld [vmem:[#allocation2 + $0xa20] sm:$0xf0]  ;;  %2647 = vmatmul.bf16.vlgmr.msra.gmra.mxu1 %v9834_v57  ;;  %v8998_v0 = vld [vmem:[#allocation2 + $0x4e4] sm:$0xf0] }
  0xac   :  { %v7208_v15 = vor.u32 %v9161_v2, %v7205_v3  ;;  %2691 = vmatpush.bf16.msrb.mxu1 %v6156_v7  ;;  %2685 = vmatpush.bf16.msrb.mxu0 %v7464_v12  ;;  %v6795_v1 = vld [vmem:[#allocation2 + $0x6c8] sm:$0xf]  ;;  %v6284_v3 = vor.u32 %v8934_v59, %v6283_v58  ;;  %v6540_v9 = vor.u32 %v8998_v0, %v6539_v62 }
  0xad   :  { %2660 = vmatmul.bf16.vlgmr.msra.gmra.mxu3 %v9858_v30  ;;  %v9062_v2 = vld [vmem:[#allocation2 + $0x6e4] sm:$0xf0] }
  0xae   :  { %2704 = vmatpush.bf16.msrb.mxu3 %v6412_v11  ;;  %2672 = vmatpush.bf16.msrb.mxu2 %v7208_v15  ;;  %v5995_v5 = vld [vmem:[#allocation2 + $0x88] sm:$0xf]  ;;  %v6796_v10 = vor.u32 %v9062_v2, %v6795_v1  ;;  %v8962_v1 = vld [vmem:[#allocation2 + $0x3cc] sm:$0xf] }
  0xaf   :  { %v8862_v6 = vld [vmem:[#allocation2 + $0xa4] sm:$0xf0]  ;;  %v6413_v2 = vld [vmem:[#allocation2 + $0x3e8] sm:$0xf0] }
  0xb0   :  { %2717 = vmatpush.bf16.msra.mxu0 %v6668_v18  ;;  %2692 = vmatpush.bf16.msrb.mxu1 %v6124_v21  ;;  %v6251_v7 = vld [vmem:[#allocation2 + $0x288] sm:$0xf]  ;;  %v5996_v12 = vor.u32 %v8862_v6, %v5995_v5  ;;  %v8890_v5 = vld [vmem:[#allocation2 + $0x18c] sm:$0xf] }
  0xb1   :  { %2673 = vmatmul.bf16.vlgmr.msrb.gmra.mxu2 %v9860_v35  ;;  %v8926_v8 = vld [vmem:[#allocation2 + $0x2a4] sm:$0xf0]  ;;  %v6125_v6 = vld [vmem:[#allocation2 + $0x1a8] sm:$0xf0] }
  0xb2   :  { %2730 = vmatpush.bf16.msra.mxu2 %v6924_v19  ;;  %2705 = vmatpush.bf16.msrb.mxu3 %v6380_v25  ;;  %v6507_v11 = vld [vmem:[#allocation2 + $0x488] sm:$0xf]  ;;  %v6252_v16 = vor.u32 %v8926_v8, %v6251_v7 }
  0xb3   :  { %v8990_v13 = vld [vmem:[#allocation2 + $0x4a4] sm:$0xf0] }
  0xb4   :  { %2718 = vmatpush.bf16.msra.mxu0 %v6636_v31  ;;  %2693 = vmatpush.bf16.msrb.mxu1 %v6092_v34  ;;  %v6763_v14 = vld [vmem:[#allocation2 + $0x688] sm:$0xf]  ;;  %v6508_v21 = vor.u32 %v8990_v13, %v6507_v11  ;;  %v6128_v13 = vor.u32 %v8890_v5, %v6125_v6  ;;  %v8922_v5 = vld [vmem:[#allocation2 + $0x28c] sm:$0xf] }
  0xb5   :  { %v9054_v15 = vld [vmem:[#allocation2 + $0x6a4] sm:$0xf0]  ;;  %v6253_v6 = vld [vmem:[#allocation2 + $0x2a8] sm:$0xf0] }
  0xb6   :  { %2731 = vmatpush.bf16.msra.mxu2 %v6892_v32  ;;  %2706 = vmatpush.bf16.msrb.mxu3 %v6348_v39  ;;  %v5963_v17 = vld [vmem:[#allocation2 + $0x48] sm:$0xf]  ;;  %v6764_v22 = vor.u32 %v9054_v15, %v6763_v14  ;;  %v8954_v14 = vld [vmem:[#allocation2 + $0x38c] sm:$0xf] }
  0xb7   :  { %v8854_v18 = vld [vmem:[#allocation2 + $0x64] sm:$0xf0]  ;;  %v6381_v15 = vld [vmem:[#allocation2 + $0x3a8] sm:$0xf0] }
  0xb8   :  { %2719 = vmatpush.bf16.msra.mxu0 %v6604_v44  ;;  %2694 = vmatpush.bf16.msrb.mxu1 %v6060_v48  ;;  %v6219_v19 = vld [vmem:[#allocation2 + $0x248] sm:$0xf]  ;;  %v5964_v25 = vor.u32 %v8854_v18, %v5963_v17  ;;  %v8882_v17 = vld [vmem:[#allocation2 + $0x14c] sm:$0xf] }
  0xb9   :  { %7490 = vmatmul.msk.bf16.vlgmr.msrb.gmra.mxu0 %vm2505_vm0, %v9848_v45  ;;  %v8918_v20 = vld [vmem:[#allocation2 + $0x264] sm:$0xf0]  ;;  %v6093_v18 = vld [vmem:[#allocation2 + $0x168] sm:$0xf0] }
  0xba   :  { %2732 = vmatpush.bf16.msra.mxu2 %v6860_v46  ;;  %2707 = vmatpush.bf16.msrb.mxu3 %v6316_v53  ;;  %v6475_v23 = vld [vmem:[#allocation2 + $0x448] sm:$0xf]  ;;  %v6220_v29 = vor.u32 %v8918_v20, %v6219_v19 }
  0xbb   :  { %v8982_v24 = vld [vmem:[#allocation2 + $0x464] sm:$0xf0] }
  0xbc   :  { %2720 = vmatpush.bf16.msra.mxu0 %v6572_v60  ;;  %2695 = vmatpush.bf16.msrb.mxu1 %v6028_v63  ;;  %v6731_v26 = vld [vmem:[#allocation2 + $0x648] sm:$0xf]  ;;  %v6476_v38 = vor.u32 %v8982_v24, %v6475_v23  ;;  %v6160_v63 = vor.u32 %v8898_v47, %v6157_v50 }
  0xbd   :  { %v9046_v27 = vld [vmem:[#allocation2 + $0x664] sm:$0xf0] }
  0xbe   :  { %2733 = vmatpush.bf16.msra.mxu2 %v6828_v61  ;;  %2708 = vmatpush.bf16.msrb.mxu3 %v6284_v3  ;;  %v5931_v28 = vld [vmem:[#allocation2 + $0x8] sm:$0xf]  ;;  %v6732_v39 = vor.u32 %v9046_v27, %v6731_v26  ;;  %v8946_v26 = vld [vmem:[#allocation2 + $0x34c] sm:$0xf] }
  0xbf   :  { %v8846_v31 = vld [vmem:[#allocation2 + $0x24] sm:$0xf0]  ;;  %v6349_v27 = vld [vmem:[#allocation2 + $0x368] sm:$0xf0] }
  0xc0   :  { %2721 = vmatpush.bf16.msra.mxu0 %v6540_v9  ;;  %2696 = vmatpush.bf16.msrb.mxu1 %v5996_v12  ;;  %v6187_v32 = vld [vmem:[#allocation2 + $0x208] sm:$0xf]  ;;  %v5932_v43 = vor.u32 %v8846_v31, %v5931_v28  ;;  %v6061_v31 = vld [vmem:[#allocation2 + $0x128] sm:$0xf0] }
  0xc1   :  { %v8910_v33 = vld [vmem:[#allocation2 + $0x224] sm:$0xf0] }
  0xc2   :  { %2734 = vmatpush.bf16.msra.mxu2 %v6796_v10  ;;  %2709 = vmatpush.bf16.msrb.mxu3 %v6252_v16  ;;  %v7179_v34 = vld [vmem:[#allocation2 + $0x9c8] sm:$0xf]  ;;  %v6188_v48 = vor.u32 %v8910_v33, %v6187_v32  ;;  %v6416_v10 = vor.u32 %v8962_v1, %v6413_v2 }
  0xc3   :  { %v9158_v36 = vld [vmem:[#allocation2 + $0x9e4] sm:$0xf0] }
  0xc4   :  { %v7435_v37 = vld [vmem:[#allocation2 + $0xbc8] sm:$0xf]  ;;  %2722 = vmatpush.bf16.msra.mxu0 %v6508_v21  ;;  %2697 = vmatpush.bf16.msrb.mxu1 %v5964_v25  ;;  %v7180_v49 = vor.u32 %v9158_v36, %v7179_v34  ;;  %v6096_v25 = vor.u32 %v8882_v17, %v6093_v18  ;;  %v6352_v36 = vor.u32 %v8946_v26, %v6349_v27  ;;  %v6669_v17 = vld [vmem:[#allocation2 + $0x5e8] sm:$0xf0] }
  0xc5   :  { %v9222_v40 = vld [vmem:[#allocation2 + $0xbe4] sm:$0xf0]  ;;  %v9090_v18 = vld [vmem:[#allocation2 + $0x7cc] sm:$0xf] }
  0xc6   :  { %2735 = vmatpush.bf16.msra.mxu2 %v6764_v22  ;;  %v6443_v41 = vld [vmem:[#allocation2 + $0x408] sm:$0xf]  ;;  %2710 = vmatpush.bf16.msrb.mxu3 %v6220_v29  ;;  %v7436_v54 = vor.u32 %v9222_v40, %v7435_v37  ;;  %v6384_v22 = vor.u32 %v8954_v14, %v6381_v15  ;;  %v8874_v29 = vld [vmem:[#allocation2 + $0x10c] sm:$0xf]  ;;  %v6256_v15 = vor.u32 %v8922_v5, %v6253_v6 }
  0xc7   :  { %v8974_v42 = vld [vmem:[#allocation2 + $0x424] sm:$0xf0]  ;;  %v8938_v40 = vld [vmem:[#allocation2 + $0x30c] sm:$0xf] }
  0xc8   :  { %v6699_v44 = vld [vmem:[#allocation2 + $0x608] sm:$0xf]  ;;  %2723 = vmatpush.bf16.msra.mxu0 %v6476_v38  ;;  %v6444_v59 = vor.u32 %v8974_v42, %v6443_v41  ;;  %2698 = vmatpush.bf16.msrb.mxu1 %v5932_v43  ;;  %v6317_v41 = vld [vmem:[#allocation2 + $0x328] sm:$0xf0] }
  0xc9   :  { %v9038_v46 = vld [vmem:[#allocation2 + $0x624] sm:$0xf0]  ;;  %v8866_v43 = vld [vmem:[#allocation2 + $0xcc] sm:$0xf] }
  0xca   :  { %v7467_v52 = vld [vmem:[#allocation2 + $0xc08] sm:$0xf]  ;;  %2736 = vmatpush.bf16.msra.mxu2 %v6732_v39  ;;  %v6700_v60 = vor.u32 %v9038_v46, %v6699_v44  ;;  %2711 = vmatpush.bf16.msrb.mxu3 %v6188_v48  ;;  %v6064_v39 = vor.u32 %v8874_v29, %v6061_v31  ;;  %v6029_v44 = vld [vmem:[#allocation2 + $0xe8] sm:$0xf0] }
  0xcb   :  { %v9230_v53 = vld [vmem:[#allocation2 + $0xc24] sm:$0xf0]  ;;  %2699 = vmatmul.bf16.vlgmr.msrb.gmra.mxu1 %v9832_v55  ;;  %v7181_v29 = vld [vmem:[#allocation2 + $0x9e8] sm:$0xf0] }
  0xcc   :  { %v7147_v56 = vld [vmem:[#allocation2 + $0x988] sm:$0xf]  ;;  %v7468_v0 = vor.u32 %v9230_v53, %v7467_v52  ;;  %2743 = vmatpush.bf16.msra.mxu1 %v7180_v49  ;;  %2724 = vmatpush.bf16.msra.mxu0 %v6444_v59  ;;  %v6320_v49 = vor.u32 %v8938_v40, %v6317_v41  ;;  %v6032_v53 = vor.u32 %v8866_v43, %v6029_v44  ;;  %v8858_v59 = vld [vmem:[#allocation2 + $0x8c] sm:$0xf] }
  0xcd   :  { %v9150_v58 = vld [vmem:[#allocation2 + $0x9a4] sm:$0xf0]  ;;  %2712 = vmatmul.bf16.vlgmr.msrb.gmra.mxu3 %v9841_v4  ;;  %v6189_v40 = vld [vmem:[#allocation2 + $0x228] sm:$0xf0] }
  0xce   :  { %v7403_v61 = vld [vmem:[#allocation2 + $0xb88] sm:$0xf]  ;;  %v7148_v3 = vor.u32 %v9150_v58, %v7147_v56  ;;  %2756 = vmatpush.bf16.msra.mxu3 %v7436_v54  ;;  %2737 = vmatpush.bf16.msra.mxu2 %v6700_v60  ;;  %v8930_v54 = vld [vmem:[#allocation2 + $0x2cc] sm:$0xf] }
  0xcf   :  { %v9214_v62 = vld [vmem:[#allocation2 + $0xba4] sm:$0xf0]  ;;  %2725 = vmatmul.bf16.vlgmr.msra.gmra.mxu0 %v9830_v51  ;;  %v6285_v56 = vld [vmem:[#allocation2 + $0x2e8] sm:$0xf0] }
  0xd0   :  { %v7404_v7 = vor.u32 %v9214_v62, %v7403_v61  ;;  %v7115_v8 = vld [vmem:[#allocation2 + $0x948] sm:$0xf]  ;;  %2776 = vmatpush.bf16.msrb.mxu0 %v7468_v0  ;;  %2744 = vmatpush.bf16.msra.mxu1 %v7148_v3  ;;  %v5997_v60 = vld [vmem:[#allocation2 + $0xa8] sm:$0xf0]  ;;  %v6288_v0 = vor.u32 %v8930_v54, %v6285_v56 }
  0xd1   :  { %v9142_v9 = vld [vmem:[#allocation2 + $0x964] sm:$0xf0]  ;;  %2738 = vmatmul.bf16.vlgmr.msra.gmra.mxu2 %v9834_v57  ;;  %v6000_v3 = vor.u32 %v8858_v59, %v5997_v60  ;;  %v7437_v43 = vld [vmem:[#allocation2 + $0xbe8] sm:$0xf0] }
  0xd2   :  { %v7371_v11 = vld [vmem:[#allocation2 + $0xb48] sm:$0xf]  ;;  %2782 = vmatpush.bf16.msrb.mxu2 %v6160_v63  ;;  %v7116_v16 = vor.u32 %v9142_v9, %v7115_v8  ;;  %2757 = vmatpush.bf16.msra.mxu3 %v7404_v7  ;;  %v8850_v8 = vld [vmem:[#allocation2 + $0x4c] sm:$0xf] }
  0xd3   :  { %v9206_v12 = vld [vmem:[#allocation2 + $0xb64] sm:$0xf0]  ;;  %v5965_v9 = vld [vmem:[#allocation2 + $0x68] sm:$0xf0] }
  0xd4   :  { %v7372_v19 = vor.u32 %v9206_v12, %v7371_v11  ;;  %v7083_v20 = vld [vmem:[#allocation2 + $0x908] sm:$0xf]  ;;  %2795 = vmatpush.bf16.msra.mxu0 %v6416_v10  ;;  %2745 = vmatpush.bf16.msra.mxu1 %v7116_v16  ;;  %v9026_v16 = vld [vmem:[#allocation2 + $0x5cc] sm:$0xf] }
  0xd5   :  { %v9134_v21 = vld [vmem:[#allocation2 + $0x924] sm:$0xf0]  ;;  %v6672_v27 = vor.u32 %v9026_v16, %v6669_v17  ;;  %v9074_v54 = vld [vmem:[#allocation2 + $0x74c] sm:$0xf] }
  0xd6   :  { %v7339_v23 = vld [vmem:[#allocation2 + $0xb08] sm:$0xf]  ;;  %2783 = vmatpush.bf16.msrb.mxu2 %v6128_v13  ;;  %v7084_v28 = vor.u32 %v9134_v21, %v7083_v20  ;;  %2758 = vmatpush.bf16.msra.mxu3 %v7372_v19  ;;  %v5968_v19 = vor.u32 %v8850_v8, %v5965_v9  ;;  %v6925_v20 = vld [vmem:[#allocation2 + $0x7e8] sm:$0xf0] }
  0xd7   :  { %v9198_v24 = vld [vmem:[#allocation2 + $0xb24] sm:$0xf0]  ;;  %v8914_v21 = vld [vmem:[#allocation2 + $0x24c] sm:$0xf]  ;;  %v6928_v31 = vor.u32 %v9090_v18, %v6925_v20 }
  0xd8   :  { %v7340_v32 = vor.u32 %v9198_v24, %v7339_v23  ;;  %v7051_v33 = vld [vmem:[#allocation2 + $0x8c8] sm:$0xf]  ;;  %2796 = vmatpush.bf16.msra.mxu0 %v6384_v22  ;;  %2746 = vmatpush.bf16.msra.mxu1 %v7084_v28  ;;  %v6221_v22 = vld [vmem:[#allocation2 + $0x268] sm:$0xf0] }
  0xd9   :  { %v9126_v34 = vld [vmem:[#allocation2 + $0x8e4] sm:$0xf0]  ;;  %v8842_v24 = vld [vmem:[#allocation2 + $0xc] sm:$0xf] }
  0xda   :  { %v7307_v37 = vld [vmem:[#allocation2 + $0xac8] sm:$0xf]  ;;  %2784 = vmatpush.bf16.msrb.mxu2 %v6096_v25  ;;  %v7052_v42 = vor.u32 %v9126_v34, %v7051_v33  ;;  %2759 = vmatpush.bf16.msra.mxu3 %v7340_v32  ;;  %v5933_v25 = vld [vmem:[#allocation2 + $0x28] sm:$0xf0]  ;;  %v6224_v32 = vor.u32 %v8914_v21, %v6221_v22 }
  0xdb   :  { %v9190_v38 = vld [vmem:[#allocation2 + $0xae4] sm:$0xf0]  ;;  %v9154_v28 = vld [vmem:[#allocation2 + $0x9cc] sm:$0xf] }
  0xdc   :  { %v7308_v46 = vor.u32 %v9190_v38, %v7307_v37  ;;  %v7019_v47 = vld [vmem:[#allocation2 + $0x888] sm:$0xf]  ;;  %2797 = vmatpush.bf16.msra.mxu0 %v6352_v36  ;;  %2747 = vmatpush.bf16.msra.mxu1 %v7052_v42  ;;  %v9018_v33 = vld [vmem:[#allocation2 + $0x58c] sm:$0xf]  ;;  %v5936_v37 = vor.u32 %v8842_v24, %v5933_v25  ;;  %v7184_v41 = vor.u32 %v9154_v28, %v7181_v29 }
  0xdd   :  { %v9118_v48 = vld [vmem:[#allocation2 + $0x8a4] sm:$0xf0]  ;;  %v6637_v34 = vld [vmem:[#allocation2 + $0x5a8] sm:$0xf0] }
  0xde   :  { %v7275_v50 = vld [vmem:[#allocation2 + $0xa88] sm:$0xf]  ;;  %2785 = vmatpush.bf16.msrb.mxu2 %v6064_v39  ;;  %v7020_v58 = vor.u32 %v9118_v48, %v7019_v47  ;;  %2760 = vmatpush.bf16.msra.mxu3 %v7308_v46  ;;  %v9082_v36 = vld [vmem:[#allocation2 + $0x78c] sm:$0xf]  ;;  %v6640_v44 = vor.u32 %v9018_v33, %v6637_v34  ;;  %v2531_v33 = vpop.f32.mrf.mxu1 }
  0xdf   :  { %v9182_v52 = vld [vmem:[#allocation2 + $0xaa4] sm:$0xf0]  ;;  %7491 = vmatmul.msk.bf16.vlgmr.msrb.gmra.mxu0 %vm2505_vm0, %v9848_v45  ;;  %v6893_v38 = vld [vmem:[#allocation2 + $0x7a8] sm:$0xf0] }
  0xe0   :  { %v7276_v61 = vor.u32 %v9182_v52, %v7275_v50  ;;  %v6987_v62 = vld [vmem:[#allocation2 + $0x848] sm:$0xf]  ;;  %2798 = vmatpush.bf16.msra.mxu0 %v6320_v49  ;;  %2748 = vmatpush.bf16.msra.mxu1 %v7020_v58  ;;  %v8906_v39 = vld [vmem:[#allocation2 + $0x20c] sm:$0xf]  ;;  %v6896_v48 = vor.u32 %v9082_v36, %v6893_v38 }
  0xe1   :  { %v9110_v63 = vld [vmem:[#allocation2 + $0x864] sm:$0xf0]  ;;  %v9218_v42 = vld [vmem:[#allocation2 + $0xbcc] sm:$0xf]  ;;  %v6192_v49 = vor.u32 %v8906_v39, %v6189_v40 }
  0xe2   :  { %v7243_v1 = vld [vmem:[#allocation2 + $0xa48] sm:$0xf]  ;;  %2786 = vmatpush.bf16.msrb.mxu2 %v6032_v53  ;;  %v6988_v7 = vor.u32 %v9110_v63, %v6987_v62  ;;  %2761 = vmatpush.bf16.msra.mxu3 %v7276_v61  ;;  %v9146_v46 = vld [vmem:[#allocation2 + $0x98c] sm:$0xf]  ;;  %v7440_v53 = vor.u32 %v9218_v42, %v7437_v43  ;;  %v2518_v18 = vpop.f32.mrf.mxu0  ;;  %v2544_v42 = vpop.f32.mrf.mxu2 }
  0xe3   :  { %v9174_v2 = vld [vmem:[#allocation2 + $0xa64] sm:$0xf0]  ;;  %v7149_v47 = vld [vmem:[#allocation2 + $0x9a8] sm:$0xf0] }
  0xe4   :  { %v6955_v10 = vld [vmem:[#allocation2 + $0x808] sm:$0xf]  ;;  %v7244_v11 = vor.u32 %v9174_v2, %v7243_v1  ;;  %2799 = vmatpush.bf16.msra.mxu0 %v6288_v0  ;;  %2749 = vmatpush.bf16.msra.mxu1 %v6988_v7  ;;  %v9010_v50 = vld [vmem:[#allocation2 + $0x54c] sm:$0xf]  ;;  %v7152_v58 = vor.u32 %v9146_v46, %v7149_v47  ;;  %v9880_v0 = vld [vmem:[#allocation4] sm:$0xff] }
  0xe5   :  { %v9102_v12 = vld [vmem:[#allocation2 + $0x824] sm:$0xf0]  ;;  %v6605_v52 = vld [vmem:[#allocation2 + $0x568] sm:$0xf0]  ;;  %v529_v9 = vperm.slane %v9880_v0, 0 }
  0xe6   :  { %v7211_v13 = vld [vmem:[#allocation2 + $0xa08] sm:$0xf]  ;;  %2787 = vmatpush.bf16.msrb.mxu2 %v6000_v3  ;;  %v6956_v23 = vor.u32 %v9102_v12, %v6955_v10  ;;  %2762 = vmatpush.bf16.msra.mxu3 %v7244_v11  ;;  %v6861_v56 = vld [vmem:[#allocation2 + $0x768] sm:$0xf0]  ;;  %v6608_v61 = vor.u32 %v9010_v50, %v6605_v52 }
  0xe7   :  { %v9166_v14 = vld [vmem:[#allocation2 + $0xa24] sm:$0xf0]  ;;  %v9210_v59 = vld [vmem:[#allocation2 + $0xb8c] sm:$0xf]  ;;  %v6864_v1 = vor.u32 %v9074_v54, %v6861_v56  ;;  %v2519_v22 = vadd.f32 %v2518_v18, %v529_v9 }
  0xe8   :  { %v7212_v26 = vor.u32 %v9166_v14, %v7211_v13  ;;  %2800 = vmatpush.bf16.msra.mxu0 %v6256_v15  ;;  %2750 = vmatpush.bf16.msra.mxu1 %v6956_v23  ;;  %v7405_v60 = vld [vmem:[#allocation2 + $0xba8] sm:$0xf0] }
  0xe9   :  { %v9138_v62 = vld [vmem:[#allocation2 + $0x94c] sm:$0xf]  ;;  %v7408_v5 = vor.u32 %v9210_v59, %v7405_v60  ;;  %v2532_v38 = vadd.f32 %v2531_v33, %v2519_v22  ;;  %v6131_v33 = vld [vmem:[#allocation2 + $0x190] sm:$0xf] }
  0xea   :  { %2788 = vmatpush.bf16.msrb.mxu2 %v5968_v19  ;;  %2763 = vmatpush.bf16.msra.mxu3 %v7212_v26  ;;  %v7117_v63 = vld [vmem:[#allocation2 + $0x968] sm:$0xf0]  ;;  %v2546_v18 = vpop.f32.mrf.mxu2 }
  0xeb   :  { %2751 = vmatmul.bf16.vlgmr.msra.gmra.mxu1 %v9858_v30  ;;  %v9002_v2 = vld [vmem:[#allocation2 + $0x50c] sm:$0xf]  ;;  %v7120_v8 = vor.u32 %v9138_v62, %v7117_v63  ;;  %v2545_v47 = vadd.f32 %v2544_v42, %v2532_v38  ;;  %v6931_v42 = vld [vmem:[#allocation2 + $0x7d0] sm:$0xf] }
  0xec   :  { %2808 = vmatpush.bf16.msrb.mxu1 %v6672_v27  ;;  %2801 = vmatpush.bf16.msra.mxu0 %v6224_v32  ;;  %v6573_v3 = vld [vmem:[#allocation2 + $0x528] sm:$0xf0]  ;;  %v6035_v18 = vld [vmem:[#allocation2 + $0xd0] sm:$0xf] }
  0xed   :  { %2764 = vmatmul.bf16.vlgmr.msra.gmra.mxu3 %v9860_v35  ;;  %v9066_v6 = vld [vmem:[#allocation2 + $0x70c] sm:$0xf]  ;;  %v6576_v12 = vor.u32 %v9002_v2, %v6573_v3 }
  0xee   :  { %2821 = vmatpush.bf16.msrb.mxu3 %v6928_v31  ;;  %2789 = vmatpush.bf16.msrb.mxu2 %v5936_v37  ;;  %v6829_v7 = vld [vmem:[#allocation2 + $0x728] sm:$0xf0] }
  0xef   :  { %v9202_v10 = vld [vmem:[#allocation2 + $0xb4c] sm:$0xf]  ;;  %v6832_v15 = vor.u32 %v9066_v6, %v6829_v7 }
  0xf0   :  { %2809 = vmatpush.bf16.msrb.mxu1 %v6640_v44  ;;  %2802 = vmatpush.bf16.msra.mxu0 %v6192_v49  ;;  %v7373_v11 = vld [vmem:[#allocation2 + $0xb68] sm:$0xf0] }
  0xf1   :  { %2790 = vmatmul.bf16.vlgmr.msrb.gmra.mxu2 %v9832_v55  ;;  %v9130_v13 = vld [vmem:[#allocation2 + $0x90c] sm:$0xf]  ;;  %v7376_v19 = vor.u32 %v9202_v10, %v7373_v11  ;;  %v6163_v10 = vld [vmem:[#allocation2 + $0x1d0] sm:$0xf] }
  0xf2   :  { %2834 = vmatpush.bf16.msra.mxu2 %v7184_v41  ;;  %2822 = vmatpush.bf16.msrb.mxu3 %v6896_v48  ;;  %v7085_v14 = vld [vmem:[#allocation2 + $0x928] sm:$0xf0]  ;;  %v2557_v48 = vpop.f32.mrf.mxu3  ;;  %v6419_v11 = vld [vmem:[#allocation2 + $0x3d0] sm:$0xf] }
  0xf3   :  { %2803 = vmatmul.bf16.vlgmr.msra.gmra.mxu0 %v9841_v4  ;;  %v8994_v16 = vld [vmem:[#allocation2 + $0x4cc] sm:$0xf]  ;;  %v7088_v23 = vor.u32 %v9130_v13, %v7085_v14  ;;  %v9885_v59 = vadd.f32 %v2557_v48, %v2545_v47  ;;  %v2533_v13 = vpop.f32.mrf.mxu1  ;;  %v8951_v47 = vld [vmem:[#allocation2 + $0x36c] sm:$0xf0] }
  0xf4   :  { %2847 = vmatpush.bf16.msrb.mxu0 %v7440_v53  ;;  %2810 = vmatpush.bf16.msrb.mxu1 %v6608_v61  ;;  %v6541_v17 = vld [vmem:[#allocation2 + $0x4e8] sm:$0xf0] }
  0xf5   :  { %v9058_v20 = vld [vmem:[#allocation2 + $0x6cc] sm:$0xf]  ;;  %v6544_v26 = vor.u32 %v8994_v16, %v6541_v17 }
  0xf6   :  { %2835 = vmatpush.bf16.msra.mxu2 %v7152_v58  ;;  %2823 = vmatpush.bf16.msrb.mxu3 %v6864_v1  ;;  %v6797_v21 = vld [vmem:[#allocation2 + $0x6e8] sm:$0xf0]  ;;  %v2520_v58 = vpop.f32.mrf.mxu0 }
  0xf7   :  { %v9194_v24 = vld [vmem:[#allocation2 + $0xb0c] sm:$0xf]  ;;  %v6800_v29 = vor.u32 %v9058_v20, %v6797_v21  ;;  %v9023_v58 = vld [vmem:[#allocation2 + $0x5ac] sm:$0xf0] }
  0xf8   :  { %2848 = vmatpush.bf16.msrb.mxu0 %v7408_v5  ;;  %v7341_v25 = vld [vmem:[#allocation2 + $0xb28] sm:$0xf0]  ;;  %2811 = vmatpush.bf16.msrb.mxu1 %v6576_v12  ;;  %v8967_v12 = vld [vmem:[#allocation2 + $0x3ec] sm:$0xf0] }
  0xf9   :  { %v9122_v27 = vld [vmem:[#allocation2 + $0x8cc] sm:$0xf]  ;;  %v7344_v34 = vor.u32 %v9194_v24, %v7341_v25 }
  0xfa   :  { %2836 = vmatpush.bf16.msra.mxu2 %v7120_v8  ;;  %v7053_v28 = vld [vmem:[#allocation2 + $0x8e8] sm:$0xf0]  ;;  %2824 = vmatpush.bf16.msrb.mxu3 %v6832_v15  ;;  %v8903_v15 = vld [vmem:[#allocation2 + $0x1ec] sm:$0xf0] }
  0xfb   :  { %v8986_v31 = vld [vmem:[#allocation2 + $0x48c] sm:$0xf]  ;;  %v7056_v39 = vor.u32 %v9122_v27, %v7053_v28  ;;  %v6164_v27 = vor.u32 %v8903_v15, %v6163_v10  ;;  %v8935_v15 = vld [vmem:[#allocation2 + $0x2ec] sm:$0xf0] }
  0xfc   :  { %v6509_v32 = vld [vmem:[#allocation2 + $0x4a8] sm:$0xf0]  ;;  %2849 = vmatpush.bf16.msrb.mxu0 %v7376_v19  ;;  %2812 = vmatpush.bf16.msrb.mxu1 %v6544_v26  ;;  %v2559_v26 = vpop.f32.mrf.mxu3 }
  0xfd   :  { %v9050_v36 = vld [vmem:[#allocation2 + $0x68c] sm:$0xf]  ;;  %v6512_v43 = vor.u32 %v8986_v31, %v6509_v32  ;;  %v8959_v31 = vld [vmem:[#allocation2 + $0x3ac] sm:$0xf0] }
  0xfe   :  { %v6765_v37 = vld [vmem:[#allocation2 + $0x6a8] sm:$0xf0]  ;;  %2837 = vmatpush.bf16.msra.mxu2 %v7088_v23  ;;  %2825 = vmatpush.bf16.msrb.mxu3 %v6800_v29  ;;  %v6420_v23 = vor.u32 %v8967_v12, %v6419_v11  ;;  %v6387_v29 = vld [vmem:[#allocation2 + $0x390] sm:$0xf] }
  0xff   :  { %v9186_v40 = vld [vmem:[#allocation2 + $0xacc] sm:$0xf]  ;;  %v6768_v49 = vor.u32 %v9050_v36, %v6765_v37  ;;  %v6867_v11 = vld [vmem:[#allocation2 + $0x750] sm:$0xf] }
 0x100   :  { %v7309_v41 = vld [vmem:[#allocation2 + $0xae8] sm:$0xf0]  ;;  %2850 = vmatpush.bf16.msrb.mxu0 %v7344_v34  ;;  %2813 = vmatpush.bf16.msrb.mxu1 %v6512_v43  ;;  %v8895_v34 = vld [vmem:[#allocation2 + $0x1ac] sm:$0xf0] }
 0x101   :  { %v9114_v44 = vld [vmem:[#allocation2 + $0x88c] sm:$0xf]  ;;  %v7312_v53 = vor.u32 %v9186_v40, %v7309_v41  ;;  %v9031_v40 = vld [vmem:[#allocation2 + $0x5ec] sm:$0xf0]  ;;  %v6388_v41 = vor.u32 %v8959_v31, %v6387_v29 }
 0x102   :  { %v7021_v46 = vld [vmem:[#allocation2 + $0x8a8] sm:$0xf0]  ;;  %2838 = vmatpush.bf16.msra.mxu2 %v7056_v39  ;;  %2826 = vmatpush.bf16.msrb.mxu3 %v6768_v49  ;;  %v6675_v39 = vld [vmem:[#allocation2 + $0x5d0] sm:$0xf] }
 0x103   :  { %v8978_v50 = vld [vmem:[#allocation2 + $0x44c] sm:$0xf]  ;;  %v7024_v60 = vor.u32 %v9114_v44, %v7021_v46  ;;  %v9095_v43 = vld [vmem:[#allocation2 + $0x7ec] sm:$0xf0]  ;;  %v6132_v44 = vor.u32 %v8895_v34, %v6131_v33  ;;  %v6676_v49 = vor.u32 %v9031_v40, %v6675_v39 }
 0x104   :  { %v6477_v52 = vld [vmem:[#allocation2 + $0x468] sm:$0xf0]  ;;  %2851 = vmatpush.bf16.msrb.mxu0 %v7312_v53  ;;  %v6355_v46 = vld [vmem:[#allocation2 + $0x350] sm:$0xf]  ;;  %v6932_v53 = vor.u32 %v9095_v43, %v6931_v42 }
 0x105   :  { %v9042_v54 = vld [vmem:[#allocation2 + $0x64c] sm:$0xf]  ;;  %v6480_v63 = vor.u32 %v8978_v50, %v6477_v52  ;;  %v6099_v50 = vld [vmem:[#allocation2 + $0x150] sm:$0xf] }
 0x106   :  { %v6733_v56 = vld [vmem:[#allocation2 + $0x668] sm:$0xf0]  ;;  %2839 = vmatpush.bf16.msra.mxu2 %v7024_v60  ;;  %v8887_v52 = vld [vmem:[#allocation2 + $0x16c] sm:$0xf0]  ;;  %v6356_v60 = vor.u32 %v8951_v47, %v6355_v46 }
 0x107   :  { %v9178_v61 = vld [vmem:[#allocation2 + $0xa8c] sm:$0xf]  ;;  %v6736_v5 = vor.u32 %v9042_v54, %v6733_v56  ;;  %2814 = vmatpush.bf16.msrb.mxu1 %v6480_v63  ;;  %v2596_v54 = vpop.f32.mrf.mxu2  ;;  %v6643_v56 = vld [vmem:[#allocation2 + $0x590] sm:$0xf]  ;;  %v6100_v63 = vor.u32 %v8887_v52, %v6099_v50 }
 0x108   :  { %v7277_v62 = vld [vmem:[#allocation2 + $0xaa8] sm:$0xf0]  ;;  %v9079_v12 = vld [vmem:[#allocation2 + $0x76c] sm:$0xf0] }
 0x109   :  { %v9106_v1 = vld [vmem:[#allocation2 + $0x84c] sm:$0xf]  ;;  %v7280_v9 = vor.u32 %v9178_v61, %v7277_v62  ;;  %2827 = vmatpush.bf16.msrb.mxu3 %v6736_v5  ;;  %v6899_v61 = vld [vmem:[#allocation2 + $0x790] sm:$0xf] }
 0x10a   :  { %v6989_v2 = vld [vmem:[#allocation2 + $0x868] sm:$0xf0]  ;;  %v9087_v62 = vld [vmem:[#allocation2 + $0x7ac] sm:$0xf0] }
 0x10b   :  { %v8970_v3 = vld [vmem:[#allocation2 + $0x40c] sm:$0xf]  ;;  %v6992_v14 = vor.u32 %v9106_v1, %v6989_v2  ;;  %2852 = vmatpush.bf16.msrb.mxu0 %v7280_v9  ;;  %v6323_v1 = vld [vmem:[#allocation2 + $0x310] sm:$0xf] }
 0x10c   :  { %v6445_v6 = vld [vmem:[#allocation2 + $0x428] sm:$0xf0]  ;;  %v8943_v2 = vld [vmem:[#allocation2 + $0x32c] sm:$0xf0] }
 0x10d   :  { %v9034_v7 = vld [vmem:[#allocation2 + $0x60c] sm:$0xf]  ;;  %v6448_v19 = vor.u32 %v8970_v3, %v6445_v6  ;;  %2840 = vmatpush.bf16.msra.mxu2 %v6992_v14  ;;  %v6644_v3 = vor.u32 %v9023_v58, %v6643_v56  ;;  %v6067_v5 = vld [vmem:[#allocation2 + $0x110] sm:$0xf]  ;;  %v6324_v10 = vor.u32 %v8943_v2, %v6323_v1 }
 0x10e   :  { %v6701_v8 = vld [vmem:[#allocation2 + $0x628] sm:$0xf0]  ;;  %v8879_v6 = vld [vmem:[#allocation2 + $0x12c] sm:$0xf0] }
 0x10f   :  { %v9170_v16 = vld [vmem:[#allocation2 + $0xa4c] sm:$0xf]  ;;  %v6704_v22 = vor.u32 %v9034_v7, %v6701_v8  ;;  %2815 = vmatpush.bf16.msrb.mxu1 %v6448_v19  ;;  %v6900_v7 = vor.u32 %v9087_v62, %v6899_v61  ;;  %v6611_v8 = vld [vmem:[#allocation2 + $0x550] sm:$0xf]  ;;  %v6068_v13 = vor.u32 %v8879_v6, %v6067_v5 }
 0x110   :  { %v7245_v17 = vld [vmem:[#allocation2 + $0xa68] sm:$0xf0]  ;;  %v9015_v9 = vld [vmem:[#allocation2 + $0x56c] sm:$0xf0] }
 0x111   :  { %v9098_v20 = vld [vmem:[#allocation2 + $0x80c] sm:$0xf]  ;;  %v7248_v28 = vor.u32 %v9170_v16, %v7245_v17  ;;  %2828 = vmatpush.bf16.msrb.mxu3 %v6704_v22  ;;  %v6291_v14 = vld [vmem:[#allocation2 + $0x2d0] sm:$0xf]  ;;  %v2570_v16 = vpop.f32.mrf.mxu0  ;;  %v6612_v17 = vor.u32 %v9015_v9, %v6611_v8  ;;  %v6868_v22 = vor.u32 %v9079_v12, %v6867_v11 }
 0x112   :  { %v6957_v21 = vld [vmem:[#allocation2 + $0x828] sm:$0xf0]  ;;  %2816 = vmatmul.bf16.vlgmr.msrb.gmra.mxu1 %v9830_v51  ;;  %v8871_v19 = vld [vmem:[#allocation2 + $0xec] sm:$0xf0]  ;;  %v6292_v26 = vor.u32 %v8935_v15, %v6291_v14 }
 0x113   :  { %v9226_v24 = vld [vmem:[#allocation2 + $0xc0c] sm:$0xf]  ;;  %v6960_v32 = vor.u32 %v9098_v20, %v6957_v21  ;;  %2886 = vmatpush.bf16.msra.mxu1 %v6420_v23  ;;  %2853 = vmatpush.bf16.msrb.mxu0 %v7248_v28  ;;  %v2571_v20 = vadd.f32 %v2570_v16, %v9885_v59  ;;  %v2583_v21 = vpop.f32.mrf.mxu1  ;;  %v2598_v23 = vpop.f32.mrf.mxu2  ;;  %v9071_v28 = vld [vmem:[#allocation2 + $0x72c] sm:$0xf0]  ;;  %v6036_v31 = vor.u32 %v8871_v19, %v6035_v18 }
 0x114   :  { %v7469_v25 = vld [vmem:[#allocation2 + $0xc28] sm:$0xf0]  ;;  %2829 = vmatmul.bf16.vlgmr.msrb.gmra.mxu3 %v9834_v57  ;;  %v8927_v33 = vld [vmem:[#allocation2 + $0x2ac] sm:$0xf0] }
 0x115   :  { %v9162_v36 = vld [vmem:[#allocation2 + $0xa0c] sm:$0xf]  ;;  %v7472_v38 = vor.u32 %v9226_v24, %v7469_v25  ;;  %2873 = vmatpush.bf16.msra.mxu3 %v6164_v27  ;;  %2841 = vmatpush.bf16.msra.mxu2 %v6960_v32  ;;  %v6579_v24 = vld [vmem:[#allocation2 + $0x510] sm:$0xf]  ;;  %v2584_v29 = vadd.f32 %v2583_v21, %v2571_v20 }
 0x116   :  { %v7213_v37 = vld [vmem:[#allocation2 + $0xa28] sm:$0xf0]  ;;  %v9007_v25 = vld [vmem:[#allocation2 + $0x52c] sm:$0xf0] }
 0x117   :  { %v7216_v48 = vor.u32 %v9162_v36, %v7213_v37  ;;  %2887 = vmatpush.bf16.msra.mxu1 %v6388_v41  ;;  %v6835_v27 = vld [vmem:[#allocation2 + $0x710] sm:$0xf]  ;;  %v6580_v34 = vor.u32 %v9007_v25, %v6579_v24  ;;  %v530_v41 = vperm.slane %v9880_v0, 1 }
 0x118   :  { %2842 = vmatmul.bf16.vlgmr.msra.gmra.mxu2 %v9858_v30  ;;  %v6259_v32 = vld [vmem:[#allocation2 + $0x290] sm:$0xf]  ;;  %v6836_v59 = vor.u32 %v9071_v28, %v6835_v27 }
 0x119   :  { %2867 = vmatpush.bf16.msrb.mxu2 %v7472_v38  ;;  %2874 = vmatpush.bf16.msra.mxu3 %v6132_v44  ;;  %v6003_v36 = vld [vmem:[#allocation2 + $0x90] sm:$0xf]  ;;  %v9892_v38 = vadd.f32 %v2596_v54, %v2584_v29  ;;  %v6260_v42 = vor.u32 %v8927_v33, %v6259_v32  ;;  %v2609_v54 = vpop.f32.mrf.mxu3 }
 0x11a   :  { %2854 = vmatpush.bf16.msrb.mxu0 %v7216_v48  ;;  %v8863_v37 = vld [vmem:[#allocation2 + $0xac] sm:$0xf0]  ;;  %v2610_v61 = vadd.f32 %v2609_v54, %v530_v41  ;;  %v8963_v54 = vld [vmem:[#allocation2 + $0x3d4] sm:$0xf] }
 0x11b   :  { %2888 = vmatpush.bf16.msra.mxu1 %v6356_v60  ;;  %v6547_v39 = vld [vmem:[#allocation2 + $0x4d0] sm:$0xf]  ;;  %v6004_v46 = vor.u32 %v8863_v37, %v6003_v36  ;;  %v2585_v62 = vpop.f32.mrf.mxu1  ;;  %v2622_v5 = vpop.f32.mrf.mxu2 }
 0x11c   :  { %v8999_v40 = vld [vmem:[#allocation2 + $0x4ec] sm:$0xf0]  ;;  %v6133_v62 = vld [vmem:[#allocation2 + $0x1b0] sm:$0xf0] }
 0x11d   :  { %2899 = vmatpush.bf16.msra.mxu2 %v6676_v49  ;;  %2875 = vmatpush.bf16.msra.mxu3 %v6100_v63  ;;  %v6803_v43 = vld [vmem:[#allocation2 + $0x6d0] sm:$0xf]  ;;  %v6548_v49 = vor.u32 %v8999_v40, %v6547_v39 }
 0x11e   :  { %2912 = vmatpush.bf16.msra.mxu0 %v6932_v53  ;;  %v9063_v44 = vld [vmem:[#allocation2 + $0x6ec] sm:$0xf0]  ;;  %v2572_v53 = vpop.f32.mrf.mxu0 }
 0x11f   :  { %2855 = vmatmul.bf16.vlgmr.msrb.gmra.mxu0 %v9860_v35  ;;  %2889 = vmatpush.bf16.msra.mxu1 %v6324_v10  ;;  %v6227_v47 = vld [vmem:[#allocation2 + $0x250] sm:$0xf]  ;;  %v6804_v56 = vor.u32 %v9063_v44, %v6803_v43  ;;  %v9897_v10 = vadd.f32 %v2622_v5, %v2610_v61  ;;  %v6165_v43 = vld [vmem:[#allocation2 + $0x1f0] sm:$0xf0] }
 0x120   :  { %v8919_v48 = vld [vmem:[#allocation2 + $0x26c] sm:$0xf0]  ;;  %v8891_v61 = vld [vmem:[#allocation2 + $0x194] sm:$0xf] }
 0x121   :  { %2900 = vmatpush.bf16.msra.mxu2 %v6644_v3  ;;  %2876 = vmatpush.bf16.msra.mxu3 %v6068_v13  ;;  %v5971_v50 = vld [vmem:[#allocation2 + $0x50] sm:$0xf]  ;;  %v6228_v63 = vor.u32 %v8919_v48, %v6227_v47 }
 0x122   :  { %2913 = vmatpush.bf16.msra.mxu0 %v6900_v7  ;;  %v8855_v52 = vld [vmem:[#allocation2 + $0x6c] sm:$0xf0] }
 0x123   :  { %2890 = vmatpush.bf16.msra.mxu1 %v6292_v26  ;;  %v6515_v58 = vld [vmem:[#allocation2 + $0x490] sm:$0xf]  ;;  %v5972_v6 = vor.u32 %v8855_v52, %v5971_v50  ;;  %v2624_v40 = vpop.f32.mrf.mxu2 }
 0x124   :  { %v8991_v60 = vld [vmem:[#allocation2 + $0x4ac] sm:$0xf0] }
 0x125   :  { %2901 = vmatpush.bf16.msra.mxu2 %v6612_v17  ;;  %2877 = vmatpush.bf16.msra.mxu3 %v6036_v31  ;;  %v6771_v1 = vld [vmem:[#allocation2 + $0x690] sm:$0xf]  ;;  %v6516_v11 = vor.u32 %v8991_v60, %v6515_v58  ;;  %v2611_v31 = vpop.f32.mrf.mxu3 }
 0x126   :  { %2914 = vmatpush.bf16.msra.mxu0 %v6868_v22  ;;  %v9055_v2 = vld [vmem:[#allocation2 + $0x6ac] sm:$0xf0] }
 0x127   :  { %2891 = vmatpush.bf16.msra.mxu1 %v6260_v42  ;;  %v5939_v3 = vld [vmem:[#allocation2 + $0x10] sm:$0xf]  ;;  %v6772_v15 = vor.u32 %v9055_v2, %v6771_v1  ;;  %v8899_v42 = vld [vmem:[#allocation2 + $0x1d4] sm:$0xf] }
 0x128   :  { %7492 = vmatmul.msk.bf16.vlgmr.msrb.gmra.mxu2 %vm2505_vm0, %v9848_v45  ;;  %v8847_v7 = vld [vmem:[#allocation2 + $0x2c] sm:$0xf0]  ;;  %v6168_v58 = vor.u32 %v8899_v42, %v6165_v43  ;;  %v6037_v42 = vld [vmem:[#allocation2 + $0xf0] sm:$0xf0] }
 0x129   :  { %2902 = vmatpush.bf16.msra.mxu2 %v6580_v34  ;;  %2878 = vmatpush.bf16.msra.mxu3 %v6004_v46  ;;  %v6195_v8 = vld [vmem:[#allocation2 + $0x210] sm:$0xf]  ;;  %v5940_v22 = vor.u32 %v8847_v7, %v5939_v3  ;;  %v8955_v7 = vld [vmem:[#allocation2 + $0x394] sm:$0xf] }
 0x12a   :  { %2915 = vmatpush.bf16.msra.mxu0 %v6836_v59  ;;  %v8911_v9 = vld [vmem:[#allocation2 + $0x22c] sm:$0xf0] }
 0x12b   :  { %v7187_v12 = vld [vmem:[#allocation2 + $0x9d0] sm:$0xf]  ;;  %2892 = vmatpush.bf16.msra.mxu1 %v6228_v63  ;;  %v6196_v19 = vor.u32 %v8911_v9, %v6195_v8  ;;  %v6389_v8 = vld [vmem:[#allocation2 + $0x3b0] sm:$0xf0]  ;;  %v6136_v9 = vor.u32 %v8891_v61, %v6133_v62 }
 0x12c   :  { %v7443_v13 = vld [vmem:[#allocation2 + $0xbd0] sm:$0xf]  ;;  %v8859_v62 = vld [vmem:[#allocation2 + $0x94] sm:$0xf] }
 0x12d   :  { %2903 = vmatpush.bf16.msra.mxu2 %v6548_v49  ;;  %v9223_v14 = vld [vmem:[#allocation2 + $0xbec] sm:$0xf0]  ;;  %2879 = vmatpush.bf16.msra.mxu3 %v5972_v6 }
 0x12e   :  { %2916 = vmatpush.bf16.msra.mxu0 %v6804_v56  ;;  %v9159_v16 = vld [vmem:[#allocation2 + $0x9ec] sm:$0xf0]  ;;  %v7444_v23 = vor.u32 %v9223_v14, %v7443_v13  ;;  %v6421_v56 = vld [vmem:[#allocation2 + $0x3f0] sm:$0xf0] }
 0x12f   :  { %v6483_v17 = vld [vmem:[#allocation2 + $0x450] sm:$0xf]  ;;  %v7188_v25 = vor.u32 %v9159_v16, %v7187_v12  ;;  %2893 = vmatpush.bf16.msra.mxu1 %v6196_v19  ;;  %v6424_v1 = vor.u32 %v8963_v54, %v6421_v56  ;;  %v8883_v12 = vld [vmem:[#allocation2 + $0x154] sm:$0xf] }
 0x130   :  { %v8983_v18 = vld [vmem:[#allocation2 + $0x46c] sm:$0xf0]  ;;  %v6101_v13 = vld [vmem:[#allocation2 + $0x170] sm:$0xf0]  ;;  %v2661_v56 = vpop.f32.mrf.mxu3 }
 0x131   :  { %v6739_v20 = vld [vmem:[#allocation2 + $0x650] sm:$0xf]  ;;  %2904 = vmatpush.bf16.msra.mxu2 %v6516_v11  ;;  %v6484_v26 = vor.u32 %v8983_v18, %v6483_v17  ;;  %2880 = vmatpush.bf16.msra.mxu3 %v5940_v22  ;;  %v2635_v22 = vpop.f32.mrf.mxu0 }
 0x132   :  { %v9047_v21 = vld [vmem:[#allocation2 + $0x66c] sm:$0xf0]  ;;  %2917 = vmatpush.bf16.msra.mxu0 %v6772_v15  ;;  %2894 = vmatmul.bf16.vlgmr.msra.gmra.mxu1 %v9841_v4  ;;  %v6392_v15 = vor.u32 %v8955_v7, %v6389_v8 }
 0x133   :  { %v7155_v24 = vld [vmem:[#allocation2 + $0x990] sm:$0xf]  ;;  %v6740_v32 = vor.u32 %v9047_v21, %v6739_v20  ;;  %2938 = vmatpush.bf16.msrb.mxu1 %v7444_v23  ;;  %v8947_v20 = vld [vmem:[#allocation2 + $0x354] sm:$0xf]  ;;  %v6104_v23 = vor.u32 %v8883_v12, %v6101_v13 }
 0x134   :  { %v9151_v27 = vld [vmem:[#allocation2 + $0x9ac] sm:$0xf0]  ;;  %2881 = vmatmul.bf16.vlgmr.msra.gmra.mxu3 %v9832_v55  ;;  %v6357_v21 = vld [vmem:[#allocation2 + $0x370] sm:$0xf0]  ;;  %v2674_v61 = vpop.f32.mrf.mxu2 }
 0x135   :  { %v7411_v28 = vld [vmem:[#allocation2 + $0xb90] sm:$0xf]  ;;  %2925 = vmatpush.bf16.msrb.mxu3 %v7188_v25  ;;  %2905 = vmatpush.bf16.msra.mxu2 %v6484_v26  ;;  %v7156_v44 = vor.u32 %v9151_v27, %v7155_v24  ;;  %v2636_v24 = vadd.f32 %v2635_v22, %v9897_v10  ;;  %v8875_v26 = vld [vmem:[#allocation2 + $0x114] sm:$0xf] }
 0x136   :  { %v9215_v29 = vld [vmem:[#allocation2 + $0xbac] sm:$0xf0]  ;;  %2918 = vmatpush.bf16.msra.mxu0 %v6740_v32  ;;  %v6069_v27 = vld [vmem:[#allocation2 + $0x130] sm:$0xf0] }
 0x137   :  { %v6451_v33 = vld [vmem:[#allocation2 + $0x410] sm:$0xf]  ;;  %v7412_v41 = vor.u32 %v9215_v29, %v7411_v28  ;;  %v6360_v29 = vor.u32 %v8947_v20, %v6357_v21  ;;  %v9027_v12 = vld [vmem:[#allocation2 + $0x5d4] sm:$0xf] }
 0x138   :  { %v8975_v34 = vld [vmem:[#allocation2 + $0x42c] sm:$0xf0]  ;;  %v5973_v20 = vld [vmem:[#allocation2 + $0x70] sm:$0xf0] }
 0x139   :  { %v6707_v36 = vld [vmem:[#allocation2 + $0x610] sm:$0xf]  ;;  %v6452_v46 = vor.u32 %v8975_v34, %v6451_v33  ;;  %2939 = vmatpush.bf16.msrb.mxu1 %v7412_v41  ;;  %2926 = vmatpush.bf16.msrb.mxu3 %v7156_v44  ;;  %v8867_v41 = vld [vmem:[#allocation2 + $0xd4] sm:$0xf] }
 0x13a   :  { %v9039_v37 = vld [vmem:[#allocation2 + $0x62c] sm:$0xf0]  ;;  %v6040_v54 = vor.u32 %v8867_v41, %v6037_v42  ;;  %v7189_v41 = vld [vmem:[#allocation2 + $0x9f0] sm:$0xf0] }
 0x13b   :  { %v7475_v59 = vld [vmem:[#allocation2 + $0xc10] sm:$0xf]  ;;  %v6708_v50 = vor.u32 %v9039_v37, %v6707_v36  ;;  %2906 = vmatpush.bf16.msra.mxu2 %v6452_v46  ;;  %v8939_v36 = vld [vmem:[#allocation2 + $0x314] sm:$0xf] }
 0x13c   :  { %v9231_v39 = vld [vmem:[#allocation2 + $0xc2c] sm:$0xf0]  ;;  %v6325_v37 = vld [vmem:[#allocation2 + $0x330] sm:$0xf0] }
 0x13d   :  { %v7123_v47 = vld [vmem:[#allocation2 + $0x950] sm:$0xf]  ;;  %v7476_v53 = vor.u32 %v9231_v39, %v7475_v59  ;;  %2919 = vmatpush.bf16.msra.mxu0 %v6708_v50  ;;  %v6072_v59 = vor.u32 %v8875_v26, %v6069_v27  ;;  %v2648_v39 = vpop.f32.mrf.mxu1  ;;  %v6328_v44 = vor.u32 %v8939_v36, %v6325_v37  ;;  %v8931_v50 = vld [vmem:[#allocation2 + $0x2d4] sm:$0xf] }
 0x13e   :  { %v7379_v48 = vld [vmem:[#allocation2 + $0xb50] sm:$0xf]  ;;  %2907 = vmatmul.bf16.vlgmr.msra.gmra.mxu2 %v9830_v51  ;;  %v2649_v10 = vadd.f32 %v2648_v39, %v2636_v24  ;;  %v6229_v26 = vld [vmem:[#allocation2 + $0x270] sm:$0xf0]  ;;  %v2676_v39 = vpop.f32.mrf.mxu2 }
 0x13f   :  { %v9207_v49 = vld [vmem:[#allocation2 + $0xb6c] sm:$0xf0]  ;;  %2958 = vmatpush.bf16.msrb.mxu2 %v7476_v53  ;;  %v2637_v53 = vpop.f32.mrf.mxu0  ;;  %v9019_v27 = vld [vmem:[#allocation2 + $0x594] sm:$0xf] }
 0x140   :  { %v9143_v52 = vld [vmem:[#allocation2 + $0x96c] sm:$0xf0]  ;;  %v7380_v60 = vor.u32 %v9207_v49, %v7379_v48  ;;  %2920 = vmatmul.bf16.vlgmr.msra.gmra.mxu0 %v9834_v57  ;;  %v8843_v37 = vld [vmem:[#allocation2 + $0x14] sm:$0xf] }
 0x141   :  { %v7124_v63 = vor.u32 %v9143_v52, %v7123_v47  ;;  %v7091_v2 = vld [vmem:[#allocation2 + $0x910] sm:$0xf]  ;;  %2964 = vmatpush.bf16.msrb.mxu0 %v6168_v58  ;;  %v6293_v52 = vld [vmem:[#allocation2 + $0x2f0] sm:$0xf0]  ;;  %v2662_v58 = vadd.f32 %v2661_v56, %v2649_v10 }
 0x142   :  { %v7347_v3 = vld [vmem:[#allocation2 + $0xb10] sm:$0xf]  ;;  %2940 = vmatpush.bf16.msrb.mxu1 %v7380_v60  ;;  %v9155_v10 = vld [vmem:[#allocation2 + $0x9d4] sm:$0xf] }
 0x143   :  { %v9199_v5 = vld [vmem:[#allocation2 + $0xb2c] sm:$0xf0]  ;;  %2927 = vmatpush.bf16.msrb.mxu3 %v7124_v63  ;;  %2977 = vmatpush.bf16.msra.mxu2 %v6424_v1  ;;  %v6005_v63 = vld [vmem:[#allocation2 + $0xb0] sm:$0xf0]  ;;  %v2675_v8 = vadd.f32 %v2674_v61, %v2662_v58  ;;  %v7192_v53 = vor.u32 %v9155_v10, %v7189_v41 }
 0x144   :  { %v9135_v6 = vld [vmem:[#allocation2 + $0x92c] sm:$0xf0]  ;;  %v7348_v11 = vor.u32 %v9199_v5, %v7347_v3  ;;  %v6296_v3 = vor.u32 %v8931_v50, %v6293_v52  ;;  %v6008_v13 = vor.u32 %v8859_v62, %v6005_v63  ;;  %v9075_v50 = vld [vmem:[#allocation2 + $0x754] sm:$0xf] }
 0x145   :  { %v7092_v14 = vor.u32 %v9135_v6, %v7091_v2  ;;  %v7059_v16 = vld [vmem:[#allocation2 + $0x8d0] sm:$0xf]  ;;  %2965 = vmatpush.bf16.msrb.mxu0 %v6136_v9  ;;  %v8923_v9 = vld [vmem:[#allocation2 + $0x294] sm:$0xf] }
 0x146   :  { %v7315_v17 = vld [vmem:[#allocation2 + $0xad0] sm:$0xf]  ;;  %2941 = vmatpush.bf16.msrb.mxu1 %v7348_v11  ;;  %v6261_v11 = vld [vmem:[#allocation2 + $0x2b0] sm:$0xf0] }
 0x147   :  { %v9191_v18 = vld [vmem:[#allocation2 + $0xaec] sm:$0xf0]  ;;  %2928 = vmatpush.bf16.msrb.mxu3 %v7092_v14  ;;  %2978 = vmatpush.bf16.msra.mxu2 %v6392_v15  ;;  %v6677_v14 = vld [vmem:[#allocation2 + $0x5f0] sm:$0xf0]  ;;  %v6264_v22 = vor.u32 %v8923_v9, %v6261_v11 }
 0x148   :  { %v9127_v19 = vld [vmem:[#allocation2 + $0x8ec] sm:$0xf0]  ;;  %v7316_v25 = vor.u32 %v9191_v18, %v7315_v17  ;;  %v9091_v15 = vld [vmem:[#allocation2 + $0x7d4] sm:$0xf]  ;;  %v2650_v17 = vpop.f32.mrf.mxu1 }
 0x149   :  { %v7060_v28 = vor.u32 %v9127_v19, %v7059_v16  ;;  %v7027_v31 = vld [vmem:[#allocation2 + $0x890] sm:$0xf]  ;;  %2966 = vmatpush.bf16.msrb.mxu0 %v6104_v23  ;;  %v6933_v16 = vld [vmem:[#allocation2 + $0x7f0] sm:$0xf0]  ;;  %v6680_v23 = vor.u32 %v9027_v12, %v6677_v14 }
 0x14a   :  { %v7283_v32 = vld [vmem:[#allocation2 + $0xa90] sm:$0xf]  ;;  %2942 = vmatpush.bf16.msrb.mxu1 %v7316_v25  ;;  %v8851_v19 = vld [vmem:[#allocation2 + $0x54] sm:$0xf]  ;;  %v6936_v24 = vor.u32 %v9091_v15, %v6933_v16 }
 0x14b   :  { %v9183_v33 = vld [vmem:[#allocation2 + $0xaac] sm:$0xf0]  ;;  %2929 = vmatpush.bf16.msrb.mxu3 %v7060_v28  ;;  %2979 = vmatpush.bf16.msra.mxu2 %v6360_v29  ;;  %v8915_v25 = vld [vmem:[#allocation2 + $0x254] sm:$0xf]  ;;  %v2687_v28 = vpop.f32.mrf.mxu0  ;;  %v5976_v29 = vor.u32 %v8851_v19, %v5973_v20 }
 0x14c   :  { %v9119_v34 = vld [vmem:[#allocation2 + $0x8ac] sm:$0xf0]  ;;  %v7284_v40 = vor.u32 %v9183_v33, %v7283_v32  ;;  %v9083_v32 = vld [vmem:[#allocation2 + $0x794] sm:$0xf]  ;;  %v9906_v36 = vadd.f32 %v2687_v28, %v2675_v8 }
 0x14d   :  { %v7028_v43 = vor.u32 %v9119_v34, %v7027_v31  ;;  %v6995_v46 = vld [vmem:[#allocation2 + $0x850] sm:$0xf]  ;;  %2967 = vmatpush.bf16.msrb.mxu0 %v6072_v59  ;;  %v6645_v31 = vld [vmem:[#allocation2 + $0x5b0] sm:$0xf0]  ;;  %v2663_v34 = vpop.f32.mrf.mxu3 }
 0x14e   :  { %v7251_v47 = vld [vmem:[#allocation2 + $0xa50] sm:$0xf]  ;;  %2943 = vmatpush.bf16.msrb.mxu1 %v7284_v40  ;;  %7493 = vmatmul.msk.bf16.vlgmr.msrb.gmra.mxu2 %vm2505_vm0, %v9848_v45  ;;  %v6901_v33 = vld [vmem:[#allocation2 + $0x7b0] sm:$0xf0]  ;;  %v6232_v40 = vor.u32 %v8915_v25, %v6229_v26  ;;  %v6648_v42 = vor.u32 %v9019_v27, %v6645_v31  ;;  %v531_v26 = vperm.slane %v9880_v0, 2 }
 0x14f   :  { %v9175_v48 = vld [vmem:[#allocation2 + $0xa6c] sm:$0xf0]  ;;  %2930 = vmatpush.bf16.msrb.mxu3 %v7028_v43  ;;  %2980 = vmatpush.bf16.msra.mxu2 %v6328_v44  ;;  %v5941_v59 = vld [vmem:[#allocation2 + $0x30] sm:$0xf0]  ;;  %v6904_v43 = vor.u32 %v9083_v32, %v6901_v33 }
 0x150   :  { %v9111_v49 = vld [vmem:[#allocation2 + $0x86c] sm:$0xf0]  ;;  %v7252_v60 = vor.u32 %v9175_v48, %v7251_v47  ;;  %v8907_v44 = vld [vmem:[#allocation2 + $0x214] sm:$0xf]  ;;  %v5944_v48 = vor.u32 %v8843_v37, %v5941_v59  ;;  %v2700_v39 = vpop.f32.mrf.mxu1 }
 0x151   :  { %v6963_v1 = vld [vmem:[#allocation2 + $0x810] sm:$0xf]  ;;  %v6996_v2 = vor.u32 %v9111_v49, %v6995_v46  ;;  %2968 = vmatpush.bf16.msrb.mxu0 %v6040_v54  ;;  %v6197_v46 = vld [vmem:[#allocation2 + $0x230] sm:$0xf0]  ;;  %v2701_v41 = vadd.f32 %v2700_v39, %v531_v26  ;;  %v6427_v26 = vld [vmem:[#allocation2 + $0x3d8] sm:$0xf] }
 0x152   :  { %v9103_v5 = vld [vmem:[#allocation2 + $0x82c] sm:$0xf0]  ;;  %2944 = vmatpush.bf16.msrb.mxu1 %v7252_v60  ;;  %v9011_v47 = vld [vmem:[#allocation2 + $0x554] sm:$0xf]  ;;  %v6200_v58 = vor.u32 %v8907_v44, %v6197_v46 }
 0x153   :  { %v7219_v6 = vld [vmem:[#allocation2 + $0xa10] sm:$0xf]  ;;  %2931 = vmatpush.bf16.msrb.mxu3 %v6996_v2  ;;  %2981 = vmatpush.bf16.msra.mxu2 %v6296_v3  ;;  %v6964_v21 = vor.u32 %v9103_v5, %v6963_v1  ;;  %v6613_v49 = vld [vmem:[#allocation2 + $0x570] sm:$0xf0]  ;;  %v2689_v2 = vpop.f32.mrf.mxu0 }
 0x154   :  { %v9167_v7 = vld [vmem:[#allocation2 + $0xa2c] sm:$0xf0]  ;;  %v6869_v52 = vld [vmem:[#allocation2 + $0x770] sm:$0xf0]  ;;  %v6616_v62 = vor.u32 %v9011_v47, %v6613_v49 }
 0x155   :  { %v7220_v18 = vor.u32 %v9167_v7, %v7219_v6  ;;  %2969 = vmatpush.bf16.msrb.mxu0 %v6008_v13  ;;  %v9219_v54 = vld [vmem:[#allocation2 + $0xbd4] sm:$0xf]  ;;  %v6872_v63 = vor.u32 %v9075_v50, %v6869_v52  ;;  %v2713_v52 = vpop.f32.mrf.mxu3 }
 0x156   :  { %v7445_v56 = vld [vmem:[#allocation2 + $0xbf0] sm:$0xf0] }
 0x157   :  { %2945 = vmatpush.bf16.msrb.mxu1 %v7220_v18  ;;  %2932 = vmatpush.bf16.msrb.mxu3 %v6964_v21  ;;  %v9147_v60 = vld [vmem:[#allocation2 + $0x994] sm:$0xf]  ;;  %v7448_v3 = vor.u32 %v9219_v54, %v7445_v56 }
 0x158   :  { %2982 = vmatpush.bf16.msra.mxu2 %v6264_v22  ;;  %v7157_v61 = vld [vmem:[#allocation2 + $0x9b0] sm:$0xf0] }
 0x159   :  { %2970 = vmatpush.bf16.msrb.mxu0 %v5976_v29  ;;  %v9003_v1 = vld [vmem:[#allocation2 + $0x514] sm:$0xf]  ;;  %v7160_v8 = vor.u32 %v9147_v60, %v7157_v61 }
 0x15a   :  { %2946 = vmatmul.bf16.vlgmr.msrb.gmra.mxu1 %v9860_v35  ;;  %2933 = vmatmul.bf16.vlgmr.msrb.gmra.mxu3 %v9858_v30  ;;  %v6581_v5 = vld [vmem:[#allocation2 + $0x530] sm:$0xf0] }
 0x15b   :  { %2990 = vmatpush.bf16.msra.mxu3 %v6680_v23  ;;  %3003 = vmatpush.bf16.msra.mxu1 %v6936_v24  ;;  %v9067_v6 = vld [vmem:[#allocation2 + $0x714] sm:$0xf]  ;;  %v6584_v14 = vor.u32 %v9003_v1, %v6581_v5  ;;  %v2726_v31 = vpop.f32.mrf.mxu0 }
 0x15c   :  { %2983 = vmatpush.bf16.msra.mxu2 %v6232_v40  ;;  %v6837_v7 = vld [vmem:[#allocation2 + $0x730] sm:$0xf0] }
 0x15d   :  { %2971 = vmatpush.bf16.msrb.mxu0 %v5944_v48  ;;  %v9211_v9 = vld [vmem:[#allocation2 + $0xb94] sm:$0xf]  ;;  %v6840_v15 = vor.u32 %v9067_v6, %v6837_v7 }
 0x15e   :  { %v7413_v11 = vld [vmem:[#allocation2 + $0xbb0] sm:$0xf0] }
 0x15f   :  { %2991 = vmatpush.bf16.msra.mxu3 %v6648_v42  ;;  %3004 = vmatpush.bf16.msra.mxu1 %v6904_v43  ;;  %v9139_v12 = vld [vmem:[#allocation2 + $0x954] sm:$0xf]  ;;  %v7416_v17 = vor.u32 %v9211_v9, %v7413_v11 }
 0x160   :  { %2984 = vmatpush.bf16.msra.mxu2 %v6200_v58  ;;  %v7125_v13 = vld [vmem:[#allocation2 + $0x970] sm:$0xf0]  ;;  %2972 = vmatmul.bf16.vlgmr.msrb.gmra.mxu0 %v9832_v55  ;;  %v2714_v58 = vadd.f32 %v2713_v52, %v2701_v41  ;;  %v9032_v41 = vld [vmem:[#allocation2 + $0x5f4] sm:$0xf0] }
 0x161   :  { %3016 = vmatpush.bf16.msra.mxu0 %v7192_v53  ;;  %v8995_v16 = vld [vmem:[#allocation2 + $0x4d4] sm:$0xf]  ;;  %v7128_v21 = vor.u32 %v9139_v12, %v7125_v13  ;;  %v2739_v12 = vpop.f32.mrf.mxu2  ;;  %v8888_v52 = vld [vmem:[#allocation2 + $0x174] sm:$0xf0] }
 0x162   :  { %v6549_v18 = vld [vmem:[#allocation2 + $0x4f0] sm:$0xf0]  ;;  %v2727_v6 = vadd.f32 %v2726_v31, %v2714_v58  ;;  %v9096_v58 = vld [vmem:[#allocation2 + $0x7f4] sm:$0xf0] }
 0x163   :  { %2992 = vmatpush.bf16.msra.mxu3 %v6616_v62  ;;  %3005 = vmatpush.bf16.msra.mxu1 %v6872_v63  ;;  %v9059_v19 = vld [vmem:[#allocation2 + $0x6d4] sm:$0xf]  ;;  %v6552_v27 = vor.u32 %v8995_v16, %v6549_v18  ;;  %v2728_v5 = vpop.f32.mrf.mxu0 }
 0x164   :  { %3029 = vmatpush.bf16.msrb.mxu2 %v7448_v3  ;;  %v6805_v20 = vld [vmem:[#allocation2 + $0x6f0] sm:$0xf0]  ;;  %v9913_v18 = vadd.f32 %v2739_v12, %v2727_v6  ;;  %v6075_v6 = vld [vmem:[#allocation2 + $0x118] sm:$0xf] }
 0x165   :  { %3017 = vmatpush.bf16.msra.mxu0 %v7160_v8  ;;  %v9203_v22 = vld [vmem:[#allocation2 + $0xb54] sm:$0xf]  ;;  %2985 = vmatmul.bf16.vlgmr.msra.gmra.mxu2 %v9841_v4  ;;  %v6808_v28 = vor.u32 %v9059_v19, %v6805_v20 }
 0x166   :  { %v7381_v23 = vld [vmem:[#allocation2 + $0xb70] sm:$0xf0] }
 0x167   :  { %v9131_v24 = vld [vmem:[#allocation2 + $0x914] sm:$0xf]  ;;  %2993 = vmatpush.bf16.msra.mxu3 %v6584_v14  ;;  %3006 = vmatpush.bf16.msra.mxu1 %v6840_v15  ;;  %v7384_v32 = vor.u32 %v9203_v22, %v7381_v23  ;;  %v6171_v14 = vld [vmem:[#allocation2 + $0x1d8] sm:$0xf] }
 0x168   :  { %v7093_v25 = vld [vmem:[#allocation2 + $0x930] sm:$0xf0]  ;;  %3030 = vmatpush.bf16.msrb.mxu2 %v7416_v17  ;;  %v8904_v15 = vld [vmem:[#allocation2 + $0x1f4] sm:$0xf0]  ;;  %v2702_v17 = vpop.f32.mrf.mxu1 }
 0x169   :  { %v8987_v29 = vld [vmem:[#allocation2 + $0x494] sm:$0xf]  ;;  %3018 = vmatpush.bf16.msra.mxu0 %v7128_v21  ;;  %v7096_v59 = vor.u32 %v9131_v24, %v7093_v25  ;;  %v6172_v25 = vor.u32 %v8904_v15, %v6171_v14  ;;  %v9016_v14 = vld [vmem:[#allocation2 + $0x574] sm:$0xf0] }
 0x16a   :  { %v6517_v33 = vld [vmem:[#allocation2 + $0x4b0] sm:$0xf0]  ;;  %v8944_v17 = vld [vmem:[#allocation2 + $0x334] sm:$0xf0] }
 0x16b   :  { %v9051_v34 = vld [vmem:[#allocation2 + $0x694] sm:$0xf]  ;;  %2994 = vmatpush.bf16.msra.mxu3 %v6552_v27  ;;  %3007 = vmatpush.bf16.msra.mxu1 %v6808_v28  ;;  %v6520_v0 = vor.u32 %v8987_v29, %v6517_v33  ;;  %v8968_v27 = vld [vmem:[#allocation2 + $0x3f4] sm:$0xf0] }
 0x16c   :  { %v6773_v37 = vld [vmem:[#allocation2 + $0x6b0] sm:$0xf0]  ;;  %3031 = vmatpush.bf16.msrb.mxu2 %v7384_v32  ;;  %v6139_v33 = vld [vmem:[#allocation2 + $0x198] sm:$0xf] }
 0x16d   :  { %v9195_v40 = vld [vmem:[#allocation2 + $0xb14] sm:$0xf]  ;;  %v6776_v44 = vor.u32 %v9051_v34, %v6773_v37  ;;  %3019 = vmatpush.bf16.msra.mxu0 %v7096_v59  ;;  %v8896_v34 = vld [vmem:[#allocation2 + $0x1b4] sm:$0xf0]  ;;  %v2715_v37 = vpop.f32.mrf.mxu3 }
 0x16e   :  { %v7349_v10 = vld [vmem:[#allocation2 + $0xb30] sm:$0xf0] }
 0x16f   :  { %v9123_v42 = vld [vmem:[#allocation2 + $0x8d4] sm:$0xf]  ;;  %v7352_v47 = vor.u32 %v9195_v40, %v7349_v10  ;;  %2995 = vmatpush.bf16.msra.mxu3 %v6520_v0  ;;  %3008 = vmatpush.bf16.msra.mxu1 %v6776_v44  ;;  %v6428_v40 = vor.u32 %v8968_v27, %v6427_v26  ;;  %v6683_v10 = vld [vmem:[#allocation2 + $0x5d8] sm:$0xf] }
 0x170   :  { %v7061_v43 = vld [vmem:[#allocation2 + $0x8f0] sm:$0xf0]  ;;  %v6395_v0 = vld [vmem:[#allocation2 + $0x398] sm:$0xf] }
 0x171   :  { %v8979_v46 = vld [vmem:[#allocation2 + $0x454] sm:$0xf]  ;;  %v7064_v53 = vor.u32 %v9123_v42, %v7061_v43  ;;  %3032 = vmatpush.bf16.msrb.mxu2 %v7352_v47  ;;  %v6140_v43 = vor.u32 %v8896_v34, %v6139_v33  ;;  %v8960_v44 = vld [vmem:[#allocation2 + $0x3b4] sm:$0xf0]  ;;  %v9915_v47 = vpop.f32.mrf.mxu0 }
 0x172   :  { %v6485_v48 = vld [vmem:[#allocation2 + $0x470] sm:$0xf0]  ;;  %v9080_v26 = vld [vmem:[#allocation2 + $0x774] sm:$0xf0] }
 0x173   :  { %v9043_v49 = vld [vmem:[#allocation2 + $0x654] sm:$0xf]  ;;  %v6488_v62 = vor.u32 %v8979_v46, %v6485_v48  ;;  %3020 = vmatpush.bf16.msra.mxu0 %v7064_v53  ;;  %v2741_v53 = vpop.f32.mrf.mxu2  ;;  %v6299_v33 = vld [vmem:[#allocation2 + $0x2d8] sm:$0xf] }
 0x174   :  { %v6741_v50 = vld [vmem:[#allocation2 + $0x670] sm:$0xf0]  ;;  %v8936_v34 = vld [vmem:[#allocation2 + $0x2f4] sm:$0xf0] }
 0x175   :  { %v9187_v54 = vld [vmem:[#allocation2 + $0xad4] sm:$0xf]  ;;  %v6744_v63 = vor.u32 %v9043_v49, %v6741_v50  ;;  %2996 = vmatpush.bf16.msra.mxu3 %v6488_v62  ;;  %v6107_v50 = vld [vmem:[#allocation2 + $0x158] sm:$0xf] }
 0x176   :  { %v7317_v56 = vld [vmem:[#allocation2 + $0xaf0] sm:$0xf0]  ;;  %v9024_v62 = vld [vmem:[#allocation2 + $0x5b4] sm:$0xf0] }
 0x177   :  { %v9115_v60 = vld [vmem:[#allocation2 + $0x894] sm:$0xf]  ;;  %v7320_v7 = vor.u32 %v9187_v54, %v7317_v56  ;;  %3009 = vmatpush.bf16.msra.mxu1 %v6744_v63  ;;  %v6684_v54 = vor.u32 %v9032_v41, %v6683_v10  ;;  %v6939_v56 = vld [vmem:[#allocation2 + $0x7d8] sm:$0xf] }
 0x178   :  { %v7029_v61 = vld [vmem:[#allocation2 + $0x8b0] sm:$0xf0]  ;;  %v6940_v5 = vor.u32 %v9096_v58, %v6939_v56  ;;  %v6843_v10 = vld [vmem:[#allocation2 + $0x718] sm:$0xf] }
 0x179   :  { %v8971_v1 = vld [vmem:[#allocation2 + $0x414] sm:$0xf]  ;;  %v7032_v13 = vor.u32 %v9115_v60, %v7029_v61  ;;  %3033 = vmatpush.bf16.msrb.mxu2 %v7320_v7  ;;  %v6396_v60 = vor.u32 %v8960_v44, %v6395_v0  ;;  %v6651_v61 = vld [vmem:[#allocation2 + $0x598] sm:$0xf] }
 0x17a   :  { %v6453_v2 = vld [vmem:[#allocation2 + $0x430] sm:$0xf0]  ;;  %v8880_v7 = vld [vmem:[#allocation2 + $0x134] sm:$0xf0] }
 0x17b   :  { %v9035_v3 = vld [vmem:[#allocation2 + $0x614] sm:$0xf]  ;;  %v6456_v22 = vor.u32 %v8971_v1, %v6453_v2  ;;  %3021 = vmatpush.bf16.msra.mxu0 %v7032_v13  ;;  %v6108_v1 = vor.u32 %v8888_v52, %v6107_v50  ;;  %v6363_v2 = vld [vmem:[#allocation2 + $0x358] sm:$0xf]  ;;  %v6076_v15 = vor.u32 %v8880_v7, %v6075_v6  ;;  %v2791_v7 = vpop.f32.mrf.mxu2 }
 0x17c   :  { %v6709_v8 = vld [vmem:[#allocation2 + $0x630] sm:$0xf0]  ;;  %v6619_v13 = vld [vmem:[#allocation2 + $0x558] sm:$0xf] }
 0x17d   :  { %v9179_v9 = vld [vmem:[#allocation2 + $0xa94] sm:$0xf]  ;;  %v6712_v23 = vor.u32 %v9035_v3, %v6709_v8  ;;  %2997 = vmatpush.bf16.msra.mxu3 %v6456_v22  ;;  %v8952_v3 = vld [vmem:[#allocation2 + $0x374] sm:$0xf0]  ;;  %v6652_v8 = vor.u32 %v9024_v62, %v6651_v61 }
 0x17e   :  { %v7285_v11 = vld [vmem:[#allocation2 + $0xab0] sm:$0xf0]  ;;  %v6364_v12 = vor.u32 %v8952_v3, %v6363_v2  ;;  %v8872_v22 = vld [vmem:[#allocation2 + $0xf4] sm:$0xf0] }
 0x17f   :  { %v9107_v16 = vld [vmem:[#allocation2 + $0x854] sm:$0xf]  ;;  %v7288_v24 = vor.u32 %v9179_v9, %v7285_v11  ;;  %3010 = vmatpush.bf16.msra.mxu1 %v6712_v23  ;;  %v6907_v9 = vld [vmem:[#allocation2 + $0x798] sm:$0xf]  ;;  %v2752_v23 = vpop.f32.mrf.mxu1 }
 0x180   :  { %v6997_v19 = vld [vmem:[#allocation2 + $0x870] sm:$0xf0]  ;;  %2998 = vmatmul.bf16.vlgmr.msra.gmra.mxu3 %v9830_v51  ;;  %v9088_v11 = vld [vmem:[#allocation2 + $0x7b4] sm:$0xf0]  ;;  %v2753_v27 = vadd.f32 %v2752_v23, %v9913_v18  ;;  %v6300_v18 = vor.u32 %v8936_v34, %v6299_v33 }
 0x181   :  { %v9227_v20 = vld [vmem:[#allocation2 + $0xc14] sm:$0xf]  ;;  %v7000_v29 = vor.u32 %v9107_v16, %v6997_v19  ;;  %3034 = vmatpush.bf16.msrb.mxu2 %v7288_v24  ;;  %v6331_v16 = vld [vmem:[#allocation2 + $0x318] sm:$0xf]  ;;  %v2780_v19 = vpop.f32.mrf.mxu0  ;;  %v6620_v24 = vor.u32 %v9016_v14, %v6619_v13 }
 0x182   :  { %v7477_v21 = vld [vmem:[#allocation2 + $0xc30] sm:$0xf0]  ;;  %3011 = vmatmul.bf16.vlgmr.msra.gmra.mxu1 %v9834_v57  ;;  %v9072_v41 = vld [vmem:[#allocation2 + $0x734] sm:$0xf0] }
 0x183   :  { %v9171_v28 = vld [vmem:[#allocation2 + $0xa54] sm:$0xf]  ;;  %v7480_v31 = vor.u32 %v9227_v20, %v7477_v21  ;;  %3055 = vmatpush.bf16.msrb.mxu1 %v6172_v25  ;;  %3022 = vmatpush.bf16.msra.mxu0 %v7000_v29  ;;  %v6908_v20 = vor.u32 %v9088_v11, %v6907_v9  ;;  %v6043_v21 = vld [vmem:[#allocation2 + $0xd8] sm:$0xf]  ;;  %v6844_v50 = vor.u32 %v9072_v41, %v6843_v10 }
 0x184   :  { %v7253_v32 = vld [vmem:[#allocation2 + $0xa70] sm:$0xf0]  ;;  %v6875_v25 = vld [vmem:[#allocation2 + $0x758] sm:$0xf] }
 0x185   :  { %v9099_v59 = vld [vmem:[#allocation2 + $0x814] sm:$0xf]  ;;  %v7256_v42 = vor.u32 %v9171_v28, %v7253_v32  ;;  %3049 = vmatpush.bf16.msrb.mxu3 %v7480_v31  ;;  %v6332_v28 = vor.u32 %v8944_v17, %v6331_v16  ;;  %v6587_v29 = vld [vmem:[#allocation2 + $0x518] sm:$0xf]  ;;  %v6044_v32 = vor.u32 %v8872_v22, %v6043_v21  ;;  %v6876_v37 = vor.u32 %v9080_v26, %v6875_v25 }
 0x186   :  { %v6965_v39 = vld [vmem:[#allocation2 + $0x830] sm:$0xf0]  ;;  %v9008_v31 = vld [vmem:[#allocation2 + $0x534] sm:$0xf0] }
 0x187   :  { %v9163_v46 = vld [vmem:[#allocation2 + $0xa14] sm:$0xf]  ;;  %v6968_v48 = vor.u32 %v9099_v59, %v6965_v39  ;;  %3035 = vmatpush.bf16.msrb.mxu2 %v7256_v42  ;;  %3056 = vmatpush.bf16.msrb.mxu1 %v6140_v43  ;;  %v6011_v59 = vld [vmem:[#allocation2 + $0x98] sm:$0xf] }
 0x188   :  { %v7221_v49 = vld [vmem:[#allocation2 + $0xa30] sm:$0xf0]  ;;  %v8864_v39 = vld [vmem:[#allocation2 + $0xb4] sm:$0xf0] }
 0x189   :  { %3068 = vmatpush.bf16.msra.mxu3 %v6428_v40  ;;  %v7224_v63 = vor.u32 %v9163_v46, %v7221_v49  ;;  %3023 = vmatpush.bf16.msra.mxu0 %v6968_v48  ;;  %v6588_v40 = vor.u32 %v9008_v31, %v6587_v29  ;;  %v6555_v42 = vld [vmem:[#allocation2 + $0x4d8] sm:$0xf]  ;;  %v6012_v0 = vor.u32 %v8864_v39, %v6011_v59  ;;  %v2804_v48 = vpop.f32.mrf.mxu0  ;;  %v2765_v49 = vpop.f32.mrf.mxu3 }
 0x18a   :  { %v9000_v43 = vld [vmem:[#allocation2 + $0x4f4] sm:$0xf0]  ;;  %v2766_v58 = vadd.f32 %v2765_v49, %v2753_v27 }
 0x18b   :  { %3036 = vmatpush.bf16.msrb.mxu2 %v7224_v63  ;;  %3057 = vmatpush.bf16.msrb.mxu1 %v6108_v1  ;;  %v6267_v44 = vld [vmem:[#allocation2 + $0x298] sm:$0xf]  ;;  %v2754_v63 = vpop.f32.mrf.mxu1 }
 0x18c   :  { %3024 = vmatmul.bf16.vlgmr.msra.gmra.mxu0 %v9858_v30  ;;  %v8928_v46 = vld [vmem:[#allocation2 + $0x2b4] sm:$0xf0]  ;;  %v6173_v63 = vld [vmem:[#allocation2 + $0x1f8] sm:$0xf0] }
 0x18d   :  { %3081 = vmatpush.bf16.msrb.mxu0 %v6684_v54  ;;  %3069 = vmatpush.bf16.msra.mxu3 %v6396_v60  ;;  %v5979_v52 = vld [vmem:[#allocation2 + $0x58] sm:$0xf]  ;;  %v9922_v54 = vld [vmem:[#allocation4] sm:$0xff]  ;;  %v6556_v60 = vor.u32 %v9000_v43, %v6555_v42  ;;  %v6268_v1 = vor.u32 %v8928_v46, %v6267_v44  ;;  %v2793_v43 = vpop.f32.mrf.mxu2 }
 0x18e   :  { %3037 = vmatmul.bf16.vlgmr.msrb.gmra.mxu2 %v9860_v35  ;;  %v8856_v53 = vld [vmem:[#allocation2 + $0x74] sm:$0xf0]  ;;  %v532_v56 = vperm.slane %v9922_v54, 3  ;;  %v8876_v43 = vld [vmem:[#allocation2 + $0x11c] sm:$0xf] }
 0x18f   :  { %3094 = vmatpush.bf16.msra.mxu2 %v6940_v5  ;;  %3058 = vmatpush.bf16.msrb.mxu1 %v6076_v15  ;;  %v6811_v61 = vld [vmem:[#allocation2 + $0x6d8] sm:$0xf]  ;;  %v9928_v5 = vadd.f32 %v9915_v47, %v2766_v58  ;;  %v5980_v6 = vor.u32 %v8856_v53, %v5979_v52 }
 0x190   :  { %7494 = vmatmul.msk.bf16.vlgmr.msrb.gmra.mxu3 %vm2505_vm0, %v9848_v45  ;;  %v9064_v62 = vld [vmem:[#allocation2 + $0x6f4] sm:$0xf0] }
 0x191   :  { %3082 = vmatpush.bf16.msrb.mxu0 %v6652_v8  ;;  %3070 = vmatpush.bf16.msra.mxu3 %v6364_v12  ;;  %v6523_v2 = vld [vmem:[#allocation2 + $0x498] sm:$0xf]  ;;  %v6812_v11 = vor.u32 %v9064_v62, %v6811_v61  ;;  %v2792_v12 = vadd.f32 %v2791_v7, %v532_v56  ;;  %v2806_v27 = vpop.f32.mrf.mxu0  ;;  %v2767_v34 = vpop.f32.mrf.mxu3  ;;  %v8900_v62 = vld [vmem:[#allocation2 + $0x1dc] sm:$0xf] }
 0x192   :  { %v8992_v3 = vld [vmem:[#allocation2 + $0x4b4] sm:$0xf0]  ;;  %v8948_v34 = vld [vmem:[#allocation2 + $0x35c] sm:$0xf] }
 0x193   :  { %3095 = vmatpush.bf16.msra.mxu2 %v6908_v20  ;;  %3059 = vmatpush.bf16.msrb.mxu1 %v6044_v32  ;;  %v6235_v8 = vld [vmem:[#allocation2 + $0x258] sm:$0xf]  ;;  %v6524_v16 = vor.u32 %v8992_v3, %v6523_v2  ;;  %v9930_v23 = vadd.f32 %v2804_v48, %v2792_v12  ;;  %v8964_v2 = vld [vmem:[#allocation2 + $0x3dc] sm:$0xf]  ;;  %v2817_v27 = vpop.f32.mrf.mxu1 }
 0x194   :  { %v8920_v9 = vld [vmem:[#allocation2 + $0x274] sm:$0xf0]  ;;  %v6429_v3 = vld [vmem:[#allocation2 + $0x3f8] sm:$0xf0] }
 0x195   :  { %3083 = vmatpush.bf16.msrb.mxu0 %v6620_v24  ;;  %3071 = vmatpush.bf16.msra.mxu3 %v6332_v28  ;;  %v5947_v13 = vld [vmem:[#allocation2 + $0x18] sm:$0xf]  ;;  %v6236_v21 = vor.u32 %v8920_v9, %v6235_v8 }
 0x196   :  { %v8848_v14 = vld [vmem:[#allocation2 + $0x34] sm:$0xf0] }
 0x197   :  { %3096 = vmatpush.bf16.msra.mxu2 %v6876_v37  ;;  %3060 = vmatpush.bf16.msrb.mxu1 %v6012_v0  ;;  %v6779_v15 = vld [vmem:[#allocation2 + $0x698] sm:$0xf]  ;;  %v5948_v24 = vor.u32 %v8848_v14, %v5947_v13  ;;  %v6432_v14 = vor.u32 %v8964_v2, %v6429_v3 }
 0x198   :  { %v9056_v17 = vld [vmem:[#allocation2 + $0x6b4] sm:$0xf0] }
 0x199   :  { %3084 = vmatpush.bf16.msrb.mxu0 %v6588_v40  ;;  %3072 = vmatpush.bf16.msra.mxu3 %v6300_v18  ;;  %v7195_v19 = vld [vmem:[#allocation2 + $0x9d8] sm:$0xf]  ;;  %v6780_v28 = vor.u32 %v9056_v17, %v6779_v15  ;;  %v8892_v15 = vld [vmem:[#allocation2 + $0x19c] sm:$0xf] }
 0x19a   :  { %v9160_v20 = vld [vmem:[#allocation2 + $0x9f4] sm:$0xf0] }
 0x19b   :  { %3097 = vmatpush.bf16.msra.mxu2 %v6844_v50  ;;  %v6491_v47 = vld [vmem:[#allocation2 + $0x458] sm:$0xf]  ;;  %3061 = vmatpush.bf16.msrb.mxu1 %v5980_v6  ;;  %v7196_v29 = vor.u32 %v9160_v20, %v7195_v19  ;;  %v8956_v19 = vld [vmem:[#allocation2 + $0x39c] sm:$0xf]  ;;  %v2819_v2 = vpop.f32.mrf.mxu1  ;;  %v2843_v3 = vpop.f32.mrf.mxu2 }
 0x19c   :  { %v8984_v22 = vld [vmem:[#allocation2 + $0x474] sm:$0xf0]  ;;  %v6397_v20 = vld [vmem:[#allocation2 + $0x3b8] sm:$0xf0] }
 0x19d   :  { %3085 = vmatpush.bf16.msrb.mxu0 %v6556_v60  ;;  %3073 = vmatpush.bf16.msra.mxu3 %v6268_v1  ;;  %v6203_v25 = vld [vmem:[#allocation2 + $0x218] sm:$0xf]  ;;  %v6492_v37 = vor.u32 %v8984_v22, %v6491_v47 }
 0x19e   :  { %v8912_v26 = vld [vmem:[#allocation2 + $0x234] sm:$0xf0] }
 0x19f   :  { %3098 = vmatpush.bf16.msra.mxu2 %v6812_v11  ;;  %v7451_v31 = vld [vmem:[#allocation2 + $0xbd8] sm:$0xf]  ;;  %v6204_v10 = vor.u32 %v8912_v26, %v6203_v25  ;;  %3062 = vmatpush.bf16.msrb.mxu1 %v5948_v24  ;;  %v6176_v11 = vor.u32 %v8900_v62, %v6173_v63  ;;  %v8868_v63 = vld [vmem:[#allocation2 + $0xdc] sm:$0xf] }
 0x1a0   :  { %v9224_v32 = vld [vmem:[#allocation2 + $0xbf4] sm:$0xf0] }
 0x1a1   :  { %v6747_v33 = vld [vmem:[#allocation2 + $0x658] sm:$0xf]  ;;  %3086 = vmatpush.bf16.msrb.mxu0 %v6524_v16  ;;  %3074 = vmatpush.bf16.msra.mxu3 %v6236_v21  ;;  %v7452_v42 = vor.u32 %v9224_v32, %v7451_v31  ;;  %v6141_v16 = vld [vmem:[#allocation2 + $0x1b8] sm:$0xf0]  ;;  %v2818_v32 = vadd.f32 %v2817_v27, %v9930_v23 }
 0x1a2   :  { %v9048_v59 = vld [vmem:[#allocation2 + $0x674] sm:$0xf0]  ;;  %3063 = vmatmul.bf16.vlgmr.msrb.gmra.mxu1 %v9832_v55  ;;  %v6144_v24 = vor.u32 %v8892_v15, %v6141_v16  ;;  %v6109_v31 = vld [vmem:[#allocation2 + $0x178] sm:$0xf0] }
 0x1a3   :  { %v7163_v39 = vld [vmem:[#allocation2 + $0x998] sm:$0xf]  ;;  %3099 = vmatpush.bf16.msra.mxu2 %v6780_v28  ;;  %3107 = vmatpush.bf16.msra.mxu1 %v7196_v29  ;;  %v6748_v46 = vor.u32 %v9048_v59, %v6747_v33  ;;  %v6400_v28 = vor.u32 %v8956_v19, %v6397_v20  ;;  %v8884_v29 = vld [vmem:[#allocation2 + $0x15c] sm:$0xf] }
 0x1a4   :  { %v9152_v40 = vld [vmem:[#allocation2 + $0x9b4] sm:$0xf0] }
 0x1a5   :  { %v6459_v41 = vld [vmem:[#allocation2 + $0x418] sm:$0xf]  ;;  %v7164_v48 = vor.u32 %v9152_v40, %v7163_v39  ;;  %3087 = vmatpush.bf16.msrb.mxu0 %v6492_v37  ;;  %3075 = vmatpush.bf16.msra.mxu3 %v6204_v10  ;;  %v6365_v37 = vld [vmem:[#allocation2 + $0x378] sm:$0xf0]  ;;  %v6112_v10 = vor.u32 %v8884_v29, %v6109_v31 }
 0x1a6   :  { %v8976_v18 = vld [vmem:[#allocation2 + $0x434] sm:$0xf0] }
 0x1a7   :  { %v7483_v0 = vld [vmem:[#allocation2 + $0xc18] sm:$0xf]  ;;  %v6460_v53 = vor.u32 %v8976_v18, %v6459_v41  ;;  %3100 = vmatpush.bf16.msra.mxu2 %v6748_v46  ;;  %3108 = vmatpush.bf16.msra.mxu1 %v7164_v48  ;;  %v6333_v46 = vld [vmem:[#allocation2 + $0x338] sm:$0xf0] }
 0x1a8   :  { %v9232_v44 = vld [vmem:[#allocation2 + $0xc34] sm:$0xf0]  ;;  %3076 = vmatmul.bf16.vlgmr.msra.gmra.mxu3 %v9841_v4 }
 0x1a9   :  { %v7419_v49 = vld [vmem:[#allocation2 + $0xb98] sm:$0xf]  ;;  %v7484_v61 = vor.u32 %v9232_v44, %v7483_v0  ;;  %3120 = vmatpush.bf16.msrb.mxu3 %v7452_v42  ;;  %3088 = vmatpush.bf16.msrb.mxu0 %v6460_v53  ;;  %v6368_v42 = vor.u32 %v8948_v34, %v6365_v37  ;;  %v6077_v0 = vld [vmem:[#allocation2 + $0x138] sm:$0xf0] }
 0x1aa   :  { %v9216_v50 = vld [vmem:[#allocation2 + $0xbb4] sm:$0xf0]  ;;  %v8940_v44 = vld [vmem:[#allocation2 + $0x31c] sm:$0xf]  ;;  %v6080_v53 = vor.u32 %v8876_v43, %v6077_v0 }
 0x1ab   :  { %v6715_v52 = vld [vmem:[#allocation2 + $0x618] sm:$0xf]  ;;  %v7420_v1 = vor.u32 %v9216_v50, %v7419_v49  ;;  %v6336_v62 = vor.u32 %v8940_v44, %v6333_v46  ;;  %v6941_v34 = vld [vmem:[#allocation2 + $0x7f8] sm:$0xf0] }
 0x1ac   :  { %v9040_v56 = vld [vmem:[#allocation2 + $0x634] sm:$0xf0]  ;;  %3089 = vmatmul.bf16.vlgmr.msrb.gmra.mxu0 %v9830_v51  ;;  %v8852_v37 = vld [vmem:[#allocation2 + $0x5c] sm:$0xf] }
 0x1ad   :  { %v7131_v58 = vld [vmem:[#allocation2 + $0x958] sm:$0xf]  ;;  %v6716_v6 = vor.u32 %v9040_v56, %v6715_v52  ;;  %3140 = vmatpush.bf16.msra.mxu0 %v7484_v61  ;;  %3121 = vmatpush.bf16.msrb.mxu3 %v7420_v1  ;;  %v2830_v52 = vpop.f32.mrf.mxu3  ;;  %v2856_v56 = vpop.f32.mrf.mxu0  ;;  %v6045_v1 = vld [vmem:[#allocation2 + $0xf8] sm:$0xf0] }
 0x1ae   :  { %v9144_v60 = vld [vmem:[#allocation2 + $0x974] sm:$0xf0]  ;;  %v2831_v61 = vadd.f32 %v2830_v52, %v2818_v32  ;;  %v8916_v0 = vld [vmem:[#allocation2 + $0x25c] sm:$0xf] }
 0x1af   :  { %v7132_v7 = vor.u32 %v9144_v60, %v7131_v58  ;;  %v7387_v8 = vld [vmem:[#allocation2 + $0xb58] sm:$0xf]  ;;  %3101 = vmatpush.bf16.msra.mxu2 %v6716_v6  ;;  %v9084_v46 = vld [vmem:[#allocation2 + $0x79c] sm:$0xf] }
 0x1b0   :  { %v9208_v9 = vld [vmem:[#allocation2 + $0xb74] sm:$0xf0]  ;;  %v8844_v52 = vld [vmem:[#allocation2 + $0x1c] sm:$0xf] }
 0x1b1   :  { %v7099_v12 = vld [vmem:[#allocation2 + $0x918] sm:$0xf]  ;;  %v7388_v17 = vor.u32 %v9208_v9, %v7387_v8  ;;  %3109 = vmatpush.bf16.msra.mxu1 %v7132_v7  ;;  %3159 = vmatpush.bf16.msrb.mxu0 %v6432_v14  ;;  %v8932_v7 = vld [vmem:[#allocation2 + $0x2dc] sm:$0xf]  ;;  %v2844_v9 = vadd.f32 %v2843_v3, %v2831_v61  ;;  %v6048_v14 = vor.u32 %v8868_v63, %v6045_v1 }
 0x1b2   :  { %v9136_v13 = vld [vmem:[#allocation2 + $0x934] sm:$0xf0]  ;;  %3102 = vmatmul.bf16.vlgmr.msra.gmra.mxu2 %v9834_v57  ;;  %v6301_v8 = vld [vmem:[#allocation2 + $0x2f8] sm:$0xf0] }
 0x1b3   :  { %v7100_v21 = vor.u32 %v9136_v13, %v7099_v12  ;;  %v7355_v47 = vld [vmem:[#allocation2 + $0xb18] sm:$0xf]  ;;  %3146 = vmatpush.bf16.msrb.mxu2 %v6176_v11  ;;  %3122 = vmatpush.bf16.msrb.mxu3 %v7388_v17  ;;  %v8860_v17 = vld [vmem:[#allocation2 + $0x9c] sm:$0xf]  ;;  %v9937_v19 = vadd.f32 %v2856_v56, %v2844_v9  ;;  %v6304_v20 = vor.u32 %v8932_v7, %v6301_v8 }
 0x1b4   :  { %v9200_v22 = vld [vmem:[#allocation2 + $0xb34] sm:$0xf0]  ;;  %v6621_v61 = vld [vmem:[#allocation2 + $0x578] sm:$0xf0] }
 0x1b5   :  { %v7067_v25 = vld [vmem:[#allocation2 + $0x8d8] sm:$0xf]  ;;  %v7356_v33 = vor.u32 %v9200_v22, %v7355_v47  ;;  %3110 = vmatpush.bf16.msra.mxu1 %v7100_v21  ;;  %3160 = vmatpush.bf16.msrb.mxu0 %v6400_v28  ;;  %v6013_v21 = vld [vmem:[#allocation2 + $0xb8] sm:$0xf0] }
 0x1b6   :  { %v9128_v26 = vld [vmem:[#allocation2 + $0x8f4] sm:$0xf0]  ;;  %v9028_v47 = vld [vmem:[#allocation2 + $0x5dc] sm:$0xf]  ;;  %v6016_v31 = vor.u32 %v8860_v17, %v6013_v21 }
 0x1b7   :  { %v7068_v59 = vor.u32 %v9128_v26, %v7067_v25  ;;  %v7323_v39 = vld [vmem:[#allocation2 + $0xad8] sm:$0xf]  ;;  %3147 = vmatpush.bf16.msrb.mxu2 %v6144_v24  ;;  %3123 = vmatpush.bf16.msrb.mxu3 %v7356_v33  ;;  %v6685_v22 = vld [vmem:[#allocation2 + $0x5f8] sm:$0xf0] }
 0x1b8   :  { %v9192_v40 = vld [vmem:[#allocation2 + $0xaf4] sm:$0xf0]  ;;  %v8924_v25 = vld [vmem:[#allocation2 + $0x29c] sm:$0xf]  ;;  %v6688_v32 = vor.u32 %v9028_v47, %v6685_v22 }
 0x1b9   :  { %v7035_v41 = vld [vmem:[#allocation2 + $0x898] sm:$0xf]  ;;  %v7324_v23 = vor.u32 %v9192_v40, %v7323_v39  ;;  %3111 = vmatpush.bf16.msra.mxu1 %v7068_v59  ;;  %3161 = vmatpush.bf16.msrb.mxu0 %v6368_v42  ;;  %v6269_v26 = vld [vmem:[#allocation2 + $0x2b8] sm:$0xf0]  ;;  %v2832_v59 = vpop.f32.mrf.mxu3  ;;  %v2858_v39 = vpop.f32.mrf.mxu0 }
 0x1ba   :  { %v9120_v18 = vld [vmem:[#allocation2 + $0x8b4] sm:$0xf0]  ;;  %v9092_v33 = vld [vmem:[#allocation2 + $0x7dc] sm:$0xf]  ;;  %v6272_v40 = vor.u32 %v8924_v25, %v6269_v26  ;;  %v2845_v42 = vpop.f32.mrf.mxu2 }
 0x1bb   :  { %v7036_v48 = vor.u32 %v9120_v18, %v7035_v41  ;;  %v7291_v49 = vld [vmem:[#allocation2 + $0xa98] sm:$0xf]  ;;  %3148 = vmatpush.bf16.msrb.mxu2 %v6112_v10  ;;  %3124 = vmatpush.bf16.msrb.mxu3 %v7324_v23  ;;  %v5981_v10 = vld [vmem:[#allocation2 + $0x78] sm:$0xf0]  ;;  %v6944_v44 = vor.u32 %v9092_v33, %v6941_v34 }
 0x1bc   :  { %v9184_v50 = vld [vmem:[#allocation2 + $0xab4] sm:$0xf0]  ;;  %7495 = vmatmul.msk.bf16.vlgmr.msra.gmra.mxu0 %vm2505_vm0, %v9848_v45  ;;  %v9020_v41 = vld [vmem:[#allocation2 + $0x59c] sm:$0xf] }
 0x1bd   :  { %v7003_v58 = vld [vmem:[#allocation2 + $0x858] sm:$0xf]  ;;  %v7292_v6 = vor.u32 %v9184_v50, %v7291_v49  ;;  %3112 = vmatpush.bf16.msra.mxu1 %v7036_v48  ;;  %3162 = vmatpush.bf16.msrb.mxu0 %v6336_v62  ;;  %v6653_v18 = vld [vmem:[#allocation2 + $0x5b8] sm:$0xf0]  ;;  %v5984_v48 = vor.u32 %v8852_v37, %v5981_v10  ;;  %v9945_v37 = vpop.f32.mrf.mxu1 }
 0x1be   :  { %v9112_v60 = vld [vmem:[#allocation2 + $0x874] sm:$0xf0]  ;;  %v6237_v23 = vld [vmem:[#allocation2 + $0x278] sm:$0xf0]  ;;  %v6656_v49 = vor.u32 %v9020_v41, %v6653_v18 }
 0x1bf   :  { %v7004_v11 = vor.u32 %v9112_v60, %v7003_v58  ;;  %v7259_v12 = vld [vmem:[#allocation2 + $0xa58] sm:$0xf]  ;;  %3149 = vmatpush.bf16.msrb.mxu2 %v6080_v53  ;;  %3125 = vmatpush.bf16.msrb.mxu3 %v7292_v6  ;;  %v6909_v50 = vld [vmem:[#allocation2 + $0x7b8] sm:$0xf0]  ;;  %v6240_v56 = vor.u32 %v8916_v0, %v6237_v23 }
 0x1c0   :  { %v9176_v13 = vld [vmem:[#allocation2 + $0xa74] sm:$0xf0]  ;;  %v5949_v53 = vld [vmem:[#allocation2 + $0x38] sm:$0xf0]  ;;  %v6912_v2 = vor.u32 %v9084_v46, %v6909_v50 }
 0x1c1   :  { %v6971_v15 = vld [vmem:[#allocation2 + $0x818] sm:$0xf]  ;;  %v7260_v24 = vor.u32 %v9176_v13, %v7259_v12  ;;  %3113 = vmatpush.bf16.msra.mxu1 %v7004_v11  ;;  %3163 = vmatpush.bf16.msrb.mxu0 %v6304_v20  ;;  %v8908_v58 = vld [vmem:[#allocation2 + $0x21c] sm:$0xf]  ;;  %v5952_v7 = vor.u32 %v8844_v52, %v5949_v53 }
 0x1c2   :  { %v9104_v16 = vld [vmem:[#allocation2 + $0x834] sm:$0xf0]  ;;  %v9012_v60 = vld [vmem:[#allocation2 + $0x55c] sm:$0xf] }
 0x1c3   :  { %v6972_v27 = vor.u32 %v9104_v16, %v6971_v15  ;;  %v7227_v28 = vld [vmem:[#allocation2 + $0xa18] sm:$0xf]  ;;  %3150 = vmatpush.bf16.msrb.mxu2 %v6048_v14  ;;  %3126 = vmatpush.bf16.msrb.mxu3 %v7260_v24  ;;  %v6205_v62 = vld [vmem:[#allocation2 + $0x238] sm:$0xf0]  ;;  %v6624_v8 = vor.u32 %v9012_v60, %v6621_v61  ;;  %v9943_v16 = vpop.f32.mrf.mxu2 }
 0x1c4   :  { %v9168_v29 = vld [vmem:[#allocation2 + $0xa34] sm:$0xf0]  ;;  %v9156_v63 = vld [vmem:[#allocation2 + $0x9dc] sm:$0xf]  ;;  %v6208_v12 = vor.u32 %v8908_v58, %v6205_v62  ;;  %v9949_v58 = vpop.f32.mrf.mxu3 }
 0x1c5   :  { %v7228_v43 = vor.u32 %v9168_v29, %v7227_v28  ;;  %3114 = vmatpush.bf16.msra.mxu1 %v6972_v27  ;;  %3164 = vmatpush.bf16.msrb.mxu0 %v6272_v40  ;;  %v7197_v1 = vld [vmem:[#allocation2 + $0x9f8] sm:$0xf0] }
 0x1c6   :  { %v9220_v3 = vld [vmem:[#allocation2 + $0xbdc] sm:$0xf]  ;;  %v7200_v13 = vor.u32 %v9156_v63, %v7197_v1 }
 0x1c7   :  { %3151 = vmatpush.bf16.msrb.mxu2 %v6016_v31  ;;  %3127 = vmatpush.bf16.msrb.mxu3 %v7228_v43  ;;  %v7453_v6 = vld [vmem:[#allocation2 + $0xbf8] sm:$0xf0] }
 0x1c8   :  { %3115 = vmatmul.bf16.vlgmr.msra.gmra.mxu1 %v9858_v30  ;;  %v9076_v9 = vld [vmem:[#allocation2 + $0x75c] sm:$0xf]  ;;  %v7456_v17 = vor.u32 %v9220_v3, %v7453_v6  ;;  %v2897_v3 = vpop.f32.mrf.mxu1 }
 0x1c9   :  { %3172 = vmatpush.bf16.msrb.mxu1 %v6688_v32  ;;  %v6877_v11 = vld [vmem:[#allocation2 + $0x778] sm:$0xf0]  ;;  %3165 = vmatpush.bf16.msrb.mxu0 %v6240_v56  ;;  %v9327_v3 = vld [vmem:[#allocation6 + $0x2ec] sm:$0xf0] }
 0x1ca   :  { %3128 = vmatmul.bf16.vlgmr.msrb.gmra.mxu3 %v9860_v35  ;;  %v9004_v14 = vld [vmem:[#allocation2 + $0x51c] sm:$0xf]  ;;  %v6880_v47 = vor.u32 %v9076_v9, %v6877_v11 }
 0x1cb   :  { %3185 = vmatpush.bf16.msra.mxu3 %v6944_v44  ;;  %3152 = vmatpush.bf16.msrb.mxu2 %v5984_v48  ;;  %v6589_v15 = vld [vmem:[#allocation2 + $0x538] sm:$0xf0]  ;;  %v2871_v23 = vpop.f32.mrf.mxu2 }
 0x1cc   :  { %v9148_v20 = vld [vmem:[#allocation2 + $0x99c] sm:$0xf]  ;;  %v6592_v25 = vor.u32 %v9004_v14, %v6589_v15 }
 0x1cd   :  { %3173 = vmatpush.bf16.msrb.mxu1 %v6656_v49  ;;  %v7165_v21 = vld [vmem:[#allocation2 + $0x9b8] sm:$0xf0]  ;;  %3166 = vmatpush.bf16.msrb.mxu0 %v6208_v12 }
 0x1ce   :  { %v9212_v22 = vld [vmem:[#allocation2 + $0xb9c] sm:$0xf]  ;;  %v7168_v28 = vor.u32 %v9148_v20, %v7165_v21 }
 0x1cf   :  { %3186 = vmatpush.bf16.msra.mxu3 %v6912_v2  ;;  %v7421_v24 = vld [vmem:[#allocation2 + $0xbb8] sm:$0xf0]  ;;  %3153 = vmatpush.bf16.msrb.mxu2 %v5952_v7  ;;  %v9951_v2 = vpop.f32.mrf.mxu0 }
 0x1d0   :  { %v9068_v26 = vld [vmem:[#allocation2 + $0x71c] sm:$0xf]  ;;  %v7424_v32 = vor.u32 %v9212_v22, %v7421_v24  ;;  %3167 = vmatmul.bf16.vlgmr.msrb.gmra.mxu0 %v9841_v4 }
 0x1d1   :  { %3174 = vmatpush.bf16.msrb.mxu1 %v6624_v8  ;;  %v6845_v27 = vld [vmem:[#allocation2 + $0x738] sm:$0xf0]  ;;  %3211 = vmatpush.bf16.msra.mxu0 %v7456_v17 }
 0x1d2   :  { %v8996_v29 = vld [vmem:[#allocation2 + $0x4dc] sm:$0xf]  ;;  %v6848_v59 = vor.u32 %v9068_v26, %v6845_v27  ;;  %3154 = vmatmul.bf16.vlgmr.msrb.gmra.mxu2 %v9832_v55 }
 0x1d3   :  { %3198 = vmatpush.bf16.msra.mxu2 %v7200_v13  ;;  %v6557_v31 = vld [vmem:[#allocation2 + $0x4f8] sm:$0xf0]  ;;  %3187 = vmatpush.bf16.msra.mxu3 %v6880_v47  ;;  %v9953_v20 = vpop.f32.mrf.mxu2 }
 0x1d4   :  { %v9140_v33 = vld [vmem:[#allocation2 + $0x95c] sm:$0xf]  ;;  %v6560_v10 = vor.u32 %v8996_v29, %v6557_v31 }
 0x1d5   :  { %v7133_v34 = vld [vmem:[#allocation2 + $0x978] sm:$0xf0]  ;;  %3175 = vmatpush.bf16.msrb.mxu1 %v6592_v25  ;;  %3212 = vmatpush.bf16.msra.mxu0 %v7424_v32  ;;  %v7611_v32 = vld [vmem:[#allocation6 + $0xe0] sm:$0xf] }
 0x1d6   :  { %v9204_v39 = vld [vmem:[#allocation2 + $0xb5c] sm:$0xf]  ;;  %v7136_v42 = vor.u32 %v9140_v33, %v7133_v34 }
 0x1d7   :  { %v7389_v40 = vld [vmem:[#allocation2 + $0xb78] sm:$0xf0]  ;;  %3199 = vmatpush.bf16.msra.mxu2 %v7168_v28  ;;  %3188 = vmatpush.bf16.msra.mxu3 %v6848_v59  ;;  %v9263_v59 = vld [vmem:[#allocation6 + $0xec] sm:$0xf0] }
 0x1d8   :  { %v9060_v41 = vld [vmem:[#allocation2 + $0x6dc] sm:$0xf]  ;;  %v7392_v44 = vor.u32 %v9204_v39, %v7389_v40  ;;  %v7739_v39 = vld [vmem:[#allocation6 + $0x1e0] sm:$0xf]  ;;  %v9295_v40 = vld [vmem:[#allocation6 + $0x1ec] sm:$0xf0] }
 0x1d9   :  { %v6813_v18 = vld [vmem:[#allocation2 + $0x6f8] sm:$0xf0]  ;;  %3176 = vmatpush.bf16.msrb.mxu1 %v6560_v10  ;;  %v2884_v10 = vpop.f32.mrf.mxu3 }
 0x1da   :  { %v8988_v43 = vld [vmem:[#allocation2 + $0x49c] sm:$0xf]  ;;  %v6816_v49 = vor.u32 %v9060_v41, %v6813_v18  ;;  %3213 = vmatpush.bf16.msra.mxu0 %v7392_v44 }
 0x1db   :  { %v6525_v0 = vld [vmem:[#allocation2 + $0x4b8] sm:$0xf0]  ;;  %3200 = vmatpush.bf16.msra.mxu2 %v7136_v42 }
 0x1dc   :  { %v9132_v46 = vld [vmem:[#allocation2 + $0x91c] sm:$0xf]  ;;  %v6528_v52 = vor.u32 %v8988_v43, %v6525_v0  ;;  %3189 = vmatpush.bf16.msra.mxu3 %v6816_v49  ;;  %v2923_v43 = vpop.f32.mrf.mxu0  ;;  %v7595_v49 = vld [vmem:[#allocation6 + $0xc0] sm:$0xf] }
 0x1dd   :  { %v7101_v48 = vld [vmem:[#allocation2 + $0x938] sm:$0xf0]  ;;  %v7547_v43 = vld [vmem:[#allocation6 + $0x60] sm:$0xf] }
 0x1de   :  { %v9196_v55 = vld [vmem:[#allocation2 + $0xb1c] sm:$0xf]  ;;  %v7104_v4 = vor.u32 %v9132_v46, %v7101_v48  ;;  %3177 = vmatpush.bf16.msrb.mxu1 %v6528_v52  ;;  %v7612_v46 = vor.u32 %v9263_v59, %v7611_v32  ;;  %v7740_v48 = vor.u32 %v9295_v40, %v7739_v39  ;;  %v7723_v52 = vld [vmem:[#allocation6 + $0x1c0] sm:$0xf]  ;;  %v9283_v32 = vld [vmem:[#allocation6 + $0x18c] sm:$0xf0]  ;;  %v9959_v40 = vpop.f32.mrf.mxu1 }
 0x1df   :  { %v7357_v50 = vld [vmem:[#allocation2 + $0xb38] sm:$0xf0]  ;;  %v7835_v59 = vld [vmem:[#allocation6 + $0x2a0] sm:$0xf]  ;;  %v9319_v39 = vld [vmem:[#allocation6 + $0x2ac] sm:$0xf0] }
 0x1e0   :  { %v9052_v53 = vld [vmem:[#allocation2 + $0x69c] sm:$0xf]  ;;  %v7360_v62 = vor.u32 %v9196_v55, %v7357_v50  ;;  %3201 = vmatpush.bf16.msra.mxu2 %v7104_v4  ;;  %v9259_v50 = vld [vmem:[#allocation6 + $0xcc] sm:$0xf0] }
 0x1e1   :  { %v6781_v56 = vld [vmem:[#allocation2 + $0x6b8] sm:$0xf0] }
 0x1e2   :  { %v8980_v60 = vld [vmem:[#allocation2 + $0x45c] sm:$0xf]  ;;  %v6784_v6 = vor.u32 %v9052_v53, %v6781_v56  ;;  %3214 = vmatpush.bf16.msra.mxu0 %v7360_v62  ;;  %v9291_v53 = vld [vmem:[#allocation6 + $0x1cc] sm:$0xf0]  ;;  %v2910_v56 = vpop.f32.mrf.mxu2 }
 0x1e3   :  { %v6493_v61 = vld [vmem:[#allocation2 + $0x478] sm:$0xf0]  ;;  %v7531_v56 = vld [vmem:[#allocation6 + $0x40] sm:$0xf] }
 0x1e4   :  { %v9124_v63 = vld [vmem:[#allocation2 + $0x8dc] sm:$0xf]  ;;  %v6496_v9 = vor.u32 %v8980_v60, %v6493_v61  ;;  %3190 = vmatpush.bf16.msra.mxu3 %v6784_v6  ;;  %v7596_v6 = vor.u32 %v9259_v50, %v7595_v49  ;;  %v7819_v49 = vld [vmem:[#allocation6 + $0x280] sm:$0xf] }
 0x1e5   :  { %v7069_v1 = vld [vmem:[#allocation2 + $0x8f8] sm:$0xf0]  ;;  %v7947_v50 = vld [vmem:[#allocation6 + $0x380] sm:$0xf] }
 0x1e6   :  { %v9188_v7 = vld [vmem:[#allocation2 + $0xadc] sm:$0xf]  ;;  %v7072_v13 = vor.u32 %v9124_v63, %v7069_v1  ;;  %3178 = vmatpush.bf16.msrb.mxu1 %v6496_v9  ;;  %v7867_v1 = vld [vmem:[#allocation6 + $0x2e0] sm:$0xf]  ;;  %v9359_v9 = vld [vmem:[#allocation6 + $0x3ec] sm:$0xf0] }
 0x1e7   :  { %v7325_v8 = vld [vmem:[#allocation2 + $0xaf8] sm:$0xf0] }
 0x1e8   :  { %v9044_v11 = vld [vmem:[#allocation2 + $0x65c] sm:$0xf]  ;;  %v7328_v21 = vor.u32 %v9188_v7, %v7325_v8  ;;  %3202 = vmatpush.bf16.msra.mxu2 %v7072_v13  ;;  %v7724_v7 = vor.u32 %v9291_v53, %v7723_v52  ;;  %v7995_v8 = vld [vmem:[#allocation6 + $0x3e0] sm:$0xf]  ;;  %v9255_v13 = vld [vmem:[#allocation6 + $0xac] sm:$0xf0] }
 0x1e9   :  { %v6749_v12 = vld [vmem:[#allocation2 + $0x678] sm:$0xf0]  ;;  %v9347_v52 = vld [vmem:[#allocation6 + $0x38c] sm:$0xf0] }
 0x1ea   :  { %v8972_v14 = vld [vmem:[#allocation2 + $0x41c] sm:$0xf]  ;;  %v6752_v25 = vor.u32 %v9044_v11, %v6749_v12  ;;  %3215 = vmatpush.bf16.msra.mxu0 %v7328_v21  ;;  %v7579_v12 = vld [vmem:[#allocation6 + $0xa0] sm:$0xf]  ;;  %v7996_v21 = vor.u32 %v9359_v9, %v7995_v8  ;;  %v2949_v8 = vpop.f32.mrf.mxu1 }
 0x1eb   :  { %v6461_v15 = vld [vmem:[#allocation2 + $0x438] sm:$0xf0]  ;;  %v7883_v8 = vld [vmem:[#allocation6 + $0x300] sm:$0xf] }
 0x1ec   :  { %v9116_v17 = vld [vmem:[#allocation2 + $0x89c] sm:$0xf]  ;;  %v6464_v28 = vor.u32 %v8972_v14, %v6461_v15  ;;  %3191 = vmatpush.bf16.msra.mxu3 %v6752_v25  ;;  %v7868_v15 = vor.u32 %v9327_v3, %v7867_v1  ;;  %v7979_v25 = vld [vmem:[#allocation6 + $0x3c0] sm:$0xf]  ;;  %v7948_v1 = vor.u32 %v9347_v52, %v7947_v50  ;;  %v9335_v50 = vld [vmem:[#allocation6 + $0x32c] sm:$0xf0] }
 0x1ed   :  { %v7037_v47 = vld [vmem:[#allocation2 + $0x8b8] sm:$0xf0]  ;;  %v7803_v3 = vld [vmem:[#allocation6 + $0x260] sm:$0xf]  ;;  %v3239_v52 = vmul.f32 0.2, %v9928_v5 }
 0x1ee   :  { %v9228_v22 = vld [vmem:[#allocation2 + $0xc1c] sm:$0xf]  ;;  %v7040_v33 = vor.u32 %v9116_v17, %v7037_v47  ;;  %3179 = vmatpush.bf16.msrb.mxu1 %v6464_v28  ;;  %v9287_v17 = vld [vmem:[#allocation6 + $0x1ac] sm:$0xf0]  ;;  %v7851_v47 = vld [vmem:[#allocation6 + $0x2c0] sm:$0xf] }
 0x1ef   :  { %v7485_v24 = vld [vmem:[#allocation2 + $0xc38] sm:$0xf0]  ;;  %v7563_v28 = vld [vmem:[#allocation6 + $0x80] sm:$0xf] }
 0x1f0   :  { %v9180_v26 = vld [vmem:[#allocation2 + $0xa9c] sm:$0xf]  ;;  %v7488_v34 = vor.u32 %v9228_v22, %v7485_v24  ;;  %3203 = vmatpush.bf16.msra.mxu2 %v7040_v33  ;;  %v9323_v22 = vld [vmem:[#allocation6 + $0x2cc] sm:$0xf0]  ;;  %v7580_v24 = vor.u32 %v9255_v13, %v7579_v12  ;;  %v9957_v33 = vpop.f32.mrf.mxu2  ;;  %v3237_v13 = vmul.f32 0.2, %v9892_v38 }
 0x1f1   :  { %v7293_v27 = vld [vmem:[#allocation2 + $0xab8] sm:$0xf0]  ;;  %3180 = vmatmul.bf16.vlgmr.msrb.gmra.mxu1 %v9830_v51  ;;  %v7707_v51 = vld [vmem:[#allocation6 + $0x1a0] sm:$0xf]  ;;  %v9343_v12 = vld [vmem:[#allocation6 + $0x36c] sm:$0xf0] }
 0x1f2   :  { %v9036_v29 = vld [vmem:[#allocation2 + $0x61c] sm:$0xf]  ;;  %v7296_v41 = vor.u32 %v9180_v26, %v7293_v27  ;;  %3231 = vmatpush.bf16.msra.mxu1 %v7488_v34  ;;  %v9355_v26 = vld [vmem:[#allocation6 + $0x3cc] sm:$0xf0]  ;;  %v7708_v27 = vor.u32 %v9287_v17, %v7707_v51  ;;  %v3238_v17 = vmul.f32 0.2, %v9906_v36 }
 0x1f3   :  { %v6717_v31 = vld [vmem:[#allocation2 + $0x638] sm:$0xf0]  ;;  %v7980_v34 = vor.u32 %v9355_v26, %v7979_v25  ;;  %v9239_v51 = vld [vmem:[#allocation6 + $0x2c] sm:$0xf0]  ;;  %v7787_v25 = vld [vmem:[#allocation6 + $0x240] sm:$0xf] }
 0x1f4   :  { %v9108_v18 = vld [vmem:[#allocation2 + $0x85c] sm:$0xf]  ;;  %v6720_v0 = vor.u32 %v9036_v29, %v6717_v31  ;;  %3216 = vmatpush.bf16.msra.mxu0 %v7296_v41  ;;  %v9251_v29 = vld [vmem:[#allocation6 + $0x8c] sm:$0xf0]  ;;  %v7852_v31 = vor.u32 %v9323_v22, %v7851_v47  ;;  %v7963_v41 = vld [vmem:[#allocation6 + $0x3a0] sm:$0xf] }
 0x1f5   :  { %v7005_v42 = vld [vmem:[#allocation2 + $0x878] sm:$0xf0]  ;;  %v7564_v10 = vor.u32 %v9251_v29, %v7563_v28  ;;  %v9271_v47 = vld [vmem:[#allocation6 + $0x12c] sm:$0xf0]  ;;  %v533_v22 = vperm.slane %v9922_v54, 4 }
 0x1f6   :  { %v9172_v23 = vld [vmem:[#allocation2 + $0xa5c] sm:$0xf]  ;;  %v7008_v55 = vor.u32 %v9108_v18, %v7005_v42  ;;  %3192 = vmatpush.bf16.msra.mxu3 %v6720_v0  ;;  %4820 = vmatpush.bf16.msrb.mxu1 %v7740_v48  ;;  %v9351_v18 = vld [vmem:[#allocation6 + $0x3ac] sm:$0xf0]  ;;  %v7915_v28 = vld [vmem:[#allocation6 + $0x340] sm:$0xf] }
 0x1f7   :  { %v7261_v44 = vld [vmem:[#allocation2 + $0xa78] sm:$0xf0]  ;;  %v9247_v0 = vld [vmem:[#allocation6 + $0x6c] sm:$0xf0]  ;;  %v7964_v48 = vor.u32 %v9351_v18, %v7963_v41  ;;  %v8251_v18 = vld [vmem:[#allocation6 + $0x5e0] sm:$0xf] }
 0x1f8   :  { %v7264_v4 = vor.u32 %v9172_v23, %v7261_v44  ;;  %v9100_v60 = vld [vmem:[#allocation2 + $0x81c] sm:$0xf]  ;;  %3204 = vmatpush.bf16.msra.mxu2 %v7008_v55  ;;  %v7836_v23 = vor.u32 %v9319_v39, %v7835_v59  ;;  %v7675_v44 = vld [vmem:[#allocation6 + $0x160] sm:$0xf]  ;;  %v9315_v55 = vld [vmem:[#allocation6 + $0x28c] sm:$0xf0] }
 0x1f9   :  { %v6973_v61 = vld [vmem:[#allocation2 + $0x838] sm:$0xf0]  ;;  %3193 = vmatmul.bf16.vlgmr.msra.gmra.mxu3 %v9834_v57  ;;  %v7691_v57 = vld [vmem:[#allocation6 + $0x180] sm:$0xf]  ;;  %v9307_v26 = vld [vmem:[#allocation6 + $0x24c] sm:$0xf0] }
 0x1fa   :  { %v9164_v62 = vld [vmem:[#allocation2 + $0xa1c] sm:$0xf]  ;;  %4807 = vmatpush.bf16.msrb.mxu3 %v7612_v46  ;;  %v6976_v11 = vor.u32 %v9100_v60, %v6973_v61  ;;  %3217 = vmatpush.bf16.msra.mxu0 %v7264_v4  ;;  %v7692_v42 = vor.u32 %v9283_v32, %v7691_v57  ;;  %v9279_v46 = vld [vmem:[#allocation6 + $0x16c] sm:$0xf0]  ;;  %v9963_v4 = vpop.f32.mrf.mxu3  ;;  %v7820_v60 = vor.u32 %v9315_v55, %v7819_v49  ;;  %v7659_v61 = vld [vmem:[#allocation6 + $0x140] sm:$0xf] }
 0x1fb   :  { %v7229_v63 = vld [vmem:[#allocation2 + $0xa38] sm:$0xf0]  ;;  %4821 = vmatpush.bf16.msrb.mxu1 %v7724_v7  ;;  %v7676_v53 = vor.u32 %v9279_v46, %v7675_v44  ;;  %v9967_v7 = vpop.f32.mrf.mxu0  ;;  %v9339_v29 = vld [vmem:[#allocation6 + $0x34c] sm:$0xf0]  ;;  %v9974_v57 = vadd.f32 %v9943_v16, %v9937_v19  ;;  %v7627_v59 = vld [vmem:[#allocation6 + $0x100] sm:$0xf]  ;;  %v7788_v54 = vor.u32 %v9307_v26, %v7787_v25  ;;  %v3246_v49 = vmax.f32 %v9906_v36, %v3238_v17 }
 0x1fc   :  { %v7232_v14 = vor.u32 %v9164_v62, %v7229_v63  ;;  %3205 = vmatpush.bf16.msra.mxu2 %v6976_v11  ;;  %v9275_v62 = vld [vmem:[#allocation6 + $0x14c] sm:$0xf0]  ;;  %v2962_v63 = vpop.f32.mrf.mxu2  ;;  %v7931_v11 = vld [vmem:[#allocation6 + $0x360] sm:$0xf] }
 0x1fd   :  { %v9267_v39 = vld [vmem:[#allocation6 + $0x10c] sm:$0xf0]  ;;  %v7771_v19 = vld [vmem:[#allocation6 + $0x220] sm:$0xf] }
 0x1fe   :  { %4808 = vmatpush.bf16.msrb.mxu3 %v7596_v6  ;;  %3218 = vmatpush.bf16.msra.mxu0 %v7232_v14  ;;  %v9311_v6 = vld [vmem:[#allocation6 + $0x26c] sm:$0xf0]  ;;  %v7660_v14 = vor.u32 %v9275_v62, %v7659_v61  ;;  %v8235_v63 = vld [vmem:[#allocation6 + $0x5c0] sm:$0xf] }
 0x1ff   :  { %3206 = vmatmul.bf16.vlgmr.msra.gmra.mxu2 %v9858_v30  ;;  %4822 = vmatpush.bf16.msrb.mxu1 %v7708_v27  ;;  %v7548_v30 = vor.u32 %v9247_v0, %v7547_v43  ;;  %v9391_v41 = vld [vmem:[#allocation6 + $0x4ec] sm:$0xf0]  ;;  %v2883_v0 = vadd.f32 %v9949_v58, %v533_v22  ;;  %v7628_v58 = vor.u32 %v9267_v39, %v7627_v59  ;;  %v8219_v25 = vld [vmem:[#allocation6 + $0x5a0] sm:$0xf] }
 0x200   :  { %4833 = vmatpush.bf16.msrb.mxu2 %v7868_v15  ;;  %v7515_v15 = vld [vmem:[#allocation6 + $0x20] sm:$0xf]  ;;  %v9423_v44 = vld [vmem:[#allocation6 + $0x5ec] sm:$0xf0] }
 0x201   :  { %3219 = vmatmul.bf16.vlgmr.msra.gmra.mxu0 %v9860_v35  ;;  %v9243_v35 = vld [vmem:[#allocation6 + $0x4c] sm:$0xf0]  ;;  %7496 = vmatmul.msk.bf16.vlgmr.msra.gmra.mxu1 %vm2505_vm0, %v9848_v45  ;;  %v7804_v45 = vor.u32 %v9311_v6, %v7803_v3  ;;  %v7516_v27 = vor.u32 %v9239_v51, %v7515_v15  ;;  %v2896_v36 = vadd.f32 %v9945_v37, %v2883_v0  ;;  %v7755_v3 = vld [vmem:[#allocation6 + $0x200] sm:$0xf] }
 0x202   :  { %4846 = vmatpush.bf16.msrb.mxu0 %v7996_v21  ;;  %4809 = vmatpush.bf16.msrb.mxu3 %v7580_v24  ;;  %v7532_v9 = vor.u32 %v9243_v35, %v7531_v56  ;;  %v7643_v21 = vld [vmem:[#allocation6 + $0x120] sm:$0xf]  ;;  %v7932_v24 = vor.u32 %v9343_v12, %v7931_v11  ;;  %v9303_v16 = vld [vmem:[#allocation6 + $0x22c] sm:$0xf0]  ;;  %v3247_v51 = vmax.f32 %v9928_v5, %v3239_v52 }
 0x203   :  { %4823 = vmatpush.bf16.msrb.mxu1 %v7692_v42  ;;  %v7644_v32 = vor.u32 %v9271_v47, %v7643_v21  ;;  %v2936_v42 = vpop.f32.mrf.mxu3  ;;  %v2975_v46 = vpop.f32.mrf.mxu0  ;;  %v8107_v35 = vld [vmem:[#allocation6 + $0x4c0] sm:$0xf]  ;;  %v7772_v61 = vor.u32 %v9303_v16, %v7771_v19  ;;  %v9387_v62 = vld [vmem:[#allocation6 + $0x4cc] sm:$0xf0]  ;;  %v2909_v22 = vadd.f32 %v9953_v20, %v2896_v36 }
 0x204   :  { %4834 = vmatpush.bf16.msrb.mxu2 %v7852_v31  ;;  %v7499_v31 = vld [vmem:[#allocation6] sm:$0xf]  ;;  %v9976_v43 = vpop.f32.mrf.mxu2  ;;  %v9299_v6 = vld [vmem:[#allocation6 + $0x20c] sm:$0xf0]  ;;  %v8108_v15 = vor.u32 %v9387_v62, %v8107_v35  ;;  %v3012_v16 = vpop.f32.mrf.mxu1 }
 0x205   :  { %v8379_v11 = vld [vmem:[#allocation6 + $0x6e0] sm:$0xf]  ;;  %v9455_v12 = vld [vmem:[#allocation6 + $0x6ec] sm:$0xf0]  ;;  %v7756_v17 = vor.u32 %v9299_v6, %v7755_v3 }
 0x206   :  { %4847 = vmatpush.bf16.msrb.mxu0 %v7980_v34  ;;  %4810 = vmatpush.bf16.msrb.mxu3 %v7564_v10  ;;  %v9235_v34 = vld [vmem:[#allocation6 + $0xc] sm:$0xf0]  ;;  %v8123_v10 = vld [vmem:[#allocation6 + $0x4e0] sm:$0xf] }
 0x207   :  { %4824 = vmatpush.bf16.msrb.mxu1 %v7676_v53  ;;  %v7500_v55 = vor.u32 %v9235_v34, %v7499_v31  ;;  %v3240_v53 = vmul.f32 0.2, %v9974_v57  ;;  %v8124_v56 = vor.u32 %v9391_v41, %v8123_v10  ;;  %v9383_v21 = vld [vmem:[#allocation6 + $0x4ac] sm:$0xf0]  ;;  %v8363_v5 = vld [vmem:[#allocation6 + $0x6c0] sm:$0xf]  ;;  %v2922_v10 = vadd.f32 %v9951_v2, %v2909_v22 }
 0x208   :  { %4835 = vmatpush.bf16.msrb.mxu2 %v7836_v23  ;;  %v7916_v23 = vor.u32 %v9339_v29, %v7915_v28  ;;  %v9415_v26 = vld [vmem:[#allocation6 + $0x5ac] sm:$0xf0]  ;;  %v8075_v59 = vld [vmem:[#allocation6 + $0x480] sm:$0xf] }
 0x209   :  { %v3248_v28 = vmax.f32 %v9974_v57, %v3240_v53  ;;  %v9451_v29 = vld [vmem:[#allocation6 + $0x6cc] sm:$0xf0]  ;;  %v8220_v34 = vor.u32 %v9415_v26, %v8219_v25  ;;  %v8203_v57 = vld [vmem:[#allocation6 + $0x580] sm:$0xf] }
 0x20a   :  { %4848 = vmatpush.bf16.msrb.mxu0 %v7964_v48  ;;  %4811 = vmatpush.bf16.msrb.mxu3 %v7548_v30  ;;  %v3245_v48 = vmax.f32 %v9892_v38, %v3237_v13  ;;  %v7899_v30 = vld [vmem:[#allocation6 + $0x320] sm:$0xf]  ;;  %v9419_v38 = vld [vmem:[#allocation6 + $0x5cc] sm:$0xf0] }
 0x20b   :  { %4825 = vmatpush.bf16.msrb.mxu1 %v7660_v14  ;;  %v9986_v14 = vpack.c.bf16 %v3246_v49, %v3246_v49  ;;  %v8236_v37 = vor.u32 %v9419_v38, %v8235_v63  ;;  %v9379_v39 = vld [vmem:[#allocation6 + $0x48c] sm:$0xf0]  ;;  %v9999_v42 = vpack.c.bf16 %v3248_v28, %v3248_v28  ;;  %v8347_v0 = vld [vmem:[#allocation6 + $0x6a0] sm:$0xf]  ;;  %v3025_v36 = vpop.f32.mrf.mxu0 }
 0x20c   :  { %4836 = vmatpush.bf16.msrb.mxu2 %v7820_v60  ;;  %v8252_v60 = vor.u32 %v9423_v44, %v8251_v18  ;;  %v9984_v13 = vpack.c.bf16 %v3245_v48, %v3245_v48  ;;  %v2988_v47 = vpop.f32.mrf.mxu2  ;;  %v9411_v41 = vld [vmem:[#allocation6 + $0x58c] sm:$0xf0]  ;;  %v8364_v18 = vor.u32 %v9451_v29, %v8363_v5  ;;  %v2935_v44 = vadd.f32 %v9963_v4, %v2922_v10  ;;  %v8059_v48 = vld [vmem:[#allocation6 + $0x460] sm:$0xf]  ;;  %v9261_v5 = vld [vmem:[#allocation6 + $0xe4] sm:$0xf] }
 0x20d   :  { %v8076_v19 = vor.u32 %v9379_v39, %v8075_v59  ;;  %v8204_v2 = vor.u32 %v9411_v41, %v8203_v57  ;;  %v9375_v49 = vld [vmem:[#allocation6 + $0x46c] sm:$0xf0]  ;;  %v8331_v52 = vld [vmem:[#allocation6 + $0x680] sm:$0xf]  ;;  %v7613_v29 = vld [vmem:[#allocation6 + $0xf0] sm:$0xf0] }
 0x20e   :  { %4849 = vmatpush.bf16.msrb.mxu0 %v7948_v1  ;;  %4812 = vmatpush.bf16.msrb.mxu3 %v7532_v9  ;;  %v7900_v1 = vor.u32 %v9335_v50, %v7899_v30  ;;  %v9331_v9 = vld [vmem:[#allocation6 + $0x30c] sm:$0xf0]  ;;  %v2948_v4 = vadd.f32 %v9959_v40, %v2935_v44  ;;  %v8043_v35 = vld [vmem:[#allocation6 + $0x440] sm:$0xf]  ;;  %v7741_v59 = vld [vmem:[#allocation6 + $0x1f0] sm:$0xf0]  ;;  %v7616_v44 = vor.u32 %v9261_v5, %v7613_v29 }
 0x20f   :  { %4826 = vmatpush.bf16.msrb.mxu1 %v7644_v32  ;;  %v9993_v32 = vld [vmem:[#allocation4] sm:$0xff]  ;;  %v9407_v30 = vld [vmem:[#allocation6 + $0x56c] sm:$0xf0]  ;;  %v8171_v62 = vld [vmem:[#allocation6 + $0x540] sm:$0xf] }
 0x210   :  { %4837 = vmatpush.bf16.msrb.mxu2 %v7804_v45  ;;  %v8091_v45 = vld [vmem:[#allocation6 + $0x4a0] sm:$0xf]  ;;  %v534_v20 = vperm.slane %v9993_v32, 5  ;;  %v9443_v53 = vld [vmem:[#allocation6 + $0x68c] sm:$0xf0]  ;;  %v2961_v6 = vadd.f32 %v9957_v33, %v2948_v4 }
 0x211   :  { %v8092_v31 = vor.u32 %v9383_v21, %v8091_v45  ;;  %v9403_v63 = vld [vmem:[#allocation6 + $0x54c] sm:$0xf0]  ;;  %v8332_v38 = vor.u32 %v9443_v53, %v8331_v52  ;;  %v8011_v22 = vld [vmem:[#allocation6 + $0x400] sm:$0xf]  ;;  %v7869_v52 = vld [vmem:[#allocation6 + $0x2f0] sm:$0xf0] }
 0x212   :  { %4850 = vmatpush.bf16.msrb.mxu0 %v7932_v24  ;;  %4813 = vmatpush.bf16.msrb.mxu3 %v7516_v27  ;;  %v7884_v24 = vor.u32 %v9331_v9, %v7883_v8  ;;  %v8380_v27 = vor.u32 %v9455_v12, %v8379_v11  ;;  %v2974_v46 = vadd.f32 %v9967_v7, %v534_v20  ;;  %v9439_v3 = vld [vmem:[#allocation6 + $0x66c] sm:$0xf0]  ;;  %v3014_v8 = vpop.f32.mrf.mxu1  ;;  %v8027_v11 = vld [vmem:[#allocation6 + $0x420] sm:$0xf]  ;;  %v3241_v21 = vmul.f32 0.2, %v2961_v6 }
 0x213   :  { %4827 = vmatpush.bf16.msrb.mxu1 %v7628_v58  ;;  %v8060_v58 = vor.u32 %v9375_v49, %v8059_v48  ;;  %v9367_v12 = vld [vmem:[#allocation6 + $0x42c] sm:$0xf0]  ;;  %v8139_v26 = vld [vmem:[#allocation6 + $0x500] sm:$0xf]  ;;  %v3027_v39 = vpop.f32.mrf.mxu0  ;;  %v7725_v49 = vld [vmem:[#allocation6 + $0x1d0] sm:$0xf0] }
 0x214   :  { %4838 = vmatpush.bf16.msrb.mxu2 %v7788_v54  ;;  %v9996_v54 = vpack.c.bf16 %v3247_v51, %v3247_v51  ;;  %v9399_v51 = vld [vmem:[#allocation6 + $0x52c] sm:$0xf0]  ;;  %v8028_v47 = vor.u32 %v9367_v12, %v8027_v11  ;;  %v8283_v10 = vld [vmem:[#allocation6 + $0x620] sm:$0xf]  ;;  %v7853_v8 = vld [vmem:[#allocation6 + $0x2d0] sm:$0xf0] }
 0x215   :  { %v9435_v45 = vld [vmem:[#allocation6 + $0x64c] sm:$0xf0] }
 0x216   :  { %4851 = vmatpush.bf16.msrb.mxu0 %v7916_v23  ;;  %4814 = vmatpush.bf16.msrb.mxu3 %v7500_v55  ;;  %v9447_v23 = vld [vmem:[#allocation6 + $0x6ac] sm:$0xf0]  ;;  %v8187_v55 = vld [vmem:[#allocation6 + $0x560] sm:$0xf] }
 0x217   :  { %4872 = vmatpush.bf16.msra.mxu1 %v8252_v60  ;;  %v8348_v50 = vor.u32 %v9447_v23, %v8347_v0  ;;  %v8188_v7 = vor.u32 %v9407_v30, %v8187_v55  ;;  %v9371_v60 = vld [vmem:[#allocation6 + $0x44c] sm:$0xf0]  ;;  %v8267_v55 = vld [vmem:[#allocation6 + $0x600] sm:$0xf] }
 0x218   :  { %4839 = vmatpush.bf16.msrb.mxu2 %v7772_v61  ;;  %4828 = vmatmul.bf16.vlgmr.msrb.gmra.mxu1 %v9986_v14  ;;  %v2999_v61 = vpop.f32.mrf.mxu3  ;;  %v8044_v40 = vor.u32 %v9371_v60, %v8043_v35  ;;  %v9363_v25 = vld [vmem:[#allocation6 + $0x40c] sm:$0xf0]  ;;  %v9253_v35 = vld [vmem:[#allocation6 + $0xa4] sm:$0xf]  ;;  %v7581_v60 = vld [vmem:[#allocation6 + $0xb0] sm:$0xf0] }
 0x219   :  { %4815 = vmatmul.bf16.vlgmr.msrb.gmra.mxu3 %v9984_v13  ;;  %v9431_v57 = vld [vmem:[#allocation6 + $0x62c] sm:$0xf0]  ;;  %v8012_v41 = vor.u32 %v9363_v25, %v8011_v22  ;;  %v7584_v11 = vor.u32 %v9253_v35, %v7581_v60  ;;  %v9237_v60 = vld [vmem:[#allocation6 + $0x24] sm:$0xf] }
 0x21a   :  { %4859 = vmatpush.bf16.msra.mxu3 %v8124_v56  ;;  %4852 = vmatpush.bf16.msrb.mxu0 %v7900_v1  ;;  %v2987_v56 = vadd.f32 %v9976_v43, %v2974_v46  ;;  %v8315_v1 = vld [vmem:[#allocation6 + $0x660] sm:$0xf]  ;;  %v8172_v43 = vor.u32 %v9403_v63, %v8171_v62  ;;  %v7597_v46 = vld [vmem:[#allocation6 + $0xd0] sm:$0xf0]  ;;  %v8284_v48 = vor.u32 %v9431_v57, %v8283_v10  ;;  %v9427_v30 = vld [vmem:[#allocation6 + $0x60c] sm:$0xf0] }
 0x21b   :  { %4873 = vmatpush.bf16.msra.mxu1 %v8236_v37  ;;  %v8316_v37 = vor.u32 %v9439_v3, %v8315_v1  ;;  %v8268_v62 = vor.u32 %v9427_v30, %v8267_v55  ;;  %v8507_v3 = vld [vmem:[#allocation6 + $0x7e0] sm:$0xf]  ;;  %v9483_v22 = vld [vmem:[#allocation6 + $0x7cc] sm:$0xf0] }
 0x21c   :  { %4840 = vmatpush.bf16.msrb.mxu2 %v7756_v17  ;;  %v3000_v9 = vadd.f32 %v2999_v61, %v2987_v56  ;;  %v8299_v17 = vld [vmem:[#allocation6 + $0x640] sm:$0xf]  ;;  %v9285_v61 = vld [vmem:[#allocation6 + $0x1a4] sm:$0xf]  ;;  %v9479_v57 = vld [vmem:[#allocation6 + $0x7ac] sm:$0xf0] }
 0x21d   :  { %v8300_v20 = vor.u32 %v9435_v45, %v8299_v17  ;;  %v7693_v45 = vld [vmem:[#allocation6 + $0x190] sm:$0xf0]  ;;  %v8475_v10 = vld [vmem:[#allocation6 + $0x7a0] sm:$0xf]  ;;  %v9475_v55 = vld [vmem:[#allocation6 + $0x78c] sm:$0xf0] }
 0x21e   :  { %4860 = vmatpush.bf16.msra.mxu3 %v8108_v15  ;;  %4853 = vmatpush.bf16.msrb.mxu0 %v7884_v24  ;;  %v8155_v15 = vld [vmem:[#allocation6 + $0x520] sm:$0xf]  ;;  %v3013_v33 = vadd.f32 %v3012_v16, %v3000_v9  ;;  %v9257_v16 = vld [vmem:[#allocation6 + $0xc4] sm:$0xf] }
 0x21f   :  { %4841 = vmatmul.bf16.vlgmr.msrb.gmra.mxu2 %v9996_v54  ;;  %4874 = vmatpush.bf16.msra.mxu1 %v8220_v34  ;;  %v8156_v24 = vor.u32 %v9399_v51, %v8155_v15  ;;  %v3038_v34 = vpop.f32.mrf.mxu2  ;;  %v9249_v15 = vld [vmem:[#allocation6 + $0x84] sm:$0xf]  ;;  %v7565_v51 = vld [vmem:[#allocation6 + $0x90] sm:$0xf0] }
 0x220   :  { %4885 = vmatpush.bf16.msra.mxu2 %v8380_v27  ;;  %v9395_v27 = vld [vmem:[#allocation6 + $0x50c] sm:$0xf0]  ;;  %v3001_v28 = vpop.f32.mrf.mxu3  ;;  %v3026_v0 = vadd.f32 %v3025_v36, %v3013_v33  ;;  %v9317_v33 = vld [vmem:[#allocation6 + $0x2a4] sm:$0xf] }
 0x221   :  { %4854 = vmatmul.bf16.vlgmr.msrb.gmra.mxu0 %v9999_v42  ;;  %v8140_v23 = vor.u32 %v9395_v27, %v8139_v26  ;;  %v7568_v27 = vor.u32 %v9249_v15, %v7565_v51  ;;  %v10013_v28 = vpop.f32.mrf.mxu1  ;;  %v7629_v15 = vld [vmem:[#allocation6 + $0x110] sm:$0xf0]  ;;  %v9389_v51 = vld [vmem:[#allocation6 + $0x4e4] sm:$0xf] }
 0x222   :  { %4861 = vmatpush.bf16.msra.mxu3 %v8092_v31  ;;  %v9293_v31 = vld [vmem:[#allocation6 + $0x1e4] sm:$0xf]  ;;  %v3039_v4 = vadd.f32 %v3038_v34, %v3026_v0  ;;  %v8476_v0 = vor.u32 %v9479_v57, %v8475_v10 }
 0x223   :  { %4875 = vmatpush.bf16.msra.mxu1 %v8204_v2  ;;  %v9289_v2 = vld [vmem:[#allocation6 + $0x1c4] sm:$0xf] }
 0x224   :  { %4886 = vmatpush.bf16.msra.mxu2 %v8364_v18  ;;  %v3249_v18 = vmax.f32 %v2961_v6, %v3241_v21  ;;  %v9487_v6 = vld [vmem:[#allocation6 + $0x7ec] sm:$0xf0]  ;;  %v9277_v34 = vld [vmem:[#allocation6 + $0x164] sm:$0xf] }
 0x225   :  { %v8508_v9 = vor.u32 %v9487_v6, %v8507_v3  ;;  %v9305_v3 = vld [vmem:[#allocation6 + $0x244] sm:$0xf]  ;;  %v7789_v6 = vld [vmem:[#allocation6 + $0x250] sm:$0xf0] }
 0x226   :  { %4862 = vmatpush.bf16.msra.mxu3 %v8076_v19  ;;  %v7744_v19 = vor.u32 %v9293_v31, %v7741_v59  ;;  %v10008_v53 = vpack.c.bf16 %v3249_v18, %v3249_v18  ;;  %v9245_v31 = vld [vmem:[#allocation6 + $0x64] sm:$0xf]  ;;  %v7677_v59 = vld [vmem:[#allocation6 + $0x170] sm:$0xf0] }
 0x227   :  { %4876 = vmatpush.bf16.msra.mxu1 %v8188_v7  ;;  %v7728_v7 = vor.u32 %v9289_v2, %v7725_v49  ;;  %v3040_v36 = vpop.f32.mrf.mxu2  ;;  %4898 = vmatpush.bf16.msra.mxu0 %v8508_v9  ;;  %v7821_v18 = vld [vmem:[#allocation6 + $0x290] sm:$0xf0]  ;;  %v8459_v49 = vld [vmem:[#allocation6 + $0x780] sm:$0xf]  ;;  %v9233_v9 = vld [vmem:[#allocation6 + $0x4] sm:$0xf] }
 0x228   :  { %4887 = vmatpush.bf16.msra.mxu2 %v8348_v50  ;;  %v9325_v50 = vld [vmem:[#allocation6 + $0x2e4] sm:$0xf]  ;;  %v3051_v56 = vpop.f32.mrf.mxu3  ;;  %v7661_v2 = vld [vmem:[#allocation6 + $0x150] sm:$0xf0]  ;;  %v8443_v36 = vld [vmem:[#allocation6 + $0x760] sm:$0xf] }
 0x229   :  { %v3052_v63 = vadd.f32 %v3051_v56, %v3039_v4  ;;  %v7872_v1 = vor.u32 %v9325_v50, %v7869_v52  ;;  %v10016_v30 = vpop.f32.mrf.mxu0  ;;  %v9309_v50 = vld [vmem:[#allocation6 + $0x264] sm:$0xf]  ;;  %v7805_v52 = vld [vmem:[#allocation6 + $0x270] sm:$0xf0]  ;;  %v8460_v4 = vor.u32 %v9475_v55, %v8459_v49  ;;  %v3066_v56 = vpop.f32.mrf.mxu1 }
 0x22a   :  { %4863 = vmatpush.bf16.msra.mxu3 %v8060_v58  ;;  %v7600_v58 = vor.u32 %v9257_v16, %v7597_v46  ;;  %v7533_v16 = vld [vmem:[#allocation6 + $0x50] sm:$0xf0]  ;;  %v9273_v46 = vld [vmem:[#allocation6 + $0x144] sm:$0xf] }
 0x22b   :  { %4877 = vmatpush.bf16.msra.mxu1 %v8172_v43  ;;  %v3242_v43 = vmul.f32 0.2, %v3052_v63  ;;  %v8093_v49 = vld [vmem:[#allocation6 + $0x4b0] sm:$0xf0] }
 0x22c   :  { %4888 = vmatpush.bf16.msra.mxu2 %v8332_v38  ;;  %v7709_v38 = vld [vmem:[#allocation6 + $0x1b0] sm:$0xf0] }
 0x22d   :  { %v7712_v12 = vor.u32 %v9285_v61, %v7709_v38  ;;  %v3250_v17 = vmax.f32 %v3052_v63, %v3242_v43  ;;  %v7517_v61 = vld [vmem:[#allocation6 + $0x30] sm:$0xf0]  ;;  %v7808_v38 = vor.u32 %v9309_v50, %v7805_v52  ;;  %v9413_v50 = vld [vmem:[#allocation6 + $0x5a4] sm:$0xf] }
 0x22e   :  { %4864 = vmatpush.bf16.msra.mxu3 %v8044_v40  ;;  %v9321_v40 = vld [vmem:[#allocation6 + $0x2c4] sm:$0xf]  ;;  %v7645_v63 = vld [vmem:[#allocation6 + $0x130] sm:$0xf0] }
 0x22f   :  { %4878 = vmatpush.bf16.msra.mxu1 %v8156_v24  ;;  %v7856_v21 = vor.u32 %v9321_v40, %v7853_v8  ;;  %v7837_v24 = vld [vmem:[#allocation6 + $0x2b0] sm:$0xf0]  ;;  %v10011_v26 = vpack.c.bf16 %v3250_v17, %v3250_v17  ;;  %v7520_v8 = vor.u32 %v9237_v60, %v7517_v61  ;;  %v9421_v17 = vld [vmem:[#allocation6 + $0x5e4] sm:$0xf] }
 0x230   :  { %4889 = vmatpush.bf16.msra.mxu2 %v8316_v37  ;;  %v9281_v37 = vld [vmem:[#allocation6 + $0x184] sm:$0xf]  ;;  %v3053_v29 = vpop.f32.mrf.mxu3  ;;  %v7840_v39 = vor.u32 %v9317_v33, %v7837_v24  ;;  %v7501_v43 = vld [vmem:[#allocation6 + $0x10] sm:$0xf0] }
 0x231   :  { %v7696_v5 = vor.u32 %v9281_v37, %v7693_v45  ;;  %v8125_v37 = vld [vmem:[#allocation6 + $0x4f0] sm:$0xf0]  ;;  %v7792_v45 = vor.u32 %v9305_v3, %v7789_v6  ;;  %v7504_v29 = vor.u32 %v9233_v9, %v7501_v43  ;;  %v9377_v6 = vld [vmem:[#allocation6 + $0x484] sm:$0xf] }
 0x232   :  { %4865 = vmatpush.bf16.msra.mxu3 %v8028_v47  ;;  %v8491_v47 = vld [vmem:[#allocation6 + $0x7c0] sm:$0xf]  ;;  %v8253_v24 = vld [vmem:[#allocation6 + $0x5f0] sm:$0xf0]  ;;  %v9353_v43 = vld [vmem:[#allocation6 + $0x3c4] sm:$0xf] }
 0x233   :  { %4879 = vmatpush.bf16.msra.mxu1 %v8140_v23  ;;  %v8492_v25 = vor.u32 %v9483_v22, %v8491_v47  ;;  %v9467_v47 = vld [vmem:[#allocation6 + $0x74c] sm:$0xf0]  ;;  %v3092_v22 = vpop.f32.mrf.mxu0  ;;  %v8256_v57 = vor.u32 %v9421_v17, %v8253_v24  ;;  %v8205_v9 = vld [vmem:[#allocation6 + $0x590] sm:$0xf0]  ;;  %v9373_v17 = vld [vmem:[#allocation6 + $0x464] sm:$0xf] }
 0x234   :  { %4890 = vmatpush.bf16.msra.mxu2 %v8300_v20  ;;  %v7549_v20 = vld [vmem:[#allocation6 + $0x70] sm:$0xf0] }
 0x235   :  { %4899 = vmatpush.bf16.msra.mxu0 %v8492_v25  ;;  %v7552_v23 = vor.u32 %v9245_v31, %v7549_v20  ;;  %v10020_v33 = vpop.f32.mrf.mxu2  ;;  %v9301_v25 = vld [vmem:[#allocation6 + $0x224] sm:$0xf]  ;;  %v535_v31 = vperm.slane %v9993_v32, 6  ;;  %v8189_v22 = vld [vmem:[#allocation6 + $0x570] sm:$0xf0] }
 0x236   :  { %4866 = vmatpush.bf16.msra.mxu3 %v8012_v41  ;;  %4880 = vmatmul.bf16.vlgmr.msra.gmra.mxu1 %v10011_v26  ;;  %v9313_v41 = vld [vmem:[#allocation6 + $0x284] sm:$0xf] }
 0x237   :  { %4924 = vmatpush.bf16.msrb.mxu1 %v7744_v19  ;;  %v9241_v19 = vld [vmem:[#allocation6 + $0x44] sm:$0xf]  ;;  %v3065_v56 = vadd.f32 %v10013_v28, %v535_v31 }
 0x238   :  { %4891 = vmatpush.bf16.msra.mxu2 %v8284_v48  ;;  %v7824_v48 = vor.u32 %v9313_v41, %v7821_v18  ;;  %v10018_v35 = vpop.f32.mrf.mxu3  ;;  %v9417_v41 = vld [vmem:[#allocation6 + $0x5c4] sm:$0xf]  ;;  %v8237_v18 = vld [vmem:[#allocation6 + $0x5d0] sm:$0xf0] }
 0x239   :  { %4867 = vmatmul.bf16.vlgmr.msra.gmra.mxu3 %v10008_v53  ;;  %4900 = vmatpush.bf16.msra.mxu0 %v8476_v0  ;;  %v8240_v55 = vor.u32 %v9417_v41, %v8237_v18  ;;  %v9409_v28 = vld [vmem:[#allocation6 + $0x584] sm:$0xf] }
 0x23a   :  { %4911 = vmatpush.bf16.msrb.mxu3 %v7616_v44  ;;  %v7680_v44 = vor.u32 %v9277_v34, %v7677_v59  ;;  %v8128_v34 = vor.u32 %v9389_v51, %v8125_v37  ;;  %v9385_v59 = vld [vmem:[#allocation6 + $0x4c4] sm:$0xf]  ;;  %v8208_v37 = vor.u32 %v9409_v28, %v8205_v9  ;;  %v9264_v28 = vld [vmem:[#allocation6 + $0xf4] sm:$0xf0] }
 0x23b   :  { %4925 = vmatpush.bf16.msrb.mxu1 %v7728_v7  ;;  %v7664_v7 = vor.u32 %v9273_v46, %v7661_v2  ;;  %v10025_v60 = vpop.f32.mrf.mxu0  ;;  %v9369_v31 = vld [vmem:[#allocation6 + $0x444] sm:$0xf]  ;;  %v9296_v9 = vld [vmem:[#allocation6 + $0x1f4] sm:$0xf0] }
 0x23c   :  { %4892 = vmatpush.bf16.msra.mxu2 %v8268_v62  ;;  %v9269_v62 = vld [vmem:[#allocation6 + $0x124] sm:$0xf] }
 0x23d   :  { %4901 = vmatpush.bf16.msra.mxu0 %v8460_v4  ;;  %v8395_v4 = vld [vmem:[#allocation6 + $0x700] sm:$0xf]  ;;  %v3105_v61 = vpop.f32.mrf.mxu2 }
 0x23e   :  { %4912 = vmatpush.bf16.msrb.mxu3 %v7600_v58  ;;  %v7536_v58 = vor.u32 %v9241_v19, %v7533_v16  ;;  %v8411_v19 = vld [vmem:[#allocation6 + $0x720] sm:$0xf]  ;;  %v9463_v16 = vld [vmem:[#allocation6 + $0x72c] sm:$0xf0]  ;;  %v8141_v61 = vld [vmem:[#allocation6 + $0x510] sm:$0xf0] }
 0x23f   :  { %4926 = vmatpush.bf16.msrb.mxu1 %v7712_v12  ;;  %v7648_v12 = vor.u32 %v9269_v62, %v7645_v63  ;;  %v8412_v46 = vor.u32 %v9463_v16, %v8411_v19  ;;  %v9357_v63 = vld [vmem:[#allocation6 + $0x3e4] sm:$0xf]  ;;  %v8029_v16 = vld [vmem:[#allocation6 + $0x430] sm:$0xf0] }
 0x240   :  { %4937 = vmatpush.bf16.msrb.mxu2 %v7872_v1  ;;  %v9471_v1 = vld [vmem:[#allocation6 + $0x76c] sm:$0xf0]  ;;  %v3079_v10 = vpop.f32.mrf.mxu3  ;;  %v9365_v19 = vld [vmem:[#allocation6 + $0x424] sm:$0xf] }
 0x241   :  { %v8444_v40 = vor.u32 %v9471_v1, %v8443_v36  ;;  %v9345_v10 = vld [vmem:[#allocation6 + $0x384] sm:$0xf] }
 0x242   :  { %4913 = vmatpush.bf16.msrb.mxu3 %v7584_v11  ;;  %v9265_v11 = vld [vmem:[#allocation6 + $0x104] sm:$0xf] }
 0x243   :  { %4927 = vmatpush.bf16.msrb.mxu1 %v7696_v5  ;;  %4902 = vmatpush.bf16.msra.mxu0 %v8444_v40  ;;  %v7632_v20 = vor.u32 %v9265_v11, %v7629_v15  ;;  %v8077_v40 = vld [vmem:[#allocation6 + $0x490] sm:$0xf0]  ;;  %v3144_v24 = vpop.f32.mrf.mxu0 }
 0x244   :  { %4938 = vmatpush.bf16.msrb.mxu2 %v7856_v21  ;;  %v8427_v21 = vld [vmem:[#allocation6 + $0x740] sm:$0xf]  ;;  %v7981_v11 = vld [vmem:[#allocation6 + $0x3d0] sm:$0xf0]  ;;  %v8080_v51 = vor.u32 %v9377_v6, %v8077_v40  ;;  %v9260_v24 = vld [vmem:[#allocation6 + $0xd4] sm:$0xf0] }
 0x245   :  { %v8428_v5 = vor.u32 %v9467_v47, %v8427_v21  ;;  %v3116_v15 = vpop.f32.mrf.mxu1  ;;  %v9405_v21 = vld [vmem:[#allocation6 + $0x564] sm:$0xf]  ;;  %v7917_v6 = vld [vmem:[#allocation6 + $0x350] sm:$0xf0] }
 0x246   :  { %4914 = vmatpush.bf16.msrb.mxu3 %v7568_v27  ;;  %v7773_v27 = vld [vmem:[#allocation6 + $0x230] sm:$0xf0] }
 0x247   :  { %4928 = vmatpush.bf16.msrb.mxu1 %v7680_v44  ;;  %v7776_v0 = vor.u32 %v9301_v25, %v7773_v27  ;;  %4903 = vmatpush.bf16.msra.mxu0 %v8428_v5  ;;  %v7757_v44 = vld [vmem:[#allocation6 + $0x210] sm:$0xf0]  ;;  %v9349_v25 = vld [vmem:[#allocation6 + $0x3a4] sm:$0xf] }
 0x248   :  { %4939 = vmatpush.bf16.msrb.mxu2 %v7840_v39  ;;  %v8109_v39 = vld [vmem:[#allocation6 + $0x4d0] sm:$0xf0] }
 0x249   :  { %v8112_v2 = vor.u32 %v9385_v59, %v8109_v39  ;;  %v8173_v39 = vld [vmem:[#allocation6 + $0x550] sm:$0xf0] }
 0x24a   :  { %4915 = vmatpush.bf16.msrb.mxu3 %v7552_v23  ;;  %v9297_v23 = vld [vmem:[#allocation6 + $0x204] sm:$0xf] }
 0x24b   :  { %4929 = vmatpush.bf16.msrb.mxu1 %v7664_v7  ;;  %v7760_v52 = vor.u32 %v9297_v23, %v7757_v44  ;;  %v8221_v7 = vld [vmem:[#allocation6 + $0x5b0] sm:$0xf0]  ;;  %4904 = vmatpush.bf16.msra.mxu0 %v8412_v46  ;;  %v9397_v46 = vld [vmem:[#allocation6 + $0x524] sm:$0xf] }
 0x24c   :  { %4940 = vmatpush.bf16.msrb.mxu2 %v7824_v48  ;;  %v9381_v48 = vld [vmem:[#allocation6 + $0x4a4] sm:$0xf]  ;;  %v8224_v3 = vor.u32 %v9413_v50, %v8221_v7 }
 0x24d   :  { %v8096_v1 = vor.u32 %v9381_v48, %v8093_v49  ;;  %v3129_v23 = vpop.f32.mrf.mxu3  ;;  %v8157_v48 = vld [vmem:[#allocation6 + $0x530] sm:$0xf0]  ;;  %v10031_v49 = vpop.f32.mrf.mxu0  ;;  %v9361_v50 = vld [vmem:[#allocation6 + $0x404] sm:$0xf] }
 0x24e   :  { %4916 = vmatpush.bf16.msrb.mxu3 %v7536_v58  ;;  %v9459_v58 = vld [vmem:[#allocation6 + $0x70c] sm:$0xf0]  ;;  %v9393_v7 = vld [vmem:[#allocation6 + $0x504] sm:$0xf] }
 0x24f   :  { %4930 = vmatpush.bf16.msrb.mxu1 %v7648_v12  ;;  %v8396_v62 = vor.u32 %v9459_v58, %v8395_v4  ;;  %v7984_v12 = vor.u32 %v9353_v43, %v7981_v11  ;;  %v8032_v58 = vor.u32 %v9365_v19, %v8029_v16 }
 0x250   :  { %4941 = vmatpush.bf16.msrb.mxu2 %v7808_v38  ;;  %v7997_v38 = vld [vmem:[#allocation6 + $0x3f0] sm:$0xf0] }
 0x251   :  { %v8000_v36 = vor.u32 %v9357_v63, %v7997_v38  ;;  %4905 = vmatpush.bf16.msra.mxu0 %v8396_v62  ;;  %v8160_v62 = vor.u32 %v9397_v46, %v8157_v48  ;;  %v9453_v63 = vld [vmem:[#allocation6 + $0x6e4] sm:$0xf]  ;;  %v8381_v38 = vld [vmem:[#allocation6 + $0x6f0] sm:$0xf0] }
 0x252   :  { %4917 = vmatpush.bf16.msrb.mxu3 %v7520_v8  ;;  %v3078_v8 = vadd.f32 %v10018_v35, %v3065_v56  ;;  %v7965_v35 = vld [vmem:[#allocation6 + $0x3b0] sm:$0xf0]  ;;  %v9441_v48 = vld [vmem:[#allocation6 + $0x684] sm:$0xf] }
 0x253   :  { %4931 = vmatpush.bf16.msrb.mxu1 %v7632_v20  ;;  %v7968_v27 = vor.u32 %v9349_v25, %v7965_v35  ;;  %v8045_v20 = vld [vmem:[#allocation6 + $0x450] sm:$0xf0]  ;;  %v7731_v25 = vld [vmem:[#allocation6 + $0x1c8] sm:$0xf] }
 0x254   :  { %4942 = vmatpush.bf16.msrb.mxu2 %v7792_v45  ;;  %v8061_v45 = vld [vmem:[#allocation6 + $0x470] sm:$0xf0]  ;;  %v3091_v47 = vadd.f32 %v10016_v30, %v3078_v8  ;;  %v8048_v18 = vor.u32 %v9369_v31, %v8045_v20  ;;  %v7747_v8 = vld [vmem:[#allocation6 + $0x1e8] sm:$0xf] }
 0x255   :  { %4950 = vmatpush.bf16.msrb.mxu0 %v8000_v36  ;;  %v8064_v5 = vor.u32 %v9373_v17, %v8061_v45  ;;  %v8013_v56 = vld [vmem:[#allocation6 + $0x410] sm:$0xf0]  ;;  %v7619_v36 = vld [vmem:[#allocation6 + $0xe8] sm:$0xf]  ;;  %v10034_v40 = vpop.f32.mrf.mxu2  ;;  %v3131_v17 = vpop.f32.mrf.mxu3 }
 0x256   :  { %4918 = vmatpush.bf16.msrb.mxu3 %v7504_v29  ;;  %4932 = vmatmul.bf16.vlgmr.msrb.gmra.mxu1 %v9986_v14  ;;  %v8192_v29 = vor.u32 %v9405_v21, %v8189_v22  ;;  %v3104_v59 = vadd.f32 %v10020_v33, %v3091_v47  ;;  %v9341_v33 = vld [vmem:[#allocation6 + $0x364] sm:$0xf]  ;;  %v8016_v11 = vor.u32 %v9361_v50, %v8013_v56  ;;  %v7603_v22 = vld [vmem:[#allocation6 + $0xc8] sm:$0xf]  ;;  %v3170_v35 = vpop.f32.mrf.mxu0  ;;  %v9252_v50 = vld [vmem:[#allocation6 + $0x94] sm:$0xf0] }
 0x257   :  { %4976 = vmatpush.bf16.msra.mxu1 %v8256_v57  ;;  %v7949_v57 = vld [vmem:[#allocation6 + $0x390] sm:$0xf0]  ;;  %v7620_v21 = vor.u32 %v9264_v28, %v7619_v36  ;;  %v7748_v47 = vor.u32 %v9296_v9, %v7747_v8  ;;  %v7555_v36 = vld [vmem:[#allocation6 + $0x68] sm:$0xf] }
 0x258   :  { %4943 = vmatpush.bf16.msrb.mxu2 %v7776_v0  ;;  %v7952_v30 = vor.u32 %v9345_v10, %v7949_v57  ;;  %v3117_v41 = vadd.f32 %v3116_v15, %v3104_v59  ;;  %v3118_v0 = vpop.f32.mrf.mxu1  ;;  %v8384_v15 = vor.u32 %v9453_v63, %v8381_v38  ;;  %v8349_v59 = vld [vmem:[#allocation6 + $0x6b0] sm:$0xf0]  ;;  %v7587_v57 = vld [vmem:[#allocation6 + $0xa8] sm:$0xf]  ;;  %v9437_v63 = vld [vmem:[#allocation6 + $0x664] sm:$0xf] }
 0x259   :  { %4919 = vmatmul.bf16.vlgmr.msrb.gmra.mxu3 %v9984_v13  ;;  %4951 = vmatpush.bf16.msrb.mxu0 %v7984_v12  ;;  %v8144_v12 = vor.u32 %v9393_v7, %v8141_v61  ;;  %v9288_v0 = vld [vmem:[#allocation6 + $0x1b4] sm:$0xf0]  ;;  %v8317_v38 = vld [vmem:[#allocation6 + $0x670] sm:$0xf0]  ;;  %v7523_v35 = vld [vmem:[#allocation6 + $0x28] sm:$0xf] }
 0x25a   :  { %4963 = vmatpush.bf16.msra.mxu3 %v8128_v34  ;;  %v9401_v34 = vld [vmem:[#allocation6 + $0x544] sm:$0xf]  ;;  %v8320_v8 = vor.u32 %v9437_v63, %v8317_v38  ;;  %v7859_v63 = vld [vmem:[#allocation6 + $0x2c8] sm:$0xf] }
 0x25b   :  { %4977 = vmatpush.bf16.msra.mxu1 %v8240_v55  ;;  %v8176_v44 = vor.u32 %v9401_v34, %v8173_v39  ;;  %v7933_v55 = vld [vmem:[#allocation6 + $0x370] sm:$0xf0]  ;;  %v9445_v34 = vld [vmem:[#allocation6 + $0x6a4] sm:$0xf]  ;;  %v7604_v39 = vor.u32 %v9260_v24, %v7603_v22 }
 0x25c   :  { %4944 = vmatpush.bf16.msrb.mxu2 %v7760_v52  ;;  %v7936_v52 = vor.u32 %v9341_v33, %v7933_v55  ;;  %v8352_v16 = vor.u32 %v9445_v34, %v8349_v59  ;;  %v8333_v33 = vld [vmem:[#allocation6 + $0x690] sm:$0xf0]  ;;  %v7571_v55 = vld [vmem:[#allocation6 + $0x88] sm:$0xf]  ;;  %v9429_v24 = vld [vmem:[#allocation6 + $0x624] sm:$0xf] }
 0x25d   :  { %4952 = vmatpush.bf16.msrb.mxu0 %v7968_v27  ;;  %v9292_v27 = vld [vmem:[#allocation6 + $0x1d4] sm:$0xf0]  ;;  %v8336_v7 = vor.u32 %v9441_v48, %v8333_v33  ;;  %v7572_v61 = vor.u32 %v9252_v50, %v7571_v55  ;;  %v9425_v59 = vld [vmem:[#allocation6 + $0x604] sm:$0xf]  ;;  %v8259_v55 = vld [vmem:[#allocation6 + $0x5e8] sm:$0xf] }
 0x25e   :  { %4964 = vmatpush.bf16.msra.mxu3 %v8112_v2  ;;  %v3130_v2 = vadd.f32 %v3129_v23, %v3117_v41  ;;  %v7732_v10 = vor.u32 %v9292_v27, %v7731_v25  ;;  %v7715_v41 = vld [vmem:[#allocation6 + $0x1a8] sm:$0xf]  ;;  %v9329_v23 = vld [vmem:[#allocation6 + $0x304] sm:$0xf]  ;;  %v8285_v25 = vld [vmem:[#allocation6 + $0x630] sm:$0xf0] }
 0x25f   :  { %4978 = vmatpush.bf16.msra.mxu1 %v8224_v3  ;;  %v9337_v3 = vld [vmem:[#allocation6 + $0x344] sm:$0xf]  ;;  %v8288_v34 = vor.u32 %v9429_v24, %v8285_v25  ;;  %v9424_v50 = vld [vmem:[#allocation6 + $0x5f4] sm:$0xf0] }
 0x260   :  { %v3143_v4 = vadd.f32 %v10025_v60, %v3130_v2  ;;  %v7920_v60 = vor.u32 %v9337_v3, %v7917_v6  ;;  %v7716_v2 = vor.u32 %v9288_v0, %v7715_v41  ;;  %v7683_v3 = vld [vmem:[#allocation6 + $0x168] sm:$0xf]  ;;  %v9280_v6 = vld [vmem:[#allocation6 + $0x174] sm:$0xf0]  ;;  %v8260_v38 = vor.u32 %v9424_v50, %v8259_v55 }
 0x261   :  { %4953 = vmatpush.bf16.msrb.mxu0 %v7952_v30  ;;  %v9256_v30 = vld [vmem:[#allocation6 + $0xb4] sm:$0xf0]  ;;  %v7684_v9 = vor.u32 %v9280_v6, %v7683_v3 }
 0x262   :  { %4965 = vmatpush.bf16.msra.mxu3 %v8096_v1  ;;  %v3243_v1 = vmul.f32 0.2, %v3143_v4  ;;  %v7588_v46 = vor.u32 %v9256_v30, %v7587_v57  ;;  %v7507_v57 = vld [vmem:[#allocation6 + $0x8] sm:$0xf]  ;;  %v9236_v30 = vld [vmem:[#allocation6 + $0x14] sm:$0xf0] }
 0x263   :  { %4979 = vmatpush.bf16.msra.mxu1 %v8208_v37  ;;  %v8365_v37 = vld [vmem:[#allocation6 + $0x6d0] sm:$0xf0]  ;;  %v9268_v0 = vld [vmem:[#allocation6 + $0x114] sm:$0xf0] }
 0x264   :  { %v3251_v43 = vmax.f32 %v3143_v4, %v3243_v1  ;;  %v9284_v4 = vld [vmem:[#allocation6 + $0x194] sm:$0xf0] }
 0x265   :  { %4954 = vmatpush.bf16.msrb.mxu0 %v7936_v52  ;;  %v7699_v52 = vld [vmem:[#allocation6 + $0x188] sm:$0xf]  ;;  %v9248_v1 = vld [vmem:[#allocation6 + $0x74] sm:$0xf0] }
 0x266   :  { %4966 = vmatpush.bf16.msra.mxu3 %v8080_v51  ;;  %v9449_v51 = vld [vmem:[#allocation6 + $0x6c4] sm:$0xf]  ;;  %v10036_v45 = vpack.c.bf16 %v3251_v43, %v3251_v43  ;;  %v8301_v43 = vld [vmem:[#allocation6 + $0x650] sm:$0xf0]  ;;  %v9388_v3 = vld [vmem:[#allocation6 + $0x4d4] sm:$0xf0] }
 0x267   :  { %4980 = vmatpush.bf16.msra.mxu1 %v8192_v29  ;;  %v7901_v29 = vld [vmem:[#allocation6 + $0x330] sm:$0xf0]  ;;  %v8368_v20 = vor.u32 %v9449_v51, %v8365_v37  ;;  %v9276_v51 = vld [vmem:[#allocation6 + $0x154] sm:$0xf0] }
 0x268   :  { %4893 = vmatmul.bf16.vlgmr.msra.gmra.mxu2 %v10036_v45  ;;  %v9416_v24 = vld [vmem:[#allocation6 + $0x5b4] sm:$0xf0] }
 0x269   :  { %4955 = vmatpush.bf16.msrb.mxu0 %v7920_v60  ;;  %4989 = vmatpush.bf16.msra.mxu2 %v8384_v15  ;;  %v9433_v60 = vld [vmem:[#allocation6 + $0x644] sm:$0xf]  ;;  %v7667_v15 = vld [vmem:[#allocation6 + $0x148] sm:$0xf]  ;;  %v9408_v55 = vld [vmem:[#allocation6 + $0x574] sm:$0xf0] }
 0x26a   :  { %4967 = vmatpush.bf16.msra.mxu3 %v8064_v5  ;;  %v9333_v5 = vld [vmem:[#allocation6 + $0x324] sm:$0xf]  ;;  %v7668_v22 = vor.u32 %v9276_v51, %v7667_v15 }
 0x26b   :  { %4981 = vmatpush.bf16.msra.mxu1 %v8176_v44  ;;  %v7904_v31 = vor.u32 %v9333_v5, %v7901_v29  ;;  %v7885_v44 = vld [vmem:[#allocation6 + $0x310] sm:$0xf0]  ;;  %v9240_v5 = vld [vmem:[#allocation6 + $0x34] sm:$0xf0]  ;;  %v7651_v29 = vld [vmem:[#allocation6 + $0x128] sm:$0xf] }
 0x26c   :  { %v7888_v19 = vor.u32 %v9329_v23, %v7885_v44  ;;  %v7875_v23 = vld [vmem:[#allocation6 + $0x2e8] sm:$0xf] }
 0x26d   :  { %4956 = vmatpush.bf16.msrb.mxu0 %v7904_v31  ;;  %4990 = vmatpush.bf16.msra.mxu2 %v8368_v20  ;;  %v9272_v31 = vld [vmem:[#allocation6 + $0x134] sm:$0xf0] }
 0x26e   :  { %4968 = vmatpush.bf16.msra.mxu3 %v8048_v18  ;;  %v3157_v18 = vpop.f32.mrf.mxu2  ;;  %v3181_v56 = vpop.f32.mrf.mxu1 }
 0x26f   :  { %4982 = vmatpush.bf16.msra.mxu1 %v8160_v62  ;;  %v7700_v62 = vor.u32 %v9284_v4, %v7699_v52  ;;  %v7635_v18 = vld [vmem:[#allocation6 + $0x108] sm:$0xf]  ;;  %v7508_v4 = vor.u32 %v9236_v30, %v7507_v57  ;;  %v9412_v57 = vld [vmem:[#allocation6 + $0x594] sm:$0xf0] }
 0x271   :  { %4957 = vmatpush.bf16.msrb.mxu0 %v7888_v19  ;;  %4991 = vmatpush.bf16.msra.mxu2 %v8352_v16  ;;  %v9328_v19 = vld [vmem:[#allocation6 + $0x2f4] sm:$0xf0]  ;;  %v8131_v16 = vld [vmem:[#allocation6 + $0x4e8] sm:$0xf] }
 0x272   :  { %4969 = vmatpush.bf16.msra.mxu3 %v8032_v58  ;;  %v536_v58 = vperm.slane %v9993_v32, 7  ;;  %v7556_v32 = vor.u32 %v9248_v1, %v7555_v36  ;;  %v9324_v36 = vld [vmem:[#allocation6 + $0x2d4] sm:$0xf0]  ;;  %v8115_v1 = vld [vmem:[#allocation6 + $0x4c8] sm:$0xf] }
 0x273   :  { %4983 = vmatpush.bf16.msra.mxu1 %v8144_v12  ;;  %v9244_v12 = vld [vmem:[#allocation6 + $0x54] sm:$0xf0] }
 0x274   :  { %v3156_v28 = vadd.f32 %v10034_v40, %v536_v58  ;;  %v7636_v58 = vor.u32 %v9268_v0, %v7635_v18 }
 0x275   :  { %4992 = vmatpush.bf16.msra.mxu2 %v8336_v7 }
 0x276   :  { %4970 = vmatpush.bf16.msra.mxu3 %v8016_v11  ;;  %4984 = vmatmul.bf16.vlgmr.msra.gmra.mxu1 %v10011_v26  ;;  %v7539_v11 = vld [vmem:[#allocation6 + $0x48] sm:$0xf]  ;;  %v3169_v37 = vadd.f32 %v10031_v49, %v3156_v28  ;;  %v3183_v17 = vpop.f32.mrf.mxu1  ;;  %v7524_v49 = vor.u32 %v9240_v5, %v7523_v35 }
 0x277   :  { %5028 = vmatpush.bf16.msrb.mxu1 %v7748_v47  ;;  %v7540_v47 = vor.u32 %v9244_v12, %v7539_v11  ;;  %v8243_v28 = vld [vmem:[#allocation6 + $0x5c8] sm:$0xf]  ;;  %v8509_v11 = vld [vmem:[#allocation6 + $0x7f0] sm:$0xf0] }
 0x278   :  { %4945 = vmatmul.bf16.vlgmr.msrb.gmra.mxu2 %v9996_v54  ;;  %v3182_v20 = vadd.f32 %v3181_v56, %v3169_v37  ;;  %v7843_v12 = vld [vmem:[#allocation6 + $0x2a8] sm:$0xf]  ;;  %v9320_v37 = vld [vmem:[#allocation6 + $0x2b4] sm:$0xf0] }
 0x279   :  { %4971 = vmatmul.bf16.vlgmr.msra.gmra.mxu3 %v10008_v53  ;;  %4993 = vmatpush.bf16.msra.mxu2 %v8320_v8  ;;  %v9420_v8 = vld [vmem:[#allocation6 + $0x5d4] sm:$0xf0]  ;;  %v8099_v17 = vld [vmem:[#allocation6 + $0x4a8] sm:$0xf] }
 0x27a   :  { %5015 = vmatpush.bf16.msrb.mxu3 %v7620_v21  ;;  %v8304_v21 = vor.u32 %v9433_v60, %v8301_v43  ;;  %v7860_v60 = vor.u32 %v9324_v36, %v7859_v63  ;;  %v8116_v43 = vor.u32 %v9388_v3, %v8115_v1  ;;  %v8244_v51 = vor.u32 %v9420_v8, %v8243_v28  ;;  %v8051_v36 = vld [vmem:[#allocation6 + $0x448] sm:$0xf]  ;;  %v9372_v1 = vld [vmem:[#allocation6 + $0x454] sm:$0xf0] }
 0x27b   :  { %5029 = vmatpush.bf16.msrb.mxu1 %v7732_v10  ;;  %v8269_v10 = vld [vmem:[#allocation6 + $0x610] sm:$0xf0]  ;;  %v8179_v3 = vld [vmem:[#allocation6 + $0x548] sm:$0xf] }
 0x27c   :  { %v3194_v40 = vpop.f32.mrf.mxu3  ;;  %v8272_v33 = vor.u32 %v9425_v59, %v8269_v10  ;;  %v9316_v59 = vld [vmem:[#allocation6 + $0x294] sm:$0xf0]  ;;  %v8211_v10 = vld [vmem:[#allocation6 + $0x588] sm:$0xf] }
 0x27d   :  { %4994 = vmatpush.bf16.msra.mxu2 %v8304_v21  ;;  %v3195_v41 = vadd.f32 %v3194_v40, %v3182_v20  ;;  %v9384_v21 = vld [vmem:[#allocation6 + $0x4b4] sm:$0xf0]  ;;  %v7827_v20 = vld [vmem:[#allocation6 + $0x288] sm:$0xf] }
 0x27e   :  { %5016 = vmatpush.bf16.msrb.mxu3 %v7604_v39  ;;  %v3220_v27 = vpop.f32.mrf.mxu0  ;;  %v7652_v39 = vor.u32 %v9272_v31, %v7651_v29  ;;  %v3233_v48 = vpop.f32.mrf.mxu1  ;;  %v8100_v5 = vor.u32 %v9384_v21, %v8099_v17  ;;  %v9481_v29 = vld [vmem:[#allocation6 + $0x7c4] sm:$0xf]  ;;  %v8493_v31 = vld [vmem:[#allocation6 + $0x7d0] sm:$0xf0]  ;;  %v7828_v18 = vor.u32 %v9316_v59, %v7827_v20  ;;  %v8035_v17 = vld [vmem:[#allocation6 + $0x428] sm:$0xf] }
 0x27f   :  { %5030 = vmatpush.bf16.msrb.mxu1 %v7716_v2  ;;  %v8496_v30 = vor.u32 %v9481_v29, %v8493_v31  ;;  %v9368_v21 = vld [vmem:[#allocation6 + $0x434] sm:$0xf0]  ;;  %v7763_v20 = vld [vmem:[#allocation6 + $0x208] sm:$0xf] }
 0x280   :  { %v8036_v31 = vor.u32 %v9368_v21, %v8035_v17  ;;  %v8019_v59 = vld [vmem:[#allocation6 + $0x408] sm:$0xf]  ;;  %v9254_v17 = vld [vmem:[#allocation6 + $0xac] sm:$0xf] }
 0x281   :  { %4995 = vmatpush.bf16.msra.mxu2 %v8288_v34 }
 0x282   :  { %5017 = vmatpush.bf16.msrb.mxu3 %v7588_v46  ;;  %v3207_v44 = vpop.f32.mrf.mxu2  ;;  %v9392_v46 = vld [vmem:[#allocation6 + $0x4f4] sm:$0xf0] }
 0x283   :  { %5031 = vmatpush.bf16.msrb.mxu1 %v7700_v62  ;;  %v3208_v2 = vadd.f32 %v3207_v44, %v3195_v41  ;;  %v8132_v62 = vor.u32 %v9392_v46, %v8131_v16  ;;  %v9477_v41 = vld [vmem:[#allocation6 + $0x7a4] sm:$0xf]  ;;  %v7811_v44 = vld [vmem:[#allocation6 + $0x268] sm:$0xf]  ;;  %v8212_v16 = vor.u32 %v9412_v57, %v8211_v10  ;;  %v9312_v46 = vld [vmem:[#allocation6 + $0x274] sm:$0xf0] }
 0x284   :  { %v3196_v52 = vpop.f32.mrf.mxu3  ;;  %v8147_v10 = vld [vmem:[#allocation6 + $0x508] sm:$0xf]  ;;  %v9396_v57 = vld [vmem:[#allocation6 + $0x514] sm:$0xf0] }
 0x285   :  { %v3221_v56 = vadd.f32 %v3220_v27, %v3208_v2  ;;  %4996 = vmatpush.bf16.msra.mxu2 %v8272_v33  ;;  %v7844_v27 = vor.u32 %v9320_v37, %v7843_v12  ;;  %v8067_v2 = vld [vmem:[#allocation6 + $0x468] sm:$0xf]  ;;  %v9304_v37 = vld [vmem:[#allocation6 + $0x234] sm:$0xf0] }
 0x286   :  { %5018 = vmatpush.bf16.msrb.mxu3 %v7572_v61  ;;  %v3222_v7 = vpop.f32.mrf.mxu0  ;;  %v7876_v61 = vor.u32 %v9328_v19, %v7875_v23  ;;  %v8477_v23 = vld [vmem:[#allocation6 + $0x7b0] sm:$0xf0]  ;;  %v10051_v19 = vld [vmem:[#allocation7] sm:$0xf]  ;;  %v8195_v33 = vld [vmem:[#allocation6 + $0x568] sm:$0xf] }
 0x287   :  { %5032 = vmatpush.bf16.msrb.mxu1 %v7684_v9  ;;  %v3234_v6 = vadd.f32 %v3233_v48, %v3221_v56  ;;  %v9376_v48 = vld [vmem:[#allocation6 + $0x474] sm:$0xf0]  ;;  %v8480_v52 = vor.u32 %v9477_v41, %v8477_v23  ;;  %v9473_v7 = vld [vmem:[#allocation6 + $0x784] sm:$0xf]  ;;  %v8196_v63 = vor.u32 %v9408_v55, %v8195_v33  ;;  %v8387_v41 = vld [vmem:[#allocation6 + $0x6e8] sm:$0xf] }
 0x288   :  { %4997 = vmatmul.bf16.vlgmr.msra.gmra.mxu2 %v10036_v45  ;;  %v8068_v56 = vor.u32 %v9376_v48, %v8067_v2  ;;  %v7749_v2 = vld [vmem:[#allocation6 + $0x1f8] sm:$0xf0] }
 0x289   :  { %v3244_v9 = vmul.f32 0.2, %v3234_v6  ;;  %5041 = vmatpush.bf16.msrb.mxu2 %v7876_v61  ;;  %v8461_v61 = vld [vmem:[#allocation6 + $0x790] sm:$0xf0] }
 0x28a   :  { %5019 = vmatpush.bf16.msrb.mxu3 %v7556_v32  ;;  %v9485_v32 = vld [vmem:[#allocation6 + $0x7e4] sm:$0xf]  ;;  %v3209_v15 = vpop.f32.mrf.mxu2  ;;  %v8464_v28 = vor.u32 %v9473_v7, %v8461_v61 }
 0x28b   :  { %5033 = vmatpush.bf16.msrb.mxu1 %v7668_v22  ;;  %v3252_v40 = vmax.f32 %v3234_v6, %v3244_v9  ;;  %v8227_v22 = vld [vmem:[#allocation6 + $0x5a8] sm:$0xf]  ;;  %v8512_v25 = vor.u32 %v9485_v32, %v8509_v11  ;;  %v9404_v6 = vld [vmem:[#allocation6 + $0x554] sm:$0xf0]  ;;  %v8052_v9 = vor.u32 %v9372_v1, %v8051_v36  ;;  %v9258_v36 = vld [vmem:[#allocation6 + $0xcc] sm:$0xf] }
 0x28c   :  { %v8228_v34 = vor.u32 %v9416_v24, %v8227_v22  ;;  %v7779_v11 = vld [vmem:[#allocation6 + $0x228] sm:$0xf] }
 0x28d   :  { %v10048_v35 = vpack.c.bf16 %v3252_v40, %v3252_v40  ;;  %5042 = vmatpush.bf16.msrb.mxu2 %v7860_v60  ;;  %v9469_v60 = vld [vmem:[#allocation6 + $0x764] sm:$0xf]  ;;  %v8163_v40 = vld [vmem:[#allocation6 + $0x528] sm:$0xf]  ;;  %v7780_v29 = vor.u32 %v9304_v37, %v7779_v11  ;;  %v9448_v37 = vld [vmem:[#allocation6 + $0x6b4] sm:$0xf0] }
 0x28e   :  { %5020 = vmatpush.bf16.msrb.mxu3 %v7540_v47  ;;  %v3235_v47 = vpop.f32.mrf.mxu1 }
 0x28f   :  { %5034 = vmatpush.bf16.msrb.mxu1 %v7652_v39  ;;  %v9380_v39 = vld [vmem:[#allocation6 + $0x494] sm:$0xf0]  ;;  %4906 = vmatmul.bf16.vlgmr.msra.gmra.mxu0 %v10048_v35 }
 0x290   :  { %5002 = vmatpush.bf16.msra.mxu0 %v8512_v25  ;;  %v9400_v47 = vld [vmem:[#allocation6 + $0x534] sm:$0xf0] }
 0x291   :  { %5043 = vmatpush.bf16.msrb.mxu2 %v7844_v27  ;;  %v9465_v27 = vld [vmem:[#allocation6 + $0x744] sm:$0xf] }
 0x292   :  { %5021 = vmatpush.bf16.msrb.mxu3 %v7524_v49  ;;  %v8083_v49 = vld [vmem:[#allocation6 + $0x488] sm:$0xf] }
 0x293   :  { %5035 = vmatpush.bf16.msrb.mxu1 %v7636_v58  ;;  %v8084_v0 = vor.u32 %v9380_v39, %v8083_v49  ;;  %v7812_v58 = vor.u32 %v9312_v46, %v7811_v44  ;;  %v8164_v49 = vor.u32 %v9400_v47, %v8163_v40  ;;  %v9364_v39 = vld [vmem:[#allocation6 + $0x414] sm:$0xf0]  ;;  %v9294_v46 = vld [vmem:[#allocation6 + $0x1ec] sm:$0xf]  ;;  %v7589_v40 = vld [vmem:[#allocation6 + $0xb8] sm:$0xf0] }
 0x294   :  { %5003 = vmatpush.bf16.msra.mxu0 %v8496_v30  ;;  %v8020_v55 = vor.u32 %v9364_v39, %v8019_v59  ;;  %v9286_v47 = vld [vmem:[#allocation6 + $0x1ac] sm:$0xf] }
 0x295   :  { %5044 = vmatpush.bf16.msrb.mxu2 %v7828_v18  ;;  %v9456_v18 = vld [vmem:[#allocation6 + $0x6f4] sm:$0xf0]  ;;  %v9250_v59 = vld [vmem:[#allocation6 + $0x8c] sm:$0xf] }
 0x296   :  { %5022 = vmatpush.bf16.msrb.mxu3 %v7508_v4  ;;  %5036 = vmatmul.bf16.vlgmr.msrb.gmra.mxu1 %v9986_v14  ;;  %v4829_v50 = vpop.f32.mrf.mxu1  ;;  %v3519_v4 = vperm.slane %v10051_v19, 0  ;;  %v9282_v39 = vld [vmem:[#allocation6 + $0x18c] sm:$0xf] }
 0x297   :  { %5080 = vmatpush.bf16.msra.mxu1 %v8260_v38  ;;  %v9308_v38 = vld [vmem:[#allocation6 + $0x254] sm:$0xf0] }
 0x298   :  { %5004 = vmatpush.bf16.msra.mxu0 %v8480_v52  ;;  %v8413_v52 = vld [vmem:[#allocation6 + $0x730] sm:$0xf0] }
 0x299   :  { %5023 = vmatmul.bf16.vlgmr.msrb.gmra.mxu3 %v9984_v13  ;;  %5045 = vmatpush.bf16.msrb.mxu2 %v7812_v58  ;;  %v8148_v58 = vor.u32 %v9396_v57, %v8147_v10  ;;  %v7701_v10 = vld [vmem:[#allocation6 + $0x198] sm:$0xf0] }
 0x29a   :  { %5067 = vmatpush.bf16.msra.mxu3 %v8132_v62  ;;  %v7795_v62 = vld [vmem:[#allocation6 + $0x248] sm:$0xf] }
 0x29b   :  { %5081 = vmatpush.bf16.msra.mxu1 %v8244_v51  ;;  %v7796_v32 = vor.u32 %v9308_v38, %v7795_v62  ;;  %v8180_v51 = vor.u32 %v9404_v6, %v8179_v3  ;;  %v7752_v62 = vor.u32 %v9294_v46, %v7749_v2  ;;  %v9452_v38 = vld [vmem:[#allocation6 + $0x6d4] sm:$0xf0]  ;;  %v7605_v3 = vld [vmem:[#allocation6 + $0xd8] sm:$0xf0]  ;;  %v9290_v6 = vld [vmem:[#allocation6 + $0x1cc] sm:$0xf] }
 0x29c   :  { %v4816_v8 = vpop.f32.mrf.mxu3  ;;  %5005 = vmatpush.bf16.msra.mxu0 %v8464_v28  ;;  %v7733_v28 = vld [vmem:[#allocation6 + $0x1d8] sm:$0xf0]  ;;  %v9246_v46 = vld [vmem:[#allocation6 + $0x6c] sm:$0xf] }
 0x29d   :  { %v4817_v12 = vadd.f32 %v4816_v8, %v3519_v4  ;;  %5046 = vmatpush.bf16.msrb.mxu2 %v7796_v32  ;;  %v9457_v8 = vld [vmem:[#allocation6 + $0x704] sm:$0xf]  ;;  %v8397_v32 = vld [vmem:[#allocation6 + $0x710] sm:$0xf0]  ;;  %v7557_v2 = vld [vmem:[#allocation6 + $0x78] sm:$0xf0] }
 0x29e   :  { %5068 = vmatpush.bf16.msra.mxu3 %v8116_v43  ;;  %v8445_v43 = vld [vmem:[#allocation6 + $0x770] sm:$0xf0]  ;;  %v4855_v15 = vpop.f32.mrf.mxu0  ;;  %v4831_v22 = vpop.f32.mrf.mxu1  ;;  %v8400_v21 = vor.u32 %v9457_v8, %v8397_v32  ;;  %v7939_v8 = vld [vmem:[#allocation6 + $0x368] sm:$0xf]  ;;  %v9344_v32 = vld [vmem:[#allocation6 + $0x374] sm:$0xf0] }
 0x29f   :  { %5082 = vmatpush.bf16.msra.mxu1 %v8228_v34  ;;  %v4830_v24 = vadd.f32 %v4829_v50, %v4817_v12  ;;  %v8448_v25 = vor.u32 %v9469_v60, %v8445_v43  ;;  %v9300_v34 = vld [vmem:[#allocation6 + $0x214] sm:$0xf0]  ;;  %4958 = vmatmul.bf16.vlgmr.msrb.gmra.mxu0 %v9999_v42  ;;  %v9461_v50 = vld [vmem:[#allocation6 + $0x724] sm:$0xf]  ;;  %v8003_v60 = vld [vmem:[#allocation6 + $0x3e8] sm:$0xf]  ;;  %v7608_v12 = vor.u32 %v9258_v36, %v7605_v3 }
 0x2a0   :  { %v7764_v33 = vor.u32 %v9300_v34, %v7763_v20  ;;  %v8416_v1 = vor.u32 %v9461_v50, %v8413_v52  ;;  %v9360_v43 = vld [vmem:[#allocation6 + $0x3f4] sm:$0xf0]  ;;  %v7717_v22 = vld [vmem:[#allocation6 + $0x1b8] sm:$0xf0]  ;;  %v8339_v20 = vld [vmem:[#allocation6 + $0x688] sm:$0xf] }
 0x2a1   :  { %5006 = vmatpush.bf16.msra.mxu0 %v8448_v25  ;;  %5047 = vmatpush.bf16.msrb.mxu2 %v7780_v29  ;;  %v7592_v29 = vor.u32 %v9254_v17, %v7589_v40  ;;  %v9444_v34 = vld [vmem:[#allocation6 + $0x694] sm:$0xf0]  ;;  %v7955_v52 = vld [vmem:[#allocation6 + $0x388] sm:$0xf]  ;;  %v9274_v36 = vld [vmem:[#allocation6 + $0x14c] sm:$0xf] }
 0x2a2   :  { %5069 = vmatpush.bf16.msra.mxu3 %v8100_v5  ;;  %v8429_v5 = vld [vmem:[#allocation6 + $0x750] sm:$0xf0]  ;;  %v4842_v30 = vpop.f32.mrf.mxu2  ;;  %v9270_v17 = vld [vmem:[#allocation6 + $0x12c] sm:$0xf] }
 0x2a3   :  { %5083 = vmatpush.bf16.msra.mxu1 %v8212_v16  ;;  %v4843_v23 = vadd.f32 %v4842_v30, %v4830_v24  ;;  %v8432_v44 = vor.u32 %v9465_v27, %v8429_v5  ;;  %v7621_v16 = vld [vmem:[#allocation6 + $0xf8] sm:$0xf0]  ;;  %v8004_v24 = vor.u32 %v9360_v43, %v8003_v60  ;;  %v7987_v27 = vld [vmem:[#allocation6 + $0x3c8] sm:$0xf]  ;;  %v9356_v5 = vld [vmem:[#allocation6 + $0x3d4] sm:$0xf0]  ;;  %v8340_v30 = vor.u32 %v9444_v34, %v8339_v20 }
 0x2a4   :  { %v4818_v48 = vpop.f32.mrf.mxu3  ;;  %v7988_v57 = vor.u32 %v9356_v5, %v7987_v27  ;;  %v8275_v27 = vld [vmem:[#allocation6 + $0x608] sm:$0xf]  ;;  %v7509_v20 = vld [vmem:[#allocation6 + $0x18] sm:$0xf0]  ;;  %v9266_v34 = vld [vmem:[#allocation6 + $0x10c] sm:$0xf] }
 0x2a5   :  { %v10055_v7 = vadd.f32 %v4855_v15, %v4843_v23  ;;  %5007 = vmatpush.bf16.msra.mxu0 %v8432_v44  ;;  %5048 = vmatpush.bf16.msrb.mxu2 %v7764_v33  ;;  %v7736_v15 = vor.u32 %v9290_v6, %v7733_v28  ;;  %v7704_v23 = vor.u32 %v9282_v39, %v7701_v10  ;;  %v8323_v44 = vld [vmem:[#allocation6 + $0x668] sm:$0xf]  ;;  %v9278_v48 = vld [vmem:[#allocation6 + $0x16c] sm:$0xf]  ;;  %v7685_v33 = vld [vmem:[#allocation6 + $0x178] sm:$0xf0] }
 0x2a6   :  { %5070 = vmatpush.bf16.msra.mxu3 %v8084_v0  ;;  %v9262_v0 = vld [vmem:[#allocation6 + $0xec] sm:$0xf]  ;;  %v4857_v4 = vpop.f32.mrf.mxu0  ;;  %v7877_v10 = vld [vmem:[#allocation6 + $0x2f8] sm:$0xf0] }
 0x2a7   :  { %5084 = vmatpush.bf16.msra.mxu1 %v8196_v63  ;;  %v7624_v61 = vor.u32 %v9262_v0, %v7621_v16  ;;  %v8371_v63 = vld [vmem:[#allocation6 + $0x6c8] sm:$0xf]  ;;  %v9440_v16 = vld [vmem:[#allocation6 + $0x674] sm:$0xf0] }
 0x2a8   :  { %5049 = vmatmul.bf16.vlgmr.msrb.gmra.mxu2 %v9996_v54  ;;  %v8324_v50 = vor.u32 %v9440_v16, %v8323_v44  ;;  %v9348_v4 = vld [vmem:[#allocation6 + $0x394] sm:$0xf0] }
 0x2a9   :  { %5008 = vmatpush.bf16.msra.mxu0 %v8416_v1  ;;  %v7669_v1 = vld [vmem:[#allocation6 + $0x158] sm:$0xf0]  ;;  %v7956_v3 = vor.u32 %v9348_v4, %v7955_v52 }
 0x2aa   :  { %5071 = vmatpush.bf16.msra.mxu3 %v8068_v56  ;;  %v8388_v56 = vor.u32 %v9456_v18, %v8387_v41  ;;  %v4844_v11 = vpop.f32.mrf.mxu2  ;;  %v7971_v41 = vld [vmem:[#allocation6 + $0x3a8] sm:$0xf]  ;;  %v9352_v18 = vld [vmem:[#allocation6 + $0x3b4] sm:$0xf0]  ;;  %v7672_v43 = vor.u32 %v9274_v36, %v7669_v1  ;;  %v7861_v4 = vld [vmem:[#allocation6 + $0x2d8] sm:$0xf0] }
 0x2ab   :  { %5085 = vmatpush.bf16.msra.mxu1 %v8180_v51  ;;  %v8355_v51 = vld [vmem:[#allocation6 + $0x6a8] sm:$0xf]  ;;  %v9332_v36 = vld [vmem:[#allocation6 + $0x314] sm:$0xf0] }
 0x2ac   :  { %5093 = vmatpush.bf16.msra.mxu2 %v8388_v56  ;;  %v8356_v25 = vor.u32 %v9448_v37, %v8355_v51  ;;  %v7688_v56 = vor.u32 %v9278_v48, %v7685_v33  ;;  %v8291_v11 = vld [vmem:[#allocation6 + $0x628] sm:$0xf]  ;;  %v7525_v37 = vld [vmem:[#allocation6 + $0x38] sm:$0xf0] }
 0x2ad   :  { %5009 = vmatpush.bf16.msra.mxu0 %v8400_v21  ;;  %v7653_v21 = vld [vmem:[#allocation6 + $0x138] sm:$0xf0] }
 0x2ae   :  { %5072 = vmatpush.bf16.msra.mxu3 %v8052_v9  ;;  %v8372_v9 = vor.u32 %v9452_v38, %v8371_v63  ;;  %v9242_v63 = vld [vmem:[#allocation6 + $0x4c] sm:$0xf]  ;;  %v7541_v38 = vld [vmem:[#allocation6 + $0x58] sm:$0xf0]  ;;  %v7656_v5 = vor.u32 %v9270_v17, %v7653_v21  ;;  %v8499_v21 = vld [vmem:[#allocation6 + $0x7c8] sm:$0xf] }
 0x2af   :  { %5086 = vmatpush.bf16.msra.mxu1 %v8164_v49  ;;  %v7573_v49 = vld [vmem:[#allocation6 + $0x98] sm:$0xf0]  ;;  %v7544_v60 = vor.u32 %v9242_v63, %v7541_v38  ;;  %v7891_v38 = vld [vmem:[#allocation6 + $0x308] sm:$0xf] }
 0x2b0   :  { %5094 = vmatpush.bf16.msra.mxu2 %v8372_v9  ;;  %v7576_v0 = vor.u32 %v9250_v59, %v7573_v49  ;;  %5010 = vmatmul.bf16.vlgmr.msra.gmra.mxu0 %v10048_v35  ;;  %v7637_v59 = vld [vmem:[#allocation6 + $0x118] sm:$0xf0]  ;;  %v9326_v49 = vld [vmem:[#allocation6 + $0x2ec] sm:$0xf] }
 0x2b1   :  { %5054 = vmatpush.bf16.msrb.mxu0 %v8004_v24  ;;  %v7923_v24 = vld [vmem:[#allocation6 + $0x348] sm:$0xf]  ;;  %v7640_v16 = vor.u32 %v9266_v34, %v7637_v59  ;;  %v7880_v33 = vor.u32 %v9326_v49, %v7877_v10  ;;  %v8245_v63 = vld [vmem:[#allocation6 + $0x5d8] sm:$0xf0]  ;;  %v9480_v34 = vld [vmem:[#allocation6 + $0x7b4] sm:$0xf0] }
 0x2b2   :  { %5073 = vmatpush.bf16.msra.mxu3 %v8036_v31  ;;  %v7720_v31 = vor.u32 %v9286_v47, %v7717_v22  ;;  %v7940_v47 = vor.u32 %v9344_v32, %v7939_v8  ;;  %v9318_v8 = vld [vmem:[#allocation6 + $0x2ac] sm:$0xf] }
 0x2b3   :  { %5087 = vmatpush.bf16.msra.mxu1 %v8148_v58  ;;  %v7560_v58 = vor.u32 %v9246_v46, %v7557_v2  ;;  %v4881_v51 = vpop.f32.mrf.mxu1  ;;  %v7907_v46 = vld [vmem:[#allocation6 + $0x328] sm:$0xf]  ;;  %v9336_v2 = vld [vmem:[#allocation6 + $0x334] sm:$0xf0]  ;;  %v9310_v59 = vld [vmem:[#allocation6 + $0x26c] sm:$0xf] }
 0x2b4   :  { %5095 = vmatpush.bf16.msra.mxu2 %v8356_v25  ;;  %v9340_v25 = vld [vmem:[#allocation6 + $0x354] sm:$0xf0]  ;;  %v9374_v10 = vld [vmem:[#allocation6 + $0x46c] sm:$0xf] }
 0x2b5   :  { %5055 = vmatpush.bf16.msrb.mxu0 %v7988_v57  ;;  %v7924_v39 = vor.u32 %v9340_v25, %v7923_v24  ;;  %v9390_v57 = vld [vmem:[#allocation6 + $0x4ec] sm:$0xf]  ;;  %v7829_v25 = vld [vmem:[#allocation6 + $0x298] sm:$0xf0] }
 0x2b6   :  { %5074 = vmatpush.bf16.msra.mxu3 %v8020_v55  ;;  %5088 = vmatmul.bf16.vlgmr.msra.gmra.mxu1 %v10011_v26  ;;  %v7972_v55 = vor.u32 %v9352_v18, %v7971_v41 }
 0x2b7   :  { %5132 = vmatpush.bf16.msrb.mxu1 %v7752_v62  ;;  %v9436_v62 = vld [vmem:[#allocation6 + $0x654] sm:$0xf0] }
 0x2b8   :  { %5096 = vmatpush.bf16.msra.mxu2 %v8340_v30  ;;  %v8133_v30 = vld [vmem:[#allocation6 + $0x4f8] sm:$0xf0] }
 0x2b9   :  { %5075 = vmatmul.bf16.vlgmr.msra.gmra.mxu3 %v10008_v53  ;;  %5056 = vmatpush.bf16.msrb.mxu0 %v7972_v55  ;;  %v8136_v55 = vor.u32 %v9390_v57, %v8133_v30  ;;  %v8069_v57 = vld [vmem:[#allocation6 + $0x478] sm:$0xf0] }
 0x2ba   :  { %5119 = vmatpush.bf16.msrb.mxu3 %v7624_v61  ;;  %v8307_v61 = vld [vmem:[#allocation6 + $0x648] sm:$0xf] }
 0x2bb   :  { %5133 = vmatpush.bf16.msrb.mxu1 %v7736_v15  ;;  %v8308_v28 = vor.u32 %v9436_v62, %v8307_v61  ;;  %v9238_v15 = vld [vmem:[#allocation6 + $0x2c] sm:$0xf]  ;;  %v4883_v48 = vpop.f32.mrf.mxu1  ;;  %v7908_v61 = vor.u32 %v9336_v2, %v7907_v46  ;;  %v8467_v46 = vld [vmem:[#allocation6 + $0x788] sm:$0xf]  ;;  %v9476_v2 = vld [vmem:[#allocation6 + $0x794] sm:$0xf0] }
 0x2bc   :  { %5097 = vmatpush.bf16.msra.mxu2 %v8324_v50  ;;  %v4868_v6 = vpop.f32.mrf.mxu3  ;;  %v9322_v50 = vld [vmem:[#allocation6 + $0x2cc] sm:$0xf] }
 0x2bd   :  { %v4869_v9 = vadd.f32 %v4868_v6, %v10055_v7  ;;  %5057 = vmatpush.bf16.msrb.mxu0 %v7956_v3  ;;  %v7528_v7 = vor.u32 %v9238_v15, %v7525_v37  ;;  %v9418_v62 = vld [vmem:[#allocation6 + $0x5cc] sm:$0xf]  ;;  %v7864_v1 = vor.u32 %v9322_v50, %v7861_v4  ;;  %v8515_v6 = vld [vmem:[#allocation6 + $0x7e8] sm:$0xf]  ;;  %v8229_v15 = vld [vmem:[#allocation6 + $0x5b8] sm:$0xf0] }
 0x2be   :  { %5120 = vmatpush.bf16.msrb.mxu3 %v7608_v12  ;;  %v9432_v12 = vld [vmem:[#allocation6 + $0x634] sm:$0xf0]  ;;  %v8248_v32 = vor.u32 %v9418_v62, %v8245_v63  ;;  %v9306_v48 = vld [vmem:[#allocation6 + $0x24c] sm:$0xf] }
 0x2bf   :  { %5134 = vmatpush.bf16.msrb.mxu1 %v7720_v31  ;;  %v10062_v40 = vadd.f32 %v4881_v51, %v4869_v9  ;;  %v8292_v22 = vor.u32 %v9432_v12, %v8291_v11  ;;  %v9234_v31 = vld [vmem:[#allocation6 + $0xc] sm:$0xf]  ;;  %v7845_v9 = vld [vmem:[#allocation6 + $0x2b8] sm:$0xf0]  ;;  %v7892_v11 = vor.u32 %v9332_v36, %v7891_v38  ;;  %v8451_v38 = vld [vmem:[#allocation6 + $0x768] sm:$0xf] }
 0x2c0   :  { %5098 = vmatpush.bf16.msra.mxu2 %v8308_v28  ;;  %v7512_v44 = vor.u32 %v9234_v31, %v7509_v20  ;;  %v9488_v28 = vld [vmem:[#allocation6 + $0x7f4] sm:$0xf0]  ;;  %v9414_v12 = vld [vmem:[#allocation6 + $0x5ac] sm:$0xf]  ;;  %v7848_v37 = vor.u32 %v9318_v8, %v7845_v9  ;;  %v8483_v20 = vld [vmem:[#allocation6 + $0x7a8] sm:$0xf] }
 0x2c1   :  { %5058 = vmatpush.bf16.msrb.mxu0 %v7940_v47  ;;  %v8516_v51 = vor.u32 %v9488_v28, %v8515_v6  ;;  %v9484_v47 = vld [vmem:[#allocation6 + $0x7d4] sm:$0xf0]  ;;  %v8232_v24 = vor.u32 %v9414_v12, %v8229_v15  ;;  %v9370_v50 = vld [vmem:[#allocation6 + $0x44c] sm:$0xf]  ;;  %v7781_v6 = vld [vmem:[#allocation6 + $0x238] sm:$0xf0] }
 0x2c2   :  { %5121 = vmatpush.bf16.msrb.mxu3 %v7592_v29  ;;  %v9428_v29 = vld [vmem:[#allocation6 + $0x614] sm:$0xf0]  ;;  %v9402_v4 = vld [vmem:[#allocation6 + $0x54c] sm:$0xf]  ;;  %v8037_v8 = vld [vmem:[#allocation6 + $0x438] sm:$0xf0] }
 0x2c3   :  { %5135 = vmatpush.bf16.msrb.mxu1 %v7704_v23  ;;  %v8276_v18 = vor.u32 %v9428_v29, %v8275_v27  ;;  %v8261_v23 = vld [vmem:[#allocation6 + $0x5f8] sm:$0xf0]  ;;  %v9378_v27 = vld [vmem:[#allocation6 + $0x48c] sm:$0xf]  ;;  %v8500_v29 = vor.u32 %v9484_v47, %v8499_v21  ;;  %v9472_v36 = vld [vmem:[#allocation6 + $0x774] sm:$0xf0] }
 0x2c4   :  { %5099 = vmatpush.bf16.msra.mxu2 %v8292_v22  ;;  %v4870_v41 = vpop.f32.mrf.mxu3  ;;  %v9314_v22 = vld [vmem:[#allocation6 + $0x28c] sm:$0xf]  ;;  %v8435_v12 = vld [vmem:[#allocation6 + $0x748] sm:$0xf]  ;;  %v7765_v21 = vld [vmem:[#allocation6 + $0x218] sm:$0xf0] }
 0x2c5   :  { %5059 = vmatpush.bf16.msrb.mxu0 %v7924_v39  ;;  %v7813_v39 = vld [vmem:[#allocation6 + $0x278] sm:$0xf0]  ;;  %v9406_v41 = vld [vmem:[#allocation6 + $0x56c] sm:$0xf] }
 0x2c6   :  { %5122 = vmatpush.bf16.msrb.mxu3 %v7576_v0  ;;  %v9422_v0 = vld [vmem:[#allocation6 + $0x5ec] sm:$0xf] }
 0x2c7   :  { %5136 = vmatpush.bf16.msrb.mxu1 %v7688_v56  ;;  %v8264_v52 = vor.u32 %v9422_v0, %v8261_v23  ;;  %v8117_v56 = vld [vmem:[#allocation6 + $0x4d8] sm:$0xf0]  ;;  %v8484_v0 = vor.u32 %v9480_v34, %v8483_v20  ;;  %v3520_v23 = vperm.slane %v10051_v19, 1  ;;  %v9366_v28 = vld [vmem:[#allocation6 + $0x42c] sm:$0xf] }
 0x2c8   :  { %5100 = vmatpush.bf16.msra.mxu2 %v8276_v18  ;;  %v8197_v18 = vld [vmem:[#allocation6 + $0x578] sm:$0xf0]  ;;  %v9398_v9 = vld [vmem:[#allocation6 + $0x52c] sm:$0xf] }
 0x2c9   :  { %5060 = vmatpush.bf16.msrb.mxu0 %v7908_v61  ;;  %v8468_v61 = vor.u32 %v9476_v2, %v8467_v46  ;;  %v9358_v2 = vld [vmem:[#allocation6 + $0x3ec] sm:$0xf] }
 0x2ca   :  { %5123 = vmatpush.bf16.msrb.mxu3 %v7560_v58  ;;  %v9386_v58 = vld [vmem:[#allocation6 + $0x4cc] sm:$0xf] }
 0x2cb   :  { %5137 = vmatpush.bf16.msrb.mxu1 %v7672_v43  ;;  %v8120_v3 = vor.u32 %v9386_v58, %v8117_v56  ;;  %5101 = vmatmul.bf16.vlgmr.msra.gmra.mxu2 %v10036_v45  ;;  %v8101_v43 = vld [vmem:[#allocation6 + $0x4b8] sm:$0xf0] }
 0x2cc   :  { %5145 = vmatpush.bf16.msrb.mxu2 %v7880_v33  ;;  %v8200_v33 = vor.u32 %v9406_v41, %v8197_v18  ;;  %v8181_v58 = vld [vmem:[#allocation6 + $0x558] sm:$0xf0] }
 0x2cd   :  { %5061 = vmatpush.bf16.msrb.mxu0 %v7892_v11  ;;  %v8452_v11 = vor.u32 %v9472_v36, %v8451_v38  ;;  %v8341_v38 = vld [vmem:[#allocation6 + $0x698] sm:$0xf0] }
 0x2ce   :  { %5124 = vmatpush.bf16.msrb.mxu3 %v7544_v60  ;;  %v9382_v60 = vld [vmem:[#allocation6 + $0x4ac] sm:$0xf] }
 0x2cf   :  { %5138 = vmatpush.bf16.msrb.mxu1 %v7656_v5  ;;  %v8104_v17 = vor.u32 %v9382_v60, %v8101_v43  ;;  %v8213_v5 = vld [vmem:[#allocation6 + $0x598] sm:$0xf0] }
 0x2d0   :  { %5146 = vmatpush.bf16.msrb.mxu2 %v7864_v1  ;;  %5062 = vmatmul.bf16.vlgmr.msrb.gmra.mxu0 %v9999_v42  ;;  %v9302_v1 = vld [vmem:[#allocation6 + $0x22c] sm:$0xf]  ;;  %v8165_v60 = vld [vmem:[#allocation6 + $0x538] sm:$0xf0] }
 0x2d1   :  { %5106 = vmatpush.bf16.msra.mxu0 %v8516_v51  ;;  %v7784_v15 = vor.u32 %v9302_v1, %v7781_v6  ;;  %v8040_v51 = vor.u32 %v9366_v28, %v8037_v8  ;;  %v8168_v47 = vor.u32 %v9398_v9, %v8165_v60  ;;  %v8555_v1 = vld [vmem:[#allocation9 + $0x40] sm:$0xf]  ;;  %v9350_v6 = vld [vmem:[#allocation6 + $0x3ac] sm:$0xf]  ;;  %v8643_v8 = vld [vmem:[#allocation9 + $0xf0] sm:$0xf] }
 0x2d2   :  { %5125 = vmatpush.bf16.msrb.mxu3 %v7528_v7  ;;  %v8085_v7 = vld [vmem:[#allocation6 + $0x498] sm:$0xf0] }
 0x2d3   :  { %5139 = vmatpush.bf16.msrb.mxu1 %v7640_v16  ;;  %v8088_v31 = vor.u32 %v9378_v27, %v8085_v7  ;;  %v4933_v30 = vpop.f32.mrf.mxu1  ;;  %v8072_v16 = vor.u32 %v9374_v10, %v8069_v57  ;;  %v8149_v27 = vld [vmem:[#allocation6 + $0x518] sm:$0xf0]  ;;  %v9454_v7 = vld [vmem:[#allocation6 + $0x6ec] sm:$0xf] }
 0x2d4   :  { %5147 = vmatpush.bf16.msrb.mxu2 %v7848_v37  ;;  %v9468_v37 = vld [vmem:[#allocation6 + $0x754] sm:$0xf0]  ;;  %v9450_v57 = vld [vmem:[#allocation6 + $0x6cc] sm:$0xf]  ;;  %v8325_v9 = vld [vmem:[#allocation6 + $0x678] sm:$0xf0] }
 0x2d5   :  { %5107 = vmatpush.bf16.msra.mxu0 %v8500_v29  ;;  %v8436_v29 = vor.u32 %v9468_v37, %v8435_v12 }
 0x2d6   :  { %5126 = vmatpush.bf16.msrb.mxu3 %v7512_v44  ;;  %5140 = vmatmul.bf16.vlgmr.msrb.gmra.mxu1 %v9986_v14  ;;  %v7832_v14 = vor.u32 %v9314_v22, %v7829_v25  ;;  %v7816_v44 = vor.u32 %v9310_v59, %v7813_v39  ;;  %v9362_v22 = vld [vmem:[#allocation6 + $0x40c] sm:$0xf]  ;;  %v8419_v59 = vld [vmem:[#allocation6 + $0x728] sm:$0xf] }
 0x2d7   :  { %5184 = vmatpush.bf16.msra.mxu1 %v8264_v52  ;;  %v8053_v52 = vld [vmem:[#allocation6 + $0x458] sm:$0xf0]  ;;  %v9394_v25 = vld [vmem:[#allocation6 + $0x50c] sm:$0xf] }
 0x2d8   :  { %5148 = vmatpush.bf16.msrb.mxu2 %v7832_v14  ;;  %v8056_v63 = vor.u32 %v9370_v50, %v8053_v52  ;;  %v8579_v14 = vld [vmem:[#allocation9 + $0x70] sm:$0xf]  ;;  %v8152_v39 = vor.u32 %v9394_v25, %v8149_v27  ;;  %v9518_v25 = vld [vmem:[#allocation9 + $0xe4] sm:$0xf0] }
 0x2d9   :  { %5127 = vmatmul.bf16.vlgmr.msrb.gmra.mxu3 %v9984_v13  ;;  %v9410_v13 = vld [vmem:[#allocation6 + $0x58c] sm:$0xf]  ;;  %5108 = vmatpush.bf16.msra.mxu0 %v8484_v0  ;;  %v8571_v0 = vld [vmem:[#allocation9 + $0x60] sm:$0xf] }
 0x2da   :  { %5171 = vmatpush.bf16.msra.mxu3 %v8136_v55  ;;  %v8216_v49 = vor.u32 %v9410_v13, %v8213_v5  ;;  %v7797_v55 = vld [vmem:[#allocation6 + $0x258] sm:$0xf0]  ;;  %v9434_v27 = vld [vmem:[#allocation6 + $0x64c] sm:$0xf] }
 0x2db   :  { %5185 = vmatpush.bf16.msra.mxu1 %v8248_v32  ;;  %v7800_v62 = vor.u32 %v9306_v48, %v7797_v55  ;;  %v4935_v32 = vpop.f32.mrf.mxu1  ;;  %v8389_v13 = vld [vmem:[#allocation6 + $0x6f8] sm:$0xf0] }
 0x2dc   :  { %v4920_v56 = vpop.f32.mrf.mxu3  ;;  %5149 = vmatpush.bf16.msrb.mxu2 %v7816_v44  ;;  %v8392_v10 = vor.u32 %v9454_v7, %v8389_v13  ;;  %v8403_v44 = vld [vmem:[#allocation6 + $0x708] sm:$0xf]  ;;  %v8005_v48 = vld [vmem:[#allocation6 + $0x3f8] sm:$0xf0]  ;;  %v9438_v32 = vld [vmem:[#allocation6 + $0x66c] sm:$0xf] }
 0x2dd   :  { %v4921_v19 = vadd.f32 %v4920_v56, %v3520_v23  ;;  %5109 = vmatpush.bf16.msra.mxu0 %v8468_v61  ;;  %v9502_v23 = vld [vmem:[#allocation9 + $0x64] sm:$0xf0]  ;;  %v8357_v55 = vld [vmem:[#allocation6 + $0x6b8] sm:$0xf0]  ;;  %v8008_v56 = vor.u32 %v9358_v2, %v8005_v48 }
 0x2de   :  { %5172 = vmatpush.bf16.msra.mxu3 %v8120_v3  ;;  %v8184_v3 = vor.u32 %v9402_v4, %v8181_v58  ;;  %v8572_v50 = vor.u32 %v9502_v23, %v8571_v0  ;;  %v8563_v4 = vld [vmem:[#allocation9 + $0x50] sm:$0xf]  ;;  %v9500_v58 = vld [vmem:[#allocation9 + $0x54] sm:$0xf0] }
 0x2df   :  { %5186 = vmatpush.bf16.msra.mxu1 %v8232_v24  ;;  %v10069_v43 = vadd.f32 %v4933_v30, %v4921_v19  ;;  %v8021_v24 = vld [vmem:[#allocation6 + $0x418] sm:$0xf0]  ;;  %v9354_v19 = vld [vmem:[#allocation6 + $0x3cc] sm:$0xf]  ;;  %v8564_v36 = vor.u32 %v9500_v58, %v8563_v4  ;;  %v8531_v23 = vld [vmem:[#allocation9 + $0x10] sm:$0xf] }
 0x2e0   :  { %5150 = vmatpush.bf16.msrb.mxu2 %v7800_v62  ;;  %v8024_v34 = vor.u32 %v9362_v22, %v8021_v24  ;;  %v8373_v30 = vld [vmem:[#allocation6 + $0x6d8] sm:$0xf0]  ;;  %v8635_v24 = vld [vmem:[#allocation9 + $0xe0] sm:$0xf] }
 0x2e1   :  { %5110 = vmatpush.bf16.msra.mxu0 %v8452_v11  ;;  %v8376_v46 = vor.u32 %v9450_v57, %v8373_v30  ;;  %v7989_v62 = vld [vmem:[#allocation6 + $0x3d8] sm:$0xf0]  ;;  %v9430_v57 = vld [vmem:[#allocation6 + $0x62c] sm:$0xf] }
 0x2e2   :  { %5173 = vmatpush.bf16.msra.mxu3 %v8104_v17  ;;  %v9298_v17 = vld [vmem:[#allocation6 + $0x20c] sm:$0xf]  ;;  %v7957_v22 = vld [vmem:[#allocation6 + $0x398] sm:$0xf0] }
 0x2e3   :  { %5187 = vmatpush.bf16.msra.mxu1 %v8216_v49  ;;  %v7768_v20 = vor.u32 %v9298_v17, %v7765_v21  ;;  %v9464_v49 = vld [vmem:[#allocation6 + $0x734] sm:$0xf0]  ;;  %v9346_v17 = vld [vmem:[#allocation6 + $0x38c] sm:$0xf]  ;;  %v8309_v7 = vld [vmem:[#allocation6 + $0x658] sm:$0xf0] }
 0x2e4   :  { %v4922_v5 = vpop.f32.mrf.mxu3  ;;  %5151 = vmatpush.bf16.msrb.mxu2 %v7784_v15  ;;  %v8420_v18 = vor.u32 %v9464_v49, %v8419_v59  ;;  %v8547_v15 = vld [vmem:[#allocation9 + $0x30] sm:$0xf]  ;;  %v8312_v59 = vor.u32 %v9434_v27, %v8309_v7  ;;  %v7941_v49 = vld [vmem:[#allocation6 + $0x378] sm:$0xf0]  ;;  %v9499_v7 = vld [vmem:[#allocation9 + $0x54] sm:$0xf] }
 0x2e5   :  { %5111 = vmatpush.bf16.msra.mxu0 %v8436_v29  ;;  %v8636_v5 = vor.u32 %v9518_v25, %v8635_v24  ;;  %v8539_v29 = vld [vmem:[#allocation9 + $0x20] sm:$0xf]  ;;  %v8293_v30 = vld [vmem:[#allocation6 + $0x638] sm:$0xf0] }
 0x2e6   :  { %5174 = vmatpush.bf16.msra.mxu3 %v8088_v31  ;;  %v9504_v31 = vld [vmem:[#allocation9 + $0x74] sm:$0xf0]  ;;  %v8296_v48 = vor.u32 %v9430_v57, %v8293_v30 }
 0x2e7   :  { %5188 = vmatpush.bf16.msra.mxu1 %v8200_v33  ;;  %v8580_v41 = vor.u32 %v9504_v31, %v8579_v14  ;;  %v9446_v33 = vld [vmem:[#allocation6 + $0x6ac] sm:$0xf]  ;;  %v8277_v4 = vld [vmem:[#allocation6 + $0x618] sm:$0xf0] }
 0x2e8   :  { %5152 = vmatpush.bf16.msrb.mxu2 %v7768_v20  ;;  %v8360_v61 = vor.u32 %v9446_v33, %v8357_v55  ;;  %v9494_v14 = vld [vmem:[#allocation9 + $0x24] sm:$0xf0]  ;;  %v7960_v20 = vor.u32 %v9346_v17, %v7957_v22  ;;  %v7925_v33 = vld [vmem:[#allocation6 + $0x358] sm:$0xf0]  ;;  %v8619_v55 = vld [vmem:[#allocation9 + $0xc0] sm:$0xf] }
 0x2e9   :  { %5112 = vmatpush.bf16.msra.mxu0 %v8420_v18  ;;  %v9510_v17 = vld [vmem:[#allocation9 + $0xa4] sm:$0xf0]  ;;  %v8517_v22 = vld [vmem:[#allocation6 + $0x7f8] sm:$0xf0] }
 0x2ea   :  { %5175 = vmatpush.bf16.msra.mxu3 %v8072_v16  ;;  %v9460_v16 = vld [vmem:[#allocation6 + $0x714] sm:$0xf0] }
 0x2eb   :  { %5189 = vmatpush.bf16.msra.mxu1 %v8184_v3  ;;  %5153 = vmatmul.bf16.vlgmr.msrb.gmra.mxu2 %v9996_v54  ;;  %v8404_v52 = vor.u32 %v9460_v16, %v8403_v44  ;;  %v9498_v54 = vld [vmem:[#allocation9 + $0x44] sm:$0xf0]  ;;  %v7992_v3 = vor.u32 %v9354_v19, %v7989_v62  ;;  %v10077_v21 = vpop.f32.mrf.mxu2  ;;  %v9492_v44 = vld [vmem:[#allocation9 + $0x14] sm:$0xf0] }
 0x2ec   :  { %5197 = vmatpush.bf16.msra.mxu2 %v8392_v10  ;;  %v8556_v60 = vor.u32 %v9498_v54, %v8555_v1  ;;  %v9516_v10 = vld [vmem:[#allocation9 + $0xd4] sm:$0xf0]  ;;  %v8532_v58 = vor.u32 %v9492_v44, %v8531_v23  ;;  %v9490_v19 = vld [vmem:[#allocation9 + $0x4] sm:$0xf0]  ;;  %v8581_v1 = vld [vmem:[#allocation9 + $0x78] sm:$0xf0] }
 0x2ed   :  { %5113 = vmatpush.bf16.msra.mxu0 %v8404_v52  ;;  %v9426_v52 = vld [vmem:[#allocation6 + $0x60c] sm:$0xf]  ;;  %v9519_v44 = vld [vmem:[#allocation9 + $0xf4] sm:$0xf] }
 0x2ee   :  { %5176 = vmatpush.bf16.msra.mxu3 %v8056_v63  ;;  %v9442_v63 = vld [vmem:[#allocation6 + $0x68c] sm:$0xf]  ;;  %v8280_v54 = vor.u32 %v9426_v52, %v8277_v4  ;;  %v8469_v4 = vld [vmem:[#allocation6 + $0x798] sm:$0xf0] }
 0x2ef   :  { %5190 = vmatpush.bf16.msra.mxu1 %v8168_v47  ;;  %v8344_v28 = vor.u32 %v9442_v63, %v8341_v38  ;;  %v8328_v47 = vor.u32 %v9438_v32, %v8325_v9  ;;  %v9334_v38 = vld [vmem:[#allocation6 + $0x32c] sm:$0xf] }
 0x2f0   :  { %5198 = vmatpush.bf16.msra.mxu2 %v8376_v46  ;;  %5114 = vmatmul.bf16.vlgmr.msra.gmra.mxu0 %v10048_v35  ;;  %v9338_v46 = vld [vmem:[#allocation6 + $0x34c] sm:$0xf] }
 0x2f1   :  { %5158 = vmatpush.bf16.msrb.mxu0 %v8008_v56  ;;  %v7928_v63 = vor.u32 %v9338_v46, %v7925_v33  ;;  %v9330_v9 = vld [vmem:[#allocation6 + $0x30c] sm:$0xf]  ;;  %v9495_v33 = vld [vmem:[#allocation9 + $0x34] sm:$0xf] }
 0x2f2   :  { %5177 = vmatpush.bf16.msra.mxu3 %v8040_v51  ;;  %v9496_v51 = vld [vmem:[#allocation9 + $0x34] sm:$0xf0]  ;;  %v9474_v52 = vld [vmem:[#allocation6 + $0x78c] sm:$0xf] }
 0x2f3   :  { %5191 = vmatpush.bf16.msra.mxu1 %v8152_v39  ;;  %v10075_v12 = vpop.f32.mrf.mxu1  ;;  %v8548_v13 = vor.u32 %v9496_v51, %v8547_v15  ;;  %v8627_v39 = vld [vmem:[#allocation9 + $0xd0] sm:$0xf]  ;;  %v4896_v2 = vpop.f32.mrf.mxu2  ;;  %v7893_v51 = vld [vmem:[#allocation6 + $0x318] sm:$0xf0] }
 0x2f4   :  { %5199 = vmatpush.bf16.msra.mxu2 %v8360_v61  ;;  %v8628_v18 = vor.u32 %v9516_v10, %v8627_v39  ;;  %v8523_v61 = vld [vmem:[#allocation9] sm:$0xf]  ;;  %v7896_v27 = vor.u32 %v9330_v9, %v7893_v51  ;;  %v9497_v39 = vld [vmem:[#allocation9 + $0x44] sm:$0xf]  ;;  %v8557_v10 = vld [vmem:[#allocation9 + $0x48] sm:$0xf0] }
 0x2f5   :  { %5159 = vmatpush.bf16.msrb.mxu0 %v7992_v3  ;;  %v7909_v3 = vld [vmem:[#allocation6 + $0x338] sm:$0xf0]  ;;  %v8560_v46 = vor.u32 %v9497_v39, %v8557_v10  ;;  %v9491_v51 = vld [vmem:[#allocation9 + $0x14] sm:$0xf]  ;;  %v9462_v39 = vld [vmem:[#allocation6 + $0x72c] sm:$0xf] }
 0x2f6   :  { %5178 = vmatpush.bf16.msra.mxu3 %v8024_v34  ;;  %5192 = vmatmul.bf16.vlgmr.msra.gmra.mxu1 %v10011_v26  ;;  %v9520_v26 = vld [vmem:[#allocation9 + $0xf4] sm:$0xf0]  ;;  %v9342_v34 = vld [vmem:[#allocation6 + $0x36c] sm:$0xf]  ;;  %v7912_v32 = vor.u32 %v9334_v38, %v7909_v3 }
 0x2f7   :  { %v8644_v11 = vor.u32 %v9520_v26, %v8643_v8  ;;  %v7944_v16 = vor.u32 %v9342_v34, %v7941_v49  ;;  %v8501_v34 = vld [vmem:[#allocation6 + $0x7d8] sm:$0xf0] }
 0x2f8   :  { %5200 = vmatpush.bf16.msra.mxu2 %v8344_v28  ;;  %v9512_v28 = vld [vmem:[#allocation9 + $0xb4] sm:$0xf0] }
 0x2f9   :  { %5179 = vmatmul.bf16.vlgmr.msra.gmra.mxu3 %v10008_v53  ;;  %v7973_v53 = vld [vmem:[#allocation6 + $0x3b8] sm:$0xf0]  ;;  %5638 = vmatpush.bf16.msrb.mxu1 %v8644_v11  ;;  %v8573_v11 = vld [vmem:[#allocation9 + $0x68] sm:$0xf0] }
 0x2fa   :  { %5625 = vmatpush.bf16.msrb.mxu3 %v8580_v41  ;;  %v7976_v37 = vor.u32 %v9350_v6, %v7973_v53  ;;  %v8540_v41 = vor.u32 %v9494_v14, %v8539_v29  ;;  %v8611_v6 = vld [vmem:[#allocation9 + $0xb0] sm:$0xf]  ;;  %v8524_v53 = vor.u32 %v9490_v19, %v8523_v61  ;;  %v9508_v14 = vld [vmem:[#allocation9 + $0x94] sm:$0xf0]  ;;  %v4895_v61 = vadd.f32 %v10077_v21, %v10062_v40  ;;  %v10087_v19 = vld [vmem:[#allocation7] sm:$0xf] }
 0x2fb   :  { %v4987_v0 = vpop.f32.mrf.mxu1  ;;  %v8612_v8 = vor.u32 %v9512_v28, %v8611_v6  ;;  %v10081_v15 = vpop.f32.mrf.mxu2  ;;  %v8595_v29 = vld [vmem:[#allocation9 + $0x90] sm:$0xf]  ;;  %v8472_v6 = vor.u32 %v9474_v52, %v8469_v4  ;;  %v9470_v28 = vld [vmem:[#allocation6 + $0x76c] sm:$0xf]  ;;  %v9515_v40 = vld [vmem:[#allocation9 + $0xd4] sm:$0xf] }
 0x2fc   :  { %5160 = vmatpush.bf16.msrb.mxu0 %v7976_v37  ;;  %v10079_v31 = vpop.f32.mrf.mxu3  ;;  %5201 = vmatpush.bf16.msra.mxu2 %v8328_v47  ;;  %v8603_v37 = vld [vmem:[#allocation9 + $0xa0] sm:$0xf]  ;;  %v9486_v47 = vld [vmem:[#allocation6 + $0x7ec] sm:$0xf]  ;;  %v8485_v0 = vld [vmem:[#allocation6 + $0x7b8] sm:$0xf0]  ;;  %v4947_v52 = vadd.f32 %v10081_v15, %v10069_v43 }
 0x2fd   :  { %5639 = vmatpush.bf16.msrb.mxu1 %v8636_v5  ;;  %v8604_v24 = vor.u32 %v9510_v17, %v8603_v37  ;;  %v8520_v5 = vor.u32 %v9486_v47, %v8517_v22  ;;  %v8629_v21 = vld [vmem:[#allocation9 + $0xd8] sm:$0xf0]  ;;  %v9466_v22 = vld [vmem:[#allocation6 + $0x74c] sm:$0xf]  ;;  %v8699_v43 = vld [vmem:[#allocation9 + $0x160] sm:$0xf] }
 0x2fe   :  { %5626 = vmatpush.bf16.msrb.mxu3 %v8572_v50  ;;  %v9514_v50 = vld [vmem:[#allocation9 + $0xc4] sm:$0xf0]  ;;  %v8533_v37 = vld [vmem:[#allocation9 + $0x18] sm:$0xf0] }
 0x2ff   :  { %v8620_v56 = vor.u32 %v9514_v50, %v8619_v55  ;;  %v8549_v55 = vld [vmem:[#allocation9 + $0x38] sm:$0xf0]  ;;  %v9534_v15 = vld [vmem:[#allocation9 + $0x164] sm:$0xf0] }
 0x300   :  { %5161 = vmatpush.bf16.msrb.mxu0 %v7960_v20  ;;  %5202 = vmatpush.bf16.msra.mxu2 %v8312_v59  ;;  %v9482_v20 = vld [vmem:[#allocation6 + $0x7cc] sm:$0xf]  ;;  %v8596_v59 = vor.u32 %v9508_v14, %v8595_v29 }
 0x301   :  { %5640 = vmatpush.bf16.msrb.mxu1 %v8628_v18  ;;  %v8504_v30 = vor.u32 %v9482_v20, %v8501_v34  ;;  %v9506_v18 = vld [vmem:[#allocation9 + $0x84] sm:$0xf0]  ;;  %v9489_v20 = vld [vmem:[#allocation9 + $0x4] sm:$0xf]  ;;  %v8525_v34 = vld [vmem:[#allocation9 + $0x8] sm:$0xf0] }
 0x302   :  { %5627 = vmatpush.bf16.msrb.mxu3 %v8564_v36  ;;  %v9503_v36 = vld [vmem:[#allocation9 + $0x74] sm:$0xf] }
 0x303   :  { %v8584_v26 = vor.u32 %v9503_v36, %v8581_v1  ;;  %v4948_v57 = vpop.f32.mrf.mxu2  ;;  %v9493_v36 = vld [vmem:[#allocation9 + $0x24] sm:$0xf]  ;;  %v8541_v1 = vld [vmem:[#allocation9 + $0x28] sm:$0xf0] }
 0x304   :  { %5162 = vmatpush.bf16.msrb.mxu0 %v7944_v16  ;;  %v4974_v62 = vpop.f32.mrf.mxu3  ;;  %5203 = vmatpush.bf16.msra.mxu2 %v8296_v48  ;;  %v8645_v16 = vld [vmem:[#allocation9 + $0xf8] sm:$0xf0]  ;;  %v8544_v9 = vor.u32 %v9493_v36, %v8541_v1  ;;  %v8421_v57 = vld [vmem:[#allocation6 + $0x738] sm:$0xf0] }
 0x305   :  { %5641 = vmatpush.bf16.msrb.mxu1 %v8620_v56  ;;  %v8648_v2 = vor.u32 %v9519_v44, %v8645_v16  ;;  %v8637_v56 = vld [vmem:[#allocation9 + $0xe8] sm:$0xf0]  ;;  %v8552_v62 = vor.u32 %v9495_v33, %v8549_v55  ;;  %v8424_v44 = vor.u32 %v9462_v39, %v8421_v57  ;;  %v9458_v16 = vld [vmem:[#allocation6 + $0x70c] sm:$0xf]  ;;  %v8597_v33 = vld [vmem:[#allocation9 + $0x98] sm:$0xf0] }
 0x306   :  { %5628 = vmatpush.bf16.msrb.mxu3 %v8556_v60  ;;  %v9501_v60 = vld [vmem:[#allocation9 + $0x64] sm:$0xf]  ;;  %v8709_v57 = vld [vmem:[#allocation9 + $0x178] sm:$0xf0] }
 0x307   :  { %v8576_v25 = vor.u32 %v9501_v60, %v8573_v11  ;;  %v8632_v60 = vor.u32 %v9515_v40, %v8629_v21 }
 0x308   :  { %5163 = vmatpush.bf16.msrb.mxu0 %v7928_v63  ;;  %5204 = vmatpush.bf16.msra.mxu2 %v8280_v54 }
 0x309   :  { %5642 = vmatpush.bf16.msrb.mxu1 %v8612_v8  ;;  %v8453_v8 = vld [vmem:[#allocation6 + $0x778] sm:$0xf0] }
 0x30a   :  { %5629 = vmatpush.bf16.msrb.mxu3 %v8548_v13  ;;  %v8565_v13 = vld [vmem:[#allocation9 + $0x58] sm:$0xf0]  ;;  %v8456_v47 = vor.u32 %v9470_v28, %v8453_v8  ;;  %v9532_v8 = vld [vmem:[#allocation9 + $0x154] sm:$0xf0] }
 0x30b   :  { %5205 = vmatmul.bf16.vlgmr.msra.gmra.mxu2 %v10036_v45  ;;  %v8568_v49 = vor.u32 %v9499_v7, %v8565_v13  ;;  %v9478_v45 = vld [vmem:[#allocation6 + $0x7ac] sm:$0xf]  ;;  %v10090_v3 = vpop.f32.mrf.mxu2  ;;  %v8621_v7 = vld [vmem:[#allocation9 + $0xc8] sm:$0xf0] }
 0x30c   :  { %5164 = vmatpush.bf16.msrb.mxu0 %v7912_v32  ;;  %v8488_v50 = vor.u32 %v9478_v45, %v8485_v0  ;;  %v4907_v38 = vpop.f32.mrf.mxu0  ;;  %v8613_v45 = vld [vmem:[#allocation9 + $0xb8] sm:$0xf0]  ;;  %v9509_v0 = vld [vmem:[#allocation9 + $0xa4] sm:$0xf] }
 0x30d   :  { %5643 = vmatpush.bf16.msrb.mxu1 %v8604_v24  ;;  %v4908_v54 = vadd.f32 %v4907_v38, %v4895_v61  ;;  %v9536_v61 = vld [vmem:[#allocation9 + $0x174] sm:$0xf0] }
 0x30e   :  { %5630 = vmatpush.bf16.msrb.mxu3 %v8540_v41  ;;  %v8587_v41 = vld [vmem:[#allocation9 + $0x80] sm:$0xf] }
 0x30f   :  { %v8588_v23 = vor.u32 %v9506_v18, %v8587_v41  ;;  %v8528_v41 = vor.u32 %v9489_v20, %v8525_v34  ;;  %v9524_v20 = vld [vmem:[#allocation9 + $0x114] sm:$0xf0] }
 0x310   :  { %5165 = vmatpush.bf16.msrb.mxu0 %v7896_v27  ;;  %v9513_v27 = vld [vmem:[#allocation9 + $0xc4] sm:$0xf] }
 0x311   :  { %5644 = vmatpush.bf16.msrb.mxu1 %v8596_v59  ;;  %v8624_v29 = vor.u32 %v9513_v27, %v8621_v7  ;;  %v9526_v7 = vld [vmem:[#allocation9 + $0x124] sm:$0xf0] }
 0x312   :  { %5631 = vmatpush.bf16.msrb.mxu3 %v8532_v58  ;;  %v9517_v58 = vld [vmem:[#allocation9 + $0xe4] sm:$0xf] }
 0x313   :  { %5166 = vmatmul.bf16.vlgmr.msrb.gmra.mxu0 %v9999_v42  ;;  %v5037_v48 = vpop.f32.mrf.mxu1  ;;  %v3521_v42 = vperm.slane %v10087_v19, 2  ;;  %v8640_v63 = vor.u32 %v9517_v58, %v8637_v56  ;;  %v5000_v59 = vpop.f32.mrf.mxu2  ;;  %v8707_v56 = vld [vmem:[#allocation9 + $0x170] sm:$0xf] }
 0x314   :  { %5210 = vmatpush.bf16.msra.mxu0 %v8520_v5  ;;  %v8536_v5 = vor.u32 %v9491_v51, %v8533_v37  ;;  %v4909_v14 = vpop.f32.mrf.mxu0  ;;  %v8651_v59 = vld [vmem:[#allocation9 + $0x100] sm:$0xf] }
 0x315   :  { %5645 = vmatpush.bf16.msrb.mxu1 %v8588_v23  ;;  %v8605_v23 = vld [vmem:[#allocation9 + $0xa8] sm:$0xf0]  ;;  %v8659_v14 = vld [vmem:[#allocation9 + $0x110] sm:$0xf] }
 0x316   :  { %5632 = vmatpush.bf16.msrb.mxu3 %v8524_v53  ;;  %v8660_v34 = vor.u32 %v9524_v20, %v8659_v14 }
 0x318   :  { %5211 = vmatpush.bf16.msra.mxu0 %v8504_v30  ;;  %v9511_v30 = vld [vmem:[#allocation9 + $0xb4] sm:$0xf] }
 0x319   :  { %5690 = vmatpush.bf16.msra.mxu1 %v8648_v2  ;;  %v8616_v18 = vor.u32 %v9511_v30, %v8613_v45  ;;  %v8608_v2 = vor.u32 %v9509_v0, %v8605_v23  ;;  %v9533_v45 = vld [vmem:[#allocation9 + $0x164] sm:$0xf]  ;;  %v3522_v23 = vperm.slane %v10087_v19, 3 }
 0x31a   :  { %5677 = vmatpush.bf16.msra.mxu3 %v8584_v26  ;;  %v5223_v26 = vmul.f32 0.2, %v4908_v54 }
 0x31b   :  { %v5039_v11 = vpop.f32.mrf.mxu1 }
 0x31c   :  { %5212 = vmatpush.bf16.msra.mxu0 %v8488_v50  ;;  %v5024_v53 = vpop.f32.mrf.mxu3  ;;  %v5227_v17 = vmax.f32 %v4908_v54, %v5223_v26  ;;  %v4959_v55 = vpop.f32.mrf.mxu0  ;;  %v9530_v11 = vld [vmem:[#allocation9 + $0x144] sm:$0xf0] }
 0x31d   :  { %5691 = vmatpush.bf16.msra.mxu1 %v8640_v63  ;;  %v5025_v32 = vadd.f32 %v5024_v53, %v3521_v42  ;;  %v4960_v58 = vadd.f32 %v4959_v55, %v4947_v52  ;;  %v9505_v42 = vld [vmem:[#allocation9 + $0x84] sm:$0xf]  ;;  %v8589_v63 = vld [vmem:[#allocation9 + $0x88] sm:$0xf0]  ;;  %v8691_v53 = vld [vmem:[#allocation9 + $0x150] sm:$0xf] }
 0x31e   :  { %5678 = vmatpush.bf16.msra.mxu3 %v8576_v25  ;;  %v8437_v25 = vld [vmem:[#allocation6 + $0x758] sm:$0xf0]  ;;  %v5231_v13 = vpack.c.bf16 %v5227_v17, %v5227_v17  ;;  %v8592_v1 = vor.u32 %v9505_v42, %v8589_v63  ;;  %v8675_v17 = vld [vmem:[#allocation9 + $0x130] sm:$0xf]  ;;  %v8685_v52 = vld [vmem:[#allocation9 + $0x148] sm:$0xf0] }
 0x31f   :  { %v10092_v24 = vadd.f32 %v5037_v48, %v5025_v32  ;;  %v9507_v48 = vld [vmem:[#allocation9 + $0x94] sm:$0xf]  ;;  %v4973_v38 = vadd.f32 %v10079_v31, %v4960_v58  ;;  %v8692_v31 = vor.u32 %v9532_v8, %v8691_v53  ;;  %v8677_v42 = vld [vmem:[#allocation9 + $0x138] sm:$0xf0]  ;;  %v9525_v63 = vld [vmem:[#allocation9 + $0x124] sm:$0xf] }
 0x320   :  { %5213 = vmatpush.bf16.msra.mxu0 %v8472_v6  ;;  %5633 = vmatmul.bf16.vlgmr.msrb.gmra.mxu3 %v5231_v13  ;;  %v8600_v4 = vor.u32 %v9507_v48, %v8597_v33  ;;  %v8700_v6 = vor.u32 %v9534_v15, %v8699_v43  ;;  %v8771_v15 = vld [vmem:[#allocation9 + $0x1f0] sm:$0xf]  ;;  %v8661_v53 = vld [vmem:[#allocation9 + $0x118] sm:$0xf0] }
 0x321   :  { %5692 = vmatpush.bf16.msra.mxu1 %v8632_v60  ;;  %v4986_v28 = vadd.f32 %v10075_v12, %v4973_v38  ;;  %v8683_v60 = vld [vmem:[#allocation9 + $0x140] sm:$0xf]  ;;  %v8669_v38 = vld [vmem:[#allocation9 + $0x128] sm:$0xf0] }
 0x322   :  { %5679 = vmatpush.bf16.msra.mxu3 %v8568_v49  ;;  %v8440_v49 = vor.u32 %v9466_v22, %v8437_v25  ;;  %v8684_v51 = vor.u32 %v9530_v11, %v8683_v60  ;;  %v8667_v22 = vld [vmem:[#allocation9 + $0x120] sm:$0xf]  ;;  %v8672_v43 = vor.u32 %v9525_v63, %v8669_v38  ;;  %v9545_v63 = vld [vmem:[#allocation9 + $0x1c4] sm:$0xf]  ;;  %v8749_v38 = vld [vmem:[#allocation9 + $0x1c8] sm:$0xf0] }
 0x324   :  { %5214 = vmatpush.bf16.msra.mxu0 %v8456_v47  ;;  %v5026_v10 = vpop.f32.mrf.mxu3  ;;  %v4961_v36 = vpop.f32.mrf.mxu0  ;;  %v9528_v47 = vld [vmem:[#allocation9 + $0x134] sm:$0xf0] }
 0x325   :  { %5693 = vmatpush.bf16.msra.mxu1 %v8624_v29  ;;  %v8676_v27 = vor.u32 %v9528_v47, %v8675_v17  ;;  %v9535_v10 = vld [vmem:[#allocation9 + $0x174] sm:$0xf] }
 0x326   :  { %5680 = vmatpush.bf16.msra.mxu3 %v8560_v46  ;;  %v8405_v46 = vld [vmem:[#allocation6 + $0x718] sm:$0xf0]  ;;  %v8712_v30 = vor.u32 %v9535_v10, %v8709_v57  ;;  %v9542_v10 = vld [vmem:[#allocation9 + $0x1a4] sm:$0xf0] }
 0x327   :  { %v8408_v50 = vor.u32 %v9458_v16, %v8405_v46  ;;  %v8693_v16 = vld [vmem:[#allocation9 + $0x158] sm:$0xf0] }
 0x328   :  { %5215 = vmatpush.bf16.msra.mxu0 %v8440_v49  ;;  %v9522_v49 = vld [vmem:[#allocation9 + $0x104] sm:$0xf0] }
 0x329   :  { %5694 = vmatpush.bf16.msra.mxu1 %v8616_v18  ;;  %v8652_v39 = vor.u32 %v9522_v49, %v8651_v59  ;;  %v9544_v59 = vld [vmem:[#allocation9 + $0x1b4] sm:$0xf0]  ;;  %v8731_v49 = vld [vmem:[#allocation9 + $0x1a0] sm:$0xf] }
 0x32a   :  { %5681 = vmatpush.bf16.msra.mxu3 %v8552_v62  ;;  %v8708_v62 = vor.u32 %v9536_v61, %v8707_v56  ;;  %v9527_v61 = vld [vmem:[#allocation9 + $0x134] sm:$0xf] }
 0x32b   :  { %v10101_v40 = vpop.f32.mrf.mxu2  ;;  %v8680_v19 = vor.u32 %v9527_v61, %v8677_v42  ;;  %v8757_v61 = vld [vmem:[#allocation9 + $0x1d8] sm:$0xf0] }
 0x32c   :  { %5216 = vmatpush.bf16.msra.mxu0 %v8424_v44  ;;  %5651 = vmatpush.bf16.msrb.mxu2 %v8708_v62  ;;  %v9531_v44 = vld [vmem:[#allocation9 + $0x154] sm:$0xf] }
 0x32d   :  { %5695 = vmatpush.bf16.msra.mxu1 %v8608_v2  ;;  %v5011_v26 = vpop.f32.mrf.mxu0  ;;  %v8696_v2 = vor.u32 %v9531_v44, %v8693_v16  ;;  %v8715_v16 = vld [vmem:[#allocation9 + $0x180] sm:$0xf] }
 0x32e   :  { %5682 = vmatpush.bf16.msra.mxu3 %v8544_v9 }
 0x330   :  { %5217 = vmatpush.bf16.msra.mxu0 %v8408_v50  ;;  %5652 = vmatpush.bf16.msrb.mxu2 %v8700_v6  ;;  %v9529_v50 = vld [vmem:[#allocation9 + $0x144] sm:$0xf]  ;;  %v9552_v6 = vld [vmem:[#allocation9 + $0x1f4] sm:$0xf0] }
 0x331   :  { %5696 = vmatpush.bf16.msra.mxu1 %v8600_v4  ;;  %v8688_v56 = vor.u32 %v9529_v50, %v8685_v52  ;;  %v8772_v8 = vor.u32 %v9552_v6, %v8771_v15  ;;  %v8765_v52 = vld [vmem:[#allocation9 + $0x1e8] sm:$0xf0]  ;;  %v9541_v6 = vld [vmem:[#allocation9 + $0x1a4] sm:$0xf] }
 0x332   :  { %5683 = vmatpush.bf16.msra.mxu3 %v8536_v5 }
 0x333   :  { %5218 = vmatmul.bf16.vlgmr.msra.gmra.mxu0 %v10048_v35  ;;  %v10098_v54 = vpop.f32.mrf.mxu1  ;;  %v4999_v35 = vadd.f32 %v10090_v3, %v4986_v28  ;;  %v5052_v25 = vpop.f32.mrf.mxu2  ;;  %v8668_v3 = vor.u32 %v9526_v7, %v8667_v22  ;;  %v9523_v28 = vld [vmem:[#allocation9 + $0x114] sm:$0xf]  ;;  %v8755_v22 = vld [vmem:[#allocation9 + $0x1d0] sm:$0xf] }
 0x334   :  { %5653 = vmatpush.bf16.msrb.mxu2 %v8692_v31  ;;  %5664 = vmatpush.bf16.msrb.mxu0 %v8772_v8  ;;  %v8664_v31 = vor.u32 %v9523_v28, %v8661_v53  ;;  %v9548_v25 = vld [vmem:[#allocation9 + $0x1d4] sm:$0xf0]  ;;  %v8733_v28 = vld [vmem:[#allocation9 + $0x1a8] sm:$0xf0] }
 0x335   :  { %5697 = vmatpush.bf16.msra.mxu1 %v8592_v1  ;;  %v5012_v32 = vadd.f32 %v5011_v26, %v4999_v35  ;;  %v5013_v29 = vpop.f32.mrf.mxu0  ;;  %v9521_v35 = vld [vmem:[#allocation9 + $0x104] sm:$0xf]  ;;  %v8653_v26 = vld [vmem:[#allocation9 + $0x108] sm:$0xf0] }
 0x336   :  { %5684 = vmatpush.bf16.msra.mxu3 %v8528_v41  ;;  %v8701_v41 = vld [vmem:[#allocation9 + $0x168] sm:$0xf0]  ;;  %v8656_v60 = vor.u32 %v9521_v35, %v8653_v26  ;;  %v9546_v29 = vld [vmem:[#allocation9 + $0x1c4] sm:$0xf0]  ;;  %v9539_v35 = vld [vmem:[#allocation9 + $0x194] sm:$0xf] }
 0x337   :  { %v5224_v37 = vmul.f32 0.2, %v5012_v32  ;;  %v8704_v0 = vor.u32 %v9533_v45, %v8701_v41  ;;  %v8725_v26 = vld [vmem:[#allocation9 + $0x198] sm:$0xf0] }
 0x338   :  { %5654 = vmatpush.bf16.msrb.mxu2 %v8684_v51  ;;  %v8763_v51 = vld [vmem:[#allocation9 + $0x1e0] sm:$0xf] }
 0x339   :  { %5685 = vmatmul.bf16.vlgmr.msra.gmra.mxu3 %v5231_v13  ;;  %v5228_v12 = vmax.f32 %v5012_v32, %v5224_v37  ;;  %v5051_v32 = vadd.f32 %v10101_v40, %v10092_v24  ;;  %v9550_v37 = vld [vmem:[#allocation9 + $0x1e4] sm:$0xf0] }
 0x33a   :  { %v8764_v17 = vor.u32 %v9550_v37, %v8763_v51  ;;  %v8717_v51 = vld [vmem:[#allocation9 + $0x188] sm:$0xf0] }
 0x33b   :  { %v5091_v9 = vpop.f32.mrf.mxu1  ;;  %v5232_v13 = vpack.c.bf16 %v5228_v12, %v5228_v12 }
 0x33c   :  { %v10103_v21 = vpop.f32.mrf.mxu3  ;;  %5655 = vmatpush.bf16.msrb.mxu2 %v8676_v27  ;;  %5665 = vmatpush.bf16.msrb.mxu0 %v8764_v17  ;;  %v8756_v27 = vor.u32 %v9548_v25, %v8755_v22 }
 0x33d   :  { %5646 = vmatmul.bf16.vlgmr.msrb.gmra.mxu1 %v5232_v13 }
 0x340   :  { %5656 = vmatpush.bf16.msrb.mxu2 %v8668_v3  ;;  %5666 = vmatpush.bf16.msrb.mxu0 %v8756_v27 }
 0x344   :  { %v5078_v5 = vpop.f32.mrf.mxu3  ;;  %5657 = vmatpush.bf16.msrb.mxu2 %v8660_v34 }
 0x345   :  { %v8747_v5 = vld [vmem:[#allocation9 + $0x1c0] sm:$0xf] }
 0x346   :  { %v8748_v14 = vor.u32 %v9546_v29, %v8747_v5 }
 0x348   :  { %5658 = vmatpush.bf16.msrb.mxu2 %v8652_v39  ;;  %5667 = vmatpush.bf16.msrb.mxu0 %v8748_v14 }
 0x34c   :  { %5703 = vmatpush.bf16.msra.mxu2 %v8712_v30 }
 0x34d   :  { %5698 = vmatmul.bf16.vlgmr.msra.gmra.mxu1 %v5232_v13  ;;  %v5063_v55 = vpop.f32.mrf.mxu0 }
 0x34e   :  { %v5102_v46 = vpop.f32.mrf.mxu2  ;;  %v5064_v9 = vadd.f32 %v5063_v55, %v5051_v32  ;;  %v9549_v55 = vld [vmem:[#allocation9 + $0x1e4] sm:$0xf]  ;;  %v8728_v32 = vor.u32 %v9539_v35, %v8725_v26 }
 0x350   :  { %5704 = vmatpush.bf16.msra.mxu2 %v8704_v0  ;;  %v5077_v11 = vadd.f32 %v10103_v21, %v5064_v9  ;;  %v8723_v0 = vld [vmem:[#allocation9 + $0x190] sm:$0xf] }
 0x352   :  { %v5090_v47 = vadd.f32 %v10098_v54, %v5077_v11  ;;  %v8739_v54 = vld [vmem:[#allocation9 + $0x1b0] sm:$0xf]  ;;  %v9537_v11 = vld [vmem:[#allocation9 + $0x184] sm:$0xf] }
 0x353   :  { %v5141_v18 = vpop.f32.mrf.mxu1  ;;  %v8740_v39 = vor.u32 %v9544_v59, %v8739_v54  ;;  %v8720_v37 = vor.u32 %v9537_v11, %v8717_v51 }
 0x354   :  { %5705 = vmatpush.bf16.msra.mxu2 %v8696_v2  ;;  %v5103_v24 = vadd.f32 %v5102_v46, %v5090_v47  ;;  %v9538_v46 = vld [vmem:[#allocation9 + $0x184] sm:$0xf0] }
 0x355   :  { %v5065_v1 = vpop.f32.mrf.mxu0  ;;  %5668 = vmatpush.bf16.msrb.mxu0 %v8740_v39  ;;  %v8716_v2 = vor.u32 %v9538_v46, %v8715_v16  ;;  %v9556_v16 = vld [vmem:[%s10184_s7 + $0x18] sm:$0xff] }
 0x356   :  { %v5104_v62 = vpop.f32.mrf.mxu2  ;;  %v9543_v1 = vld [vmem:[#allocation9 + $0x1b4] sm:$0xf] }
 0x358   :  { %5706 = vmatpush.bf16.msra.mxu2 %v8688_v56  ;;  %v9547_v56 = vld [vmem:[#allocation9 + $0x1d4] sm:$0xf] }
 0x359   :  { %v8760_v42 = vor.u32 %v9547_v56, %v8757_v61  ;;  %v9564_v56 = vld [vmem:[%s10184_s7 + $0x58] sm:$0xff]  ;;  %v9563_v61 = vld [vmem:[%s10184_s7 + $0x50] sm:$0xff] }
 0x35b   :  { %v5143_v4 = vpop.f32.mrf.mxu1 }
 0x35c   :  { %v5128_v48 = vpop.f32.mrf.mxu3  ;;  %5707 = vmatpush.bf16.msra.mxu2 %v8680_v19  ;;  %v8768_v4 = vor.u32 %v9549_v55, %v8765_v52  ;;  %v9566_v55 = vld [vmem:[%s10184_s7 + $0x68] sm:$0xff]  ;;  %v9553_v52 = vld [vmem:[%s10184_s7] sm:$0xff] }
 0x35d   :  { %v5129_v33 = vadd.f32 %v5128_v48, %v3522_v23  ;;  %v9540_v23 = vld [vmem:[#allocation9 + $0x194] sm:$0xf0]  ;;  %v9551_v48 = vld [vmem:[#allocation9 + $0x1f4] sm:$0xf] }
 0x35e   :  { %v8724_v44 = vor.u32 %v9540_v23, %v8723_v0  ;;  %v9558_v0 = vld [vmem:[%s10184_s7 + $0x28] sm:$0xff] }
 0x35f   :  { %v10107_v58 = vadd.f32 %v5141_v18, %v5129_v33  ;;  %v8732_v18 = vor.u32 %v9542_v10, %v8731_v49  ;;  %v8773_v33 = vld [vmem:[#allocation9 + $0x1f8] sm:$0xf0] }
 0x360   :  { %5708 = vmatpush.bf16.msra.mxu2 %v8672_v43  ;;  %v8776_v50 = vor.u32 %v9551_v48, %v8773_v33  ;;  %v8741_v43 = vld [vmem:[#allocation9 + $0x1b8] sm:$0xf0] }
 0x361   :  { %5669 = vmatpush.bf16.msrb.mxu0 %v8732_v18  ;;  %v8744_v15 = vor.u32 %v9543_v1, %v8741_v43  ;;  %v9567_v18 = vld [vmem:[%s10184_s7 + $0x70] sm:$0xff]  ;;  %v9554_v33 = vld [vmem:[%s10184_s7 + $0x8] sm:$0xff] }
 0x364   :  { %v5130_v36 = vpop.f32.mrf.mxu3  ;;  %5709 = vmatpush.bf16.msra.mxu2 %v8664_v31  ;;  %v8736_v31 = vor.u32 %v9541_v6, %v8733_v28 }
 0x365   :  { %5670 = vmatpush.bf16.msrb.mxu0 %v8724_v44  ;;  %v8752_v36 = vor.u32 %v9545_v63, %v8749_v38  ;;  %v9557_v44 = vld [vmem:[%s10184_s7 + $0x20] sm:$0xff] }
 0x368   :  { %5710 = vmatpush.bf16.msra.mxu2 %v8656_v60 }
 0x369   :  { %5671 = vmatpush.bf16.msrb.mxu0 %v8716_v2  ;;  %v9555_v2 = vld [vmem:[%s10184_s7 + $0x10] sm:$0xff] }
 0x36d   :  { %v5115_v13 = vpop.f32.mrf.mxu0  ;;  %5716 = vmatpush.bf16.msra.mxu0 %v8776_v50 }
 0x36e   :  { %v10115_v7 = vpop.f32.mrf.mxu2  ;;  %v5116_v21 = vadd.f32 %v5115_v13, %v5103_v24 }
 0x36f   :  { %v5155_v9 = vadd.f32 %v10115_v7, %v10107_v58  ;;  %v5299_v7 = vld [vmem:[#allocation10] sm:$0x3] }
 0x370   :  { %v5225_v20 = vmul.f32 0.2, %v5116_v21  ;;  %v5301_v14 = vperm.slane %v5299_v7, 0  ;;  %v5302_v49 = vperm.slane %v5299_v7, 1 }
 0x371   :  { %5717 = vmatpush.bf16.msra.mxu0 %v8768_v4  ;;  %v9565_v4 = vld [vmem:[%s10184_s7 + $0x60] sm:$0xff] }
 0x372   :  { %v5229_v34 = vmax.f32 %v5116_v21, %v5225_v20 }
 0x373   :  { %v10112_v12 = vpop.f32.mrf.mxu1 }
 0x374   :  { %v5233_v57 = vpack.c.bf16 %v5229_v34, %v5229_v34 }
 0x375   :  { %v5117_v41 = vpop.f32.mrf.mxu0  ;;  %5718 = vmatpush.bf16.msra.mxu0 %v8760_v42  ;;  %v9562_v42 = vld [vmem:[%s10184_s7 + $0x48] sm:$0xff] }
 0x376   :  { %v5156_v30 = vpop.f32.mrf.mxu2  ;;  %5659 = vmatmul.bf16.vlgmr.msrb.gmra.mxu2 %v5233_v57  ;;  %v9559_v41 = vld [vmem:[%s10184_s7 + $0x30] sm:$0xff] }
 0x377   :  { %v9560_v30 = vld [vmem:[%s10184_s7 + $0x38] sm:$0xff] }
 0x378   :  { %5867 = vmatpush.bf16.msrb.mxu3 %v9560_v30 }
 0x379   :  { %5719 = vmatpush.bf16.msra.mxu0 %v8752_v36 }
 0x37b   :  { %v5195_v3 = vpop.f32.mrf.mxu1 }
 0x37c   :  { %v10117_v40 = vpop.f32.mrf.mxu3  ;;  %5868 = vmatpush.bf16.msrb.mxu3 %v9559_v41 }
 0x37d   :  { %5720 = vmatpush.bf16.msra.mxu0 %v8744_v15 }
 0x380   :  { %5869 = vmatpush.bf16.msrb.mxu3 %v9558_v0 }
 0x381   :  { %5721 = vmatpush.bf16.msra.mxu0 %v8736_v31 }
 0x384   :  { %v5182_v45 = vpop.f32.mrf.mxu3  ;;  %5870 = vmatpush.bf16.msrb.mxu3 %v9557_v44 }
 0x385   :  { %5722 = vmatpush.bf16.msra.mxu0 %v8728_v32  ;;  %v9568_v45 = vld [vmem:[%s10184_s7 + $0x78] sm:$0xff] }
 0x386   :  { %5711 = vmatmul.bf16.vlgmr.msra.gmra.mxu2 %v5233_v57  ;;  %5880 = vmatpush.bf16.msrb.mxu1 %v9568_v45 }
 0x388   :  { %5871 = vmatpush.bf16.msrb.mxu3 %v9556_v16 }
 0x389   :  { %5723 = vmatpush.bf16.msra.mxu0 %v8720_v37 }
 0x38a   :  { %5881 = vmatpush.bf16.msrb.mxu1 %v9567_v18 }
 0x38c   :  { %5872 = vmatpush.bf16.msrb.mxu3 %v9555_v2 }
 0x38e   :  { %v5206_v62 = vpop.f32.mrf.mxu2  ;;  %5882 = vmatpush.bf16.msrb.mxu1 %v9566_v55 }
 0x390   :  { %v5167_v19 = vpop.f32.mrf.mxu0  ;;  %5873 = vmatpush.bf16.msrb.mxu3 %v9554_v33 }
 0x391   :  { %v5168_v60 = vadd.f32 %v5167_v19, %v5155_v9  ;;  %v9581_v9 = vld [vmem:[%s10185_s8] ss:$0 sm:$0xff] }
 0x392   :  { %5883 = vmatpush.bf16.msrb.mxu1 %v9565_v4 }
 0x393   :  { %v5181_v17 = vadd.f32 %v10117_v40, %v5168_v60 }
 0x394   :  { %5874 = vmatpush.bf16.msrb.mxu3 %v9553_v52 }
 0x395   :  { %v5194_v22 = vadd.f32 %v10112_v12, %v5181_v17 }
 0x396   :  { %v5208_v53 = vpop.f32.mrf.mxu2  ;;  %5884 = vmatpush.bf16.msrb.mxu1 %v9564_v56 }
 0x397   :  { %v5207_v25 = vadd.f32 %v5206_v62, %v5194_v22  ;;  %v9561_v62 = vld [vmem:[%s10184_s7 + $0x40] sm:$0xff] }
 0x398   :  { %v5169_v8 = vpop.f32.mrf.mxu0 }
 0x39a   :  { %5885 = vmatpush.bf16.msrb.mxu1 %v9563_v61 }
 0x39e   :  { %5886 = vmatpush.bf16.msrb.mxu1 %v9562_v42 }
 0x3a2   :  { %5887 = vmatpush.bf16.msrb.mxu1 %v9561_v62 }
 0x3a3   :  { %v5634_v47 = vpop.f32.mrf.mxu3 }
 0x3a4   :  { %v5635_v34 = vadd.f32 %v5634_v47, %v5301_v14 }
 0x3ab   :  { %v5636_v27 = vpop.f32.mrf.mxu3 }
 0x3b0   :  { %v5219_v24 = vpop.f32.mrf.mxu0 }
 0x3b1   :  { %v5220_v13 = vadd.f32 %v5219_v24, %v5207_v25 }
 0x3b3   :  { %v5226_v21 = vmul.f32 0.2, %v5220_v13 }
 0x3b5   :  { %v5230_v5 = vmax.f32 %v5220_v13, %v5226_v21 }
 0x3b7   :  { %v5234_v29 = vpack.c.bf16 %v5230_v5, %v5230_v5 }
 0x3b8   :  { %v5221_v58 = vpop.f32.mrf.mxu0 }
 0x3b9   :  { %5672 = vmatmul.bf16.vlgmr.msrb.gmra.mxu0 %v5234_v29 }
 0x3ba   :  { %v5647_v54 = vpop.f32.mrf.mxu1 }
 0x3bb   :  { %v5648_v40 = vadd.f32 %v5647_v54, %v5635_v34 }
 0x3bc   :  { %v5686_v3 = vpop.f32.mrf.mxu3 }
 0x3bd   :  { %v5687_v12 = vadd.f32 %v5686_v3, %v5302_v49 }
 0x3c2   :  { %v5649_v59 = vpop.f32.mrf.mxu1 }
 0x3c4   :  { %v5688_v20 = vpop.f32.mrf.mxu3 }
 0x3c9   :  { %5724 = vmatmul.bf16.vlgmr.msra.gmra.mxu0 %v5234_v29 }
 0x3ca   :  { %v5699_v39 = vpop.f32.mrf.mxu1 }
 0x3cb   :  { %v5700_v10 = vadd.f32 %v5699_v39, %v5687_v12 }
 0x3d2   :  { %v5701_v57 = vpop.f32.mrf.mxu1 }
 0x3f9   :  { %v5660_v23 = vpop.f32.mrf.mxu2 }
 0x3fa   :  { %v5661_v19 = vadd.f32 %v5660_v23, %v5648_v40 }
 0x401   :  { %v5662_v46 = vpop.f32.mrf.mxu2 }
 0x409   :  { %v5712_v48 = vpop.f32.mrf.mxu2 }
 0x40a   :  { %v5713_v6 = vadd.f32 %v5712_v48, %v5700_v10 }
 0x411   :  { %v5714_v50 = vpop.f32.mrf.mxu2 }
 0x436   :  { %v5673_v63 = vpop.f32.mrf.mxu0 }
 0x437   :  { %v5674_v38 = vadd.f32 %v5673_v63, %v5661_v19 }
 0x439   :  { %v5729_v36 = vmul.f32 0.2, %v5674_v38 }
 0x43b   :  { %v5731_v1 = vmax.f32 %v5674_v38, %v5729_v36 }
 0x43d   :  { %v5733_v43 = vpack.c.bf16 %v5731_v1, %v5731_v1 }
 0x43e   :  { %v5675_v15 = vpop.f32.mrf.mxu0 }
 0x43f   :  { %5875 = vmatmul.bf16.vlgmr.msrb.gmra.mxu3 %v5733_v43 }
 0x446   :  { %v5725_v28 = vpop.f32.mrf.mxu0 }
 0x447   :  { %v5726_v53 = vadd.f32 %v5725_v28, %v5713_v6 }
 0x449   :  { %v5730_v8 = vmul.f32 0.2, %v5726_v53 }
 0x44b   :  { %v5732_v31 = vmax.f32 %v5726_v53, %v5730_v8 }
 0x44d   :  { %v5734_v35 = vpack.c.bf16 %v5732_v31, %v5732_v31 }
 0x44e   :  { %v5727_v26 = vpop.f32.mrf.mxu0 }
 0x44f   :  { %5888 = vmatmul.bf16.vlgmr.msrb.gmra.mxu1 %v5734_v35 }
 0x4c2   :  { %v5876_v32 = vpop.f32.mrf.mxu3 }
 0x4c3   :  { %v5877_v11 = vadd.f32 %v9581_v9, %v5876_v32 }
 0x4ca   :  { %v5878_v60 = vpop.f32.mrf.mxu3 }
 0x4cc   :  { %v5889_v51 = vpop.f32.mrf.mxu1 }
 0x4cd   :  { %v5890_v37 = vadd.f32 %v5889_v51, %v5877_v11 }
 0x4cf   :  { %v5893_v17 = vsub.f32 0.0, %v5890_v37 }
 0x4d1   :  { %v5894_v47 = vmul.f32 1.442695, %v5893_v17 }
 0x4d3   :  { %9582 = vpow2.f32 %v5894_v47 }
 0x4d4   :  { %v5891_v22 = vpop.f32.mrf.mxu1 }
 0x4d9   :  { %v9583_v25 = vpop.eup %9582 }
 0x4da   :  { %v5896_v27 = vadd.f32 1.0, %v9583_v25 }
 0x4dc   :  { %9584 = vrcp.f32 %v5896_v27  ;;  %v5908_v5 = vand.u32 2147483648, %v5896_v27  ;;  %v5906_v3 = vand.u32 2147483647, %v5896_v27  ;;  %vm5902_vm2 = vweird.f32 %v5896_v27 }
 0x4de   :  { %v5909_v7 = vor.u32 1.1754944e-38, %v5908_v5  ;;  %vm5907_vm4 = vcmp.eq.f32.partialorder %v5906_v3, 8.507059e+37 }
 0x4e2   :  { %v9585_v24 = vpop.eup %9584 }
 0x4e3   :  { %v5898_v13 = vmul.f32 %v9585_v24, %v5896_v27  ;;  %vm5903_vm1 = vweird.f32 %v9585_v24 }
 0x4e4   :  { %vm5904_vm3 = vmor %vm5902_vm2, %vm5903_vm1 }
 0x4e5   :  { %v5899_v21 = vsub.f32 1.0, %v5898_v13 }
 0x4e7   :  { %v5900_v29 = vmul.f32 %v9585_v24, %v5899_v21 }
 0x4e9   :  { %v5901_v58 = vadd.f32 %v9585_v24, %v5900_v29 }
 0x4eb   :  { %v5905_v14 = vsel %vm5904_vm3, %v9585_v24, %v5901_v58 }
 0x4ec   :  { %v5910_v20 = vsel %vm5907_vm4, %v5909_v7, %v5905_v14 }
 0x4ed   :  { %5912 = vst [vmem:[%s10186_s9] sm:$0xff] %v5910_v20 }
 0x4ee   :  { %5917 = vsyncpa [#allocation3], 1 }
 0x4ef   :  { %5918 = vsyncpa [#allocation5], 1 }
 0x4f0   :  { %5919 = vsyncpa [#allocation8], 1 }
 0x4f1   :  { %5920 = vsyncpa [#allocation11], 1 }

</bundles_post_ra>
